<compile_context>
chip_gen: v7x
topology: tpu7x:2x2x1
jax: 0.10.0
libtpu: 0.0.40
codegen_flags: <defaults>
</compile_context>

<pallas_src>
import functools

import jax
import jax.numpy as jnp
from jax.experimental import pallas as pl
from jax.experimental.pallas import tpu as pltpu


LPAD = 16  # left pad columns: sublane-aligned for both f32 and bf16 interiors
RPAD = 16  # right pad columns (same width so the zero band is reusable)


# ----------------------------- Pallas kernel -------------------------------

def _zero_halo(pad_ref, H, W, dtype):
    """Zero the halo of a (H+2, LPAD+W+RPAD, C) padded VMEM scratch.

    Only aligned strips are written (top/bottom rows + the LPAD/RPAD column
    bands); the interior [1:H+1, LPAD:LPAD+W) is overwritten with data right
    after, so every boundary tap of the 3x3 conv reads zeros — identical to
    'same' zero padding.  Re-done every grid step so it stays correct even
    when the parallel grid axis is split across TensorCores (per-core
    scratch); the strips are tiny so the cost is negligible.
    """
    Wp = pad_ref.shape[1]
    C = pad_ref.shape[2]
    zrow = jnp.zeros((Wp, C), dtype)
    pad_ref[0, :, :] = zrow
    pad_ref[H + 1, :, :] = zrow
    zband = jnp.zeros((H + 2, LPAD, C), dtype)
    pad_ref[:, 0:LPAD, :] = zband
    pad_ref[:, LPAD + W:LPAD + W + RPAD, :] = zband


def _conv3x3(pad_ref, w_ref, H, W, C):
    """3x3 'same' conv on the padded scratch -> (H*W, C) float32 accumulator.

    Nine shifted (H*W, Cin) @ (Cin, Cout) MXU matmuls accumulated in f32.
    Weights are already in the compute dtype (cast hoisted to the wrapper).
    # TODO(synk): concatenate the 3 kw taps into (H*W, 3C) @ (3C, C) matmuls
    # to deepen K when C < 128 (needs minor-dim concat support in Mosaic).
    """
    col0 = LPAD - 1
    acc = jnp.zeros((H * W, C), jnp.float32)
    for kh in range(3):
        for kw in range(3):
            patch = pad_ref[kh:kh + H, col0 + kw:col0 + kw + W, :]
            acc = acc + jnp.dot(
                patch.reshape(H * W, C),
                w_ref[kh, kw],
                preferred_element_type=jnp.float32,
            )
    return acc


def res_block_kernel(x_ref, w1_ref, t1_ref, w2_ref, t2_ref, out_ref, pad_ref):
    """out = ReLU(x + ReLU(conv2(ReLU(conv1(x) + t1)) + t2)).

    conv bias and BN are folded into w1/w2 (output-channel scale) and t1/t2.
    A single padded scratch is reused for both conv stages: y is fully
    materialized as a value before the interior is overwritten, so the reads
    of the x-padded tile are guaranteed to precede the y store.
    """
    H, W, C = out_ref.shape[1], out_ref.shape[2], out_ref.shape[3]
    cdt = pad_ref.dtype

    # Stage 0: zero the halo once; only the interior is ever stored after
    # this, so the halo stays zero for both conv stages.
    _zero_halo(pad_ref, H, W, cdt)

    # Stage 1: conv1 + folded bias/BN + ReLU (intermediate y stays in VMEM).
    pad_ref[1:H + 1, LPAD:LPAD + W, :] = x_ref[0]
    y = _conv3x3(pad_ref, w1_ref, H, W, C)            # (H*W, C) f32
    y = jnp.maximum(y + t1_ref[...], 0.0)             # + (1, C) shift

    # Stage 2: conv2 + folded bias/BN + ReLU + residual add + final ReLU.
    pad_ref[1:H + 1, LPAD:LPAD + W, :] = y.reshape(H, W, C).astype(cdt)
    z = _conv3x3(pad_ref, w2_ref, H, W, C)
    z = jnp.maximum(z + t2_ref[...], 0.0)

    out = jnp.maximum(x_ref[0].reshape(H * W, C).astype(jnp.float32) + z, 0.0)
    out_ref[0] = out.reshape(H, W, C).astype(out_ref.dtype)


# ------------------------------- Wrapper ------------------------------------

@functools.partial(jax.jit, static_argnames=("compute_dtype",))
def res_block_pallas(x_nchw, params, compute_dtype=jnp.float32):
    eps = 1e-5
    N, C, H, W = x_nchw.shape

    # NCHW -> NHWC so channels sit on the lane dimension.
    # TODO(synk): keep activations NHWC end-to-end in the surrounding model to
    # drop these two full-tensor transposes (they are pure HBM traffic).
    x = jnp.transpose(x_nchw, (0, 2, 3, 1)).astype(compute_dtype)

    # Fold conv bias + inference BatchNorm into the weights / a single shift:
    #   BN(conv(x) + b) = conv_{w*s}(x) + ((b - m) * s + beta),  s = g/sqrt(v+eps)
    def fold(w, b, g, be, m, v):
        s = g / jnp.sqrt(v + eps)
        w = jnp.transpose(w, (2, 3, 1, 0)) * s[None, None, None, :]  # OIHW->HWIO
        t = (b - m) * s + be
        return w.astype(compute_dtype), t.reshape(1, C).astype(jnp.float32)

    w1, t1 = fold(params["w1"], params["b1"], params["g1"], params["be1"],
                  params["m1"], params["v1"])
    w2, t2 = fold(params["w2"], params["b2"], params["g2"], params["be2"],
                  params["m2"], params["v2"])

    img_spec = pl.BlockSpec((1, H, W, C), lambda n: (n, 0, 0, 0))
    w_spec = pl.BlockSpec((3, 3, C, C), lambda n: (0, 0, 0, 0))
    vec_spec = pl.BlockSpec((1, C), lambda n: (0, 0))

    pad_scratch = pltpu.VMEM((H + 2, LPAD + W + RPAD, C), compute_dtype)

    out = pl.pallas_call(
        res_block_kernel,
        out_shape=jax.ShapeDtypeStruct((N, H, W, C), jnp.float32),
        grid_spec=pltpu.PrefetchScalarGridSpec(
            num_scalar_prefetch=0,
            grid=(N,),
            in_specs=[img_spec, w_spec, vec_spec, w_spec, vec_spec],
            out_specs=img_spec,
            scratch_shapes=[pad_scratch],
        ),
        compiler_params=pltpu.CompilerParams(
            dimension_semantics=("parallel",)),
    )(x, w1, t1, w2, t2)

    # TODO(synk): for large H/W/C (v7x 64 MiB VMEM) add an H-strip grid axis
    # (manual DMA of a 2-row x halo per strip) so both v7x TensorCores stay
    # busy even at batch 1 and the block fits the scoped VMEM budget.
    return jnp.transpose(out, (0, 3, 1, 2))  # back to NCHW, float32


# --------------------------- Pure-JAX reference -----------------------------

def res_block_ref(x_nchw, params, eps=1e-5):
    def conv(x, w, b):
        y = jax.lax.conv_general_dilated(
            x, w, window_strides=(1, 1), padding=((1, 1), (1, 1)),
            dimension_numbers=("NCHW", "OIHW", "NCHW"))
        return y + b[None, :, None, None]

    def bn(x, g, be, m, v):
        s = g / jnp.sqrt(v + eps)
        return x * s[None, :, None, None] + (be - m * s)[None, :, None, None]

    y = jax.nn.relu(bn(conv(x_nchw, params["w1"], params["b1"]),
                       params["g1"], params["be1"], params["m1"], params["v1"]))
    y = jax.nn.relu(bn(conv(y, params["w2"], params["b2"]),
                       params["g2"], params["be2"], params["m2"], params["v2"]))
    return jax.nn.relu(x_nchw + y)


# ----------------------------------- Main ------------------------------------

if __name__ == "__main__":
    N, C, H, W = 2, 4, 16, 16
    key = jax.random.PRNGKey(0)
    ks = jax.random.split(key, 13)

    params = {
        "w1": 0.2 * jax.random.normal(ks[0], (C, C, 3, 3), jnp.float32),
        "b1": 0.1 * jax.random.normal(ks[1], (C,), jnp.float32),
        "g1": 1.0 + 0.1 * jax.random.normal(ks[2], (C,), jnp.float32),
        "be1": 0.1 * jax.random.normal(ks[3], (C,), jnp.float32),
        "m1": 0.1 * jax.random.normal(ks[4], (C,), jnp.float32),
        "v1": 1.0 + 0.5 * jax.random.uniform(ks[5], (C,), jnp.float32),
        "w2": 0.2 * jax.random.normal(ks[6], (C, C, 3, 3), jnp.float32),
        "b2": 0.1 * jax.random.normal(ks[7], (C,), jnp.float32),
        "g2": 1.0 + 0.1 * jax.random.normal(ks[8], (C,), jnp.float32),
        "be2": 0.1 * jax.random.normal(ks[9], (C,), jnp.float32),
        "m2": 0.1 * jax.random.normal(ks[10], (C,), jnp.float32),
        "v2": 1.0 + 0.5 * jax.random.uniform(ks[11], (C,), jnp.float32),
    }
    x = jax.random.normal(ks[12], (N, C, H, W), jnp.float32)

    out = jax.block_until_ready(res_block_pallas(x, params))
    ref = jax.block_until_ready(res_block_ref(x, params))

    assert out.shape == (N, C, H, W)
    assert jnp.allclose(out, ref, atol=1e-4, rtol=1e-4), (
        f"max abs diff: {jnp.max(jnp.abs(out - ref))}")
    print("KERNEL_OK")
</pallas_src>

<mosaic_0001>
module attributes {stable_mosaic.version = 11 : i64} {
  func.func @res_block_kernel(%arg0: i32, %arg1: memref<1x16x16x4xf32, #tpu.memory_space<vmem>>, %arg2: memref<3x3x4x4xf32, #tpu.memory_space<vmem>>, %arg3: memref<1x4xf32, #tpu.memory_space<vmem>>, %arg4: memref<3x3x4x4xf32, #tpu.memory_space<vmem>>, %arg5: memref<1x4xf32, #tpu.memory_space<vmem>>, %arg6: memref<1x16x16x4xf32, #tpu.memory_space<vmem>>, %arg7: memref<18x48x4xf32, #tpu.memory_space<vmem>>) attributes {dimension_semantics = [#tpu.dimension_semantics<parallel>], iteration_bounds = array<i64: 2>, scalar_prefetch = 0 : i64, scratch_operands = 1 : i64, tpu.core_type = #tpu.core_type<tc>, window_params = [{transform_indices = @transform_0, window_bounds = array<i64: 1, 16, 16, 4>}, {pipeline_mode = #tpu.pipeline_mode<synchronous>, transform_indices = @transform_1, window_bounds = array<i64: 3, 3, 4, 4>}, {pipeline_mode = #tpu.pipeline_mode<synchronous>, transform_indices = @transform_2, window_bounds = array<i64: 1, 4>}, {pipeline_mode = #tpu.pipeline_mode<synchronous>, transform_indices = @transform_3, window_bounds = array<i64: 3, 3, 4, 4>}, {pipeline_mode = #tpu.pipeline_mode<synchronous>, transform_indices = @transform_4, window_bounds = array<i64: 1, 4>}, {transform_indices = @transform_5, window_bounds = array<i64: 1, 16, 16, 4>}]} {
    %cst = arith.constant 0.000000e+00 : f32
    %0 = vector.broadcast %cst : f32 to vector<48x4xf32>
    %c0 = arith.constant 0 : index
    %c0_0 = arith.constant 0 : index
    %c0_1 = arith.constant 0 : index
    %1 = vector.load %arg7[%c0, %c0_0, %c0_1] : memref<18x48x4xf32, #tpu.memory_space<vmem>>, vector<1x48x4xf32>
    %2 = vector.shape_cast %1 : vector<1x48x4xf32> to vector<48x4xf32>
    %3 = vector.shape_cast %0 : vector<48x4xf32> to vector<1x48x4xf32>
    tpu.vector_store %arg7[%c0, %c0_0, %c0_1], %3 {strides = array<i32>} : memref<18x48x4xf32, #tpu.memory_space<vmem>>, vector<1x48x4xf32>,
    %c17 = arith.constant 17 : index
    %c0_2 = arith.constant 0 : index
    %c0_3 = arith.constant 0 : index
    %4 = vector.load %arg7[%c17, %c0_2, %c0_3] : memref<18x48x4xf32, #tpu.memory_space<vmem>>, vector<1x48x4xf32>
    %5 = vector.shape_cast %4 : vector<1x48x4xf32> to vector<48x4xf32>
    %6 = vector.shape_cast %0 : vector<48x4xf32> to vector<1x48x4xf32>
    tpu.vector_store %arg7[%c17, %c0_2, %c0_3], %6 {strides = array<i32>} : memref<18x48x4xf32, #tpu.memory_space<vmem>>, vector<1x48x4xf32>,
    %cst_4 = arith.constant 0.000000e+00 : f32
    %7 = vector.broadcast %cst_4 : f32 to vector<18x16x4xf32>
    %c0_5 = arith.constant 0 : index
    %c0_6 = arith.constant 0 : index
    %c0_7 = arith.constant 0 : index
    %8 = vector.load %arg7[%c0_5, %c0_6, %c0_7] : memref<18x48x4xf32, #tpu.memory_space<vmem>>, vector<18x16x4xf32>
    tpu.vector_store %arg7[%c0_5, %c0_6, %c0_7], %7 {strides = array<i32>} : memref<18x48x4xf32, #tpu.memory_space<vmem>>, vector<18x16x4xf32>,
    %c0_8 = arith.constant 0 : index
    %c32 = arith.constant 32 : index
    %c0_9 = arith.constant 0 : index
    %9 = vector.load %arg7[%c0_8, %c32, %c0_9] : memref<18x48x4xf32, #tpu.memory_space<vmem>>, vector<18x16x4xf32>
    tpu.vector_store %arg7[%c0_8, %c32, %c0_9], %7 {strides = array<i32>} : memref<18x48x4xf32, #tpu.memory_space<vmem>>, vector<18x16x4xf32>,
    %c0_10 = arith.constant 0 : index
    %c0_11 = arith.constant 0 : index
    %c0_12 = arith.constant 0 : index
    %c0_13 = arith.constant 0 : index
    %10 = vector.load %arg1[%c0_10, %c0_11, %c0_12, %c0_13] : memref<1x16x16x4xf32, #tpu.memory_space<vmem>>, vector<1x16x16x4xf32>
    %11 = vector.shape_cast %10 : vector<1x16x16x4xf32> to vector<16x16x4xf32>
    %c1 = arith.constant 1 : index
    %c16 = arith.constant 16 : index
    %c0_14 = arith.constant 0 : index
    %12 = vector.load %arg7[%c1, %c16, %c0_14] : memref<18x48x4xf32, #tpu.memory_space<vmem>>, vector<16x16x4xf32>
    tpu.vector_store %arg7[%c1, %c16, %c0_14], %11 {strides = array<i32>} : memref<18x48x4xf32, #tpu.memory_space<vmem>>, vector<16x16x4xf32>,
    %cst_15 = arith.constant 0.000000e+00 : f32
    %13 = vector.broadcast %cst_15 : f32 to vector<256x4xf32>
    %c0_16 = arith.constant 0 : index
    %c15 = arith.constant 15 : index
    %c0_17 = arith.constant 0 : index
    %14 = vector.load %arg7[%c0_16, %c15, %c0_17] : memref<18x48x4xf32, #tpu.memory_space<vmem>>, vector<16x16x4xf32>
    %15 = vector.shape_cast %14 : vector<16x16x4xf32> to vector<256x4xf32>
    %c0_18 = arith.constant 0 : index
    %c0_19 = arith.constant 0 : index
    %c0_20 = arith.constant 0 : index
    %c0_21 = arith.constant 0 : index
    %16 = vector.load %arg2[%c0_18, %c0_19, %c0_20, %c0_21] : memref<3x3x4x4xf32, #tpu.memory_space<vmem>>, vector<1x1x4x4xf32>
    %17 = vector.shape_cast %16 : vector<1x1x4x4xf32> to vector<4x4xf32>
    %cst_22 = arith.constant dense<0.000000e+00> : vector<256x4xf32>
    %18 = tpu.matmul %15, %17, %cst_22 {dimension_numbers = #tpu.dot_dimension_numbers<[1], [0], [0], [1], [0, 0, 1, 1], [], []>} : vector<256x4xf32>, vector<4x4xf32>, vector<256x4xf32> -> vector<256x4xf32>
    %19 = arith.addf %13, %18 : vector<256x4xf32>
    %c0_23 = arith.constant 0 : index
    %c16_24 = arith.constant 16 : index
    %c0_25 = arith.constant 0 : index
    %20 = vector.load %arg7[%c0_23, %c16_24, %c0_25] : memref<18x48x4xf32, #tpu.memory_space<vmem>>, vector<16x16x4xf32>
    %21 = vector.shape_cast %20 : vector<16x16x4xf32> to vector<256x4xf32>
    %c0_26 = arith.constant 0 : index
    %c1_27 = arith.constant 1 : index
    %c0_28 = arith.constant 0 : index
    %c0_29 = arith.constant 0 : index
    %22 = vector.load %arg2[%c0_26, %c1_27, %c0_28, %c0_29] : memref<3x3x4x4xf32, #tpu.memory_space<vmem>>, vector<1x1x4x4xf32>
    %23 = vector.shape_cast %22 : vector<1x1x4x4xf32> to vector<4x4xf32>
    %cst_30 = arith.constant dense<0.000000e+00> : vector<256x4xf32>
    %24 = tpu.matmul %21, %23, %cst_30 {dimension_numbers = #tpu.dot_dimension_numbers<[1], [0], [0], [1], [0, 0, 1, 1], [], []>} : vector<256x4xf32>, vector<4x4xf32>, vector<256x4xf32> -> vector<256x4xf32>
    %25 = arith.addf %19, %24 : vector<256x4xf32>
    %c0_31 = arith.constant 0 : index
    %c17_32 = arith.constant 17 : index
    %c0_33 = arith.constant 0 : index
    %26 = vector.load %arg7[%c0_31, %c17_32, %c0_33] : memref<18x48x4xf32, #tpu.memory_space<vmem>>, vector<16x16x4xf32>
    %27 = vector.shape_cast %26 : vector<16x16x4xf32> to vector<256x4xf32>
    %c0_34 = arith.constant 0 : index
    %c2 = arith.constant 2 : index
    %c0_35 = arith.constant 0 : index
    %c0_36 = arith.constant 0 : index
    %28 = vector.load %arg2[%c0_34, %c2, %c0_35, %c0_36] : memref<3x3x4x4xf32, #tpu.memory_space<vmem>>, vector<1x1x4x4xf32>
    %29 = vector.shape_cast %28 : vector<1x1x4x4xf32> to vector<4x4xf32>
    %cst_37 = arith.constant dense<0.000000e+00> : vector<256x4xf32>
    %30 = tpu.matmul %27, %29, %cst_37 {dimension_numbers = #tpu.dot_dimension_numbers<[1], [0], [0], [1], [0, 0, 1, 1], [], []>} : vector<256x4xf32>, vector<4x4xf32>, vector<256x4xf32> -> vector<256x4xf32>
    %31 = arith.addf %25, %30 : vector<256x4xf32>
    %c1_38 = arith.constant 1 : index
    %c15_39 = arith.constant 15 : index
    %c0_40 = arith.constant 0 : index
    %32 = vector.load %arg7[%c1_38, %c15_39, %c0_40] : memref<18x48x4xf32, #tpu.memory_space<vmem>>, vector<16x16x4xf32>
    %33 = vector.shape_cast %32 : vector<16x16x4xf32> to vector<256x4xf32>
    %c1_41 = arith.constant 1 : index
    %c0_42 = arith.constant 0 : index
    %c0_43 = arith.constant 0 : index
    %c0_44 = arith.constant 0 : index
    %34 = vector.load %arg2[%c1_41, %c0_42, %c0_43, %c0_44] : memref<3x3x4x4xf32, #tpu.memory_space<vmem>>, vector<1x1x4x4xf32>
    %35 = vector.shape_cast %34 : vector<1x1x4x4xf32> to vector<4x4xf32>
    %cst_45 = arith.constant dense<0.000000e+00> : vector<256x4xf32>
    %36 = tpu.matmul %33, %35, %cst_45 {dimension_numbers = #tpu.dot_dimension_numbers<[1], [0], [0], [1], [0, 0, 1, 1], [], []>} : vector<256x4xf32>, vector<4x4xf32>, vector<256x4xf32> -> vector<256x4xf32>
    %37 = arith.addf %31, %36 : vector<256x4xf32>
    %c1_46 = arith.constant 1 : index
    %c16_47 = arith.constant 16 : index
    %c0_48 = arith.constant 0 : index
    %38 = vector.load %arg7[%c1_46, %c16_47, %c0_48] : memref<18x48x4xf32, #tpu.memory_space<vmem>>, vector<16x16x4xf32>
    %39 = vector.shape_cast %38 : vector<16x16x4xf32> to vector<256x4xf32>
    %c1_49 = arith.constant 1 : index
    %c1_50 = arith.constant 1 : index
    %c0_51 = arith.constant 0 : index
    %c0_52 = arith.constant 0 : index
    %40 = vector.load %arg2[%c1_49, %c1_50, %c0_51, %c0_52] : memref<3x3x4x4xf32, #tpu.memory_space<vmem>>, vector<1x1x4x4xf32>
    %41 = vector.shape_cast %40 : vector<1x1x4x4xf32> to vector<4x4xf32>
    %cst_53 = arith.constant dense<0.000000e+00> : vector<256x4xf32>
    %42 = tpu.matmul %39, %41, %cst_53 {dimension_numbers = #tpu.dot_dimension_numbers<[1], [0], [0], [1], [0, 0, 1, 1], [], []>} : vector<256x4xf32>, vector<4x4xf32>, vector<256x4xf32> -> vector<256x4xf32>
    %43 = arith.addf %37, %42 : vector<256x4xf32>
    %c1_54 = arith.constant 1 : index
    %c17_55 = arith.constant 17 : index
    %c0_56 = arith.constant 0 : index
    %44 = vector.load %arg7[%c1_54, %c17_55, %c0_56] : memref<18x48x4xf32, #tpu.memory_space<vmem>>, vector<16x16x4xf32>
    %45 = vector.shape_cast %44 : vector<16x16x4xf32> to vector<256x4xf32>
    %c1_57 = arith.constant 1 : index
    %c2_58 = arith.constant 2 : index
    %c0_59 = arith.constant 0 : index
    %c0_60 = arith.constant 0 : index
    %46 = vector.load %arg2[%c1_57, %c2_58, %c0_59, %c0_60] : memref<3x3x4x4xf32, #tpu.memory_space<vmem>>, vector<1x1x4x4xf32>
    %47 = vector.shape_cast %46 : vector<1x1x4x4xf32> to vector<4x4xf32>
    %cst_61 = arith.constant dense<0.000000e+00> : vector<256x4xf32>
    %48 = tpu.matmul %45, %47, %cst_61 {dimension_numbers = #tpu.dot_dimension_numbers<[1], [0], [0], [1], [0, 0, 1, 1], [], []>} : vector<256x4xf32>, vector<4x4xf32>, vector<256x4xf32> -> vector<256x4xf32>
    %49 = arith.addf %43, %48 : vector<256x4xf32>
    %c2_62 = arith.constant 2 : index
    %c15_63 = arith.constant 15 : index
    %c0_64 = arith.constant 0 : index
    %50 = vector.load %arg7[%c2_62, %c15_63, %c0_64] : memref<18x48x4xf32, #tpu.memory_space<vmem>>, vector<16x16x4xf32>
    %51 = vector.shape_cast %50 : vector<16x16x4xf32> to vector<256x4xf32>
    %c2_65 = arith.constant 2 : index
    %c0_66 = arith.constant 0 : index
    %c0_67 = arith.constant 0 : index
    %c0_68 = arith.constant 0 : index
    %52 = vector.load %arg2[%c2_65, %c0_66, %c0_67, %c0_68] : memref<3x3x4x4xf32, #tpu.memory_space<vmem>>, vector<1x1x4x4xf32>
    %53 = vector.shape_cast %52 : vector<1x1x4x4xf32> to vector<4x4xf32>
    %cst_69 = arith.constant dense<0.000000e+00> : vector<256x4xf32>
    %54 = tpu.matmul %51, %53, %cst_69 {dimension_numbers = #tpu.dot_dimension_numbers<[1], [0], [0], [1], [0, 0, 1, 1], [], []>} : vector<256x4xf32>, vector<4x4xf32>, vector<256x4xf32> -> vector<256x4xf32>
    %55 = arith.addf %49, %54 : vector<256x4xf32>
    %c2_70 = arith.constant 2 : index
    %c16_71 = arith.constant 16 : index
    %c0_72 = arith.constant 0 : index
    %56 = vector.load %arg7[%c2_70, %c16_71, %c0_72] : memref<18x48x4xf32, #tpu.memory_space<vmem>>, vector<16x16x4xf32>
    %57 = vector.shape_cast %56 : vector<16x16x4xf32> to vector<256x4xf32>
    %c2_73 = arith.constant 2 : index
    %c1_74 = arith.constant 1 : index
    %c0_75 = arith.constant 0 : index
    %c0_76 = arith.constant 0 : index
    %58 = vector.load %arg2[%c2_73, %c1_74, %c0_75, %c0_76] : memref<3x3x4x4xf32, #tpu.memory_space<vmem>>, vector<1x1x4x4xf32>
    %59 = vector.shape_cast %58 : vector<1x1x4x4xf32> to vector<4x4xf32>
    %cst_77 = arith.constant dense<0.000000e+00> : vector<256x4xf32>
    %60 = tpu.matmul %57, %59, %cst_77 {dimension_numbers = #tpu.dot_dimension_numbers<[1], [0], [0], [1], [0, 0, 1, 1], [], []>} : vector<256x4xf32>, vector<4x4xf32>, vector<256x4xf32> -> vector<256x4xf32>
    %61 = arith.addf %55, %60 : vector<256x4xf32>
    %c2_78 = arith.constant 2 : index
    %c17_79 = arith.constant 17 : index
    %c0_80 = arith.constant 0 : index
    %62 = vector.load %arg7[%c2_78, %c17_79, %c0_80] : memref<18x48x4xf32, #tpu.memory_space<vmem>>, vector<16x16x4xf32>
    %63 = vector.shape_cast %62 : vector<16x16x4xf32> to vector<256x4xf32>
    %c2_81 = arith.constant 2 : index
    %c2_82 = arith.constant 2 : index
    %c0_83 = arith.constant 0 : index
    %c0_84 = arith.constant 0 : index
    %64 = vector.load %arg2[%c2_81, %c2_82, %c0_83, %c0_84] : memref<3x3x4x4xf32, #tpu.memory_space<vmem>>, vector<1x1x4x4xf32>
    %65 = vector.shape_cast %64 : vector<1x1x4x4xf32> to vector<4x4xf32>
    %cst_85 = arith.constant dense<0.000000e+00> : vector<256x4xf32>
    %66 = tpu.matmul %63, %65, %cst_85 {dimension_numbers = #tpu.dot_dimension_numbers<[1], [0], [0], [1], [0, 0, 1, 1], [], []>} : vector<256x4xf32>, vector<4x4xf32>, vector<256x4xf32> -> vector<256x4xf32>
    %67 = arith.addf %61, %66 : vector<256x4xf32>
    %c0_86 = arith.constant 0 : index
    %c0_87 = arith.constant 0 : index
    %68 = vector.load %arg3[%c0_86, %c0_87] : memref<1x4xf32, #tpu.memory_space<vmem>>, vector<1x4xf32>
    %69 = vector.broadcast %68 : vector<1x4xf32> to vector<256x4xf32>
    %70 = arith.addf %67, %69 : vector<256x4xf32>
    %cst_88 = arith.constant 0.000000e+00 : f32
    %71 = vector.broadcast %cst_88 : f32 to vector<256x4xf32>
    %72 = arith.maximumf %70, %71 : vector<256x4xf32>
    %73 = vector.shape_cast %72 : vector<256x4xf32> to vector<16x16x4xf32>
    %c1_89 = arith.constant 1 : index
    %c16_90 = arith.constant 16 : index
    %c0_91 = arith.constant 0 : index
    %74 = vector.load %arg7[%c1_89, %c16_90, %c0_91] : memref<18x48x4xf32, #tpu.memory_space<vmem>>, vector<16x16x4xf32>
    tpu.vector_store %arg7[%c1_89, %c16_90, %c0_91], %73 {strides = array<i32>} : memref<18x48x4xf32, #tpu.memory_space<vmem>>, vector<16x16x4xf32>,
    %cst_92 = arith.constant 0.000000e+00 : f32
    %75 = vector.broadcast %cst_92 : f32 to vector<256x4xf32>
    %c0_93 = arith.constant 0 : index
    %c15_94 = arith.constant 15 : index
    %c0_95 = arith.constant 0 : index
    %76 = vector.load %arg7[%c0_93, %c15_94, %c0_95] : memref<18x48x4xf32, #tpu.memory_space<vmem>>, vector<16x16x4xf32>
    %77 = vector.shape_cast %76 : vector<16x16x4xf32> to vector<256x4xf32>
    %c0_96 = arith.constant 0 : index
    %c0_97 = arith.constant 0 : index
    %c0_98 = arith.constant 0 : index
    %c0_99 = arith.constant 0 : index
    %78 = vector.load %arg4[%c0_96, %c0_97, %c0_98, %c0_99] : memref<3x3x4x4xf32, #tpu.memory_space<vmem>>, vector<1x1x4x4xf32>
    %79 = vector.shape_cast %78 : vector<1x1x4x4xf32> to vector<4x4xf32>
    %cst_100 = arith.constant dense<0.000000e+00> : vector<256x4xf32>
    %80 = tpu.matmul %77, %79, %cst_100 {dimension_numbers = #tpu.dot_dimension_numbers<[1], [0], [0], [1], [0, 0, 1, 1], [], []>} : vector<256x4xf32>, vector<4x4xf32>, vector<256x4xf32> -> vector<256x4xf32>
    %81 = arith.addf %75, %80 : vector<256x4xf32>
    %c0_101 = arith.constant 0 : index
    %c16_102 = arith.constant 16 : index
    %c0_103 = arith.constant 0 : index
    %82 = vector.load %arg7[%c0_101, %c16_102, %c0_103] : memref<18x48x4xf32, #tpu.memory_space<vmem>>, vector<16x16x4xf32>
    %83 = vector.shape_cast %82 : vector<16x16x4xf32> to vector<256x4xf32>
    %c0_104 = arith.constant 0 : index
    %c1_105 = arith.constant 1 : index
    %c0_106 = arith.constant 0 : index
    %c0_107 = arith.constant 0 : index
    %84 = vector.load %arg4[%c0_104, %c1_105, %c0_106, %c0_107] : memref<3x3x4x4xf32, #tpu.memory_space<vmem>>, vector<1x1x4x4xf32>
    %85 = vector.shape_cast %84 : vector<1x1x4x4xf32> to vector<4x4xf32>
    %cst_108 = arith.constant dense<0.000000e+00> : vector<256x4xf32>
    %86 = tpu.matmul %83, %85, %cst_108 {dimension_numbers = #tpu.dot_dimension_numbers<[1], [0], [0], [1], [0, 0, 1, 1], [], []>} : vector<256x4xf32>, vector<4x4xf32>, vector<256x4xf32> -> vector<256x4xf32>
    %87 = arith.addf %81, %86 : vector<256x4xf32>
    %c0_109 = arith.constant 0 : index
    %c17_110 = arith.constant 17 : index
    %c0_111 = arith.constant 0 : index
    %88 = vector.load %arg7[%c0_109, %c17_110, %c0_111] : memref<18x48x4xf32, #tpu.memory_space<vmem>>, vector<16x16x4xf32>
    %89 = vector.shape_cast %88 : vector<16x16x4xf32> to vector<256x4xf32>
    %c0_112 = arith.constant 0 : index
    %c2_113 = arith.constant 2 : index
    %c0_114 = arith.constant 0 : index
    %c0_115 = arith.constant 0 : index
    %90 = vector.load %arg4[%c0_112, %c2_113, %c0_114, %c0_115] : memref<3x3x4x4xf32, #tpu.memory_space<vmem>>, vector<1x1x4x4xf32>
    %91 = vector.shape_cast %90 : vector<1x1x4x4xf32> to vector<4x4xf32>
    %cst_116 = arith.constant dense<0.000000e+00> : vector<256x4xf32>
    %92 = tpu.matmul %89, %91, %cst_116 {dimension_numbers = #tpu.dot_dimension_numbers<[1], [0], [0], [1], [0, 0, 1, 1], [], []>} : vector<256x4xf32>, vector<4x4xf32>, vector<256x4xf32> -> vector<256x4xf32>
    %93 = arith.addf %87, %92 : vector<256x4xf32>
    %c1_117 = arith.constant 1 : index
    %c15_118 = arith.constant 15 : index
    %c0_119 = arith.constant 0 : index
    %94 = vector.load %arg7[%c1_117, %c15_118, %c0_119] : memref<18x48x4xf32, #tpu.memory_space<vmem>>, vector<16x16x4xf32>
    %95 = vector.shape_cast %94 : vector<16x16x4xf32> to vector<256x4xf32>
    %c1_120 = arith.constant 1 : index
    %c0_121 = arith.constant 0 : index
    %c0_122 = arith.constant 0 : index
    %c0_123 = arith.constant 0 : index
    %96 = vector.load %arg4[%c1_120, %c0_121, %c0_122, %c0_123] : memref<3x3x4x4xf32, #tpu.memory_space<vmem>>, vector<1x1x4x4xf32>
    %97 = vector.shape_cast %96 : vector<1x1x4x4xf32> to vector<4x4xf32>
    %cst_124 = arith.constant dense<0.000000e+00> : vector<256x4xf32>
    %98 = tpu.matmul %95, %97, %cst_124 {dimension_numbers = #tpu.dot_dimension_numbers<[1], [0], [0], [1], [0, 0, 1, 1], [], []>} : vector<256x4xf32>, vector<4x4xf32>, vector<256x4xf32> -> vector<256x4xf32>
    %99 = arith.addf %93, %98 : vector<256x4xf32>
    %c1_125 = arith.constant 1 : index
    %c16_126 = arith.constant 16 : index
    %c0_127 = arith.constant 0 : index
    %100 = vector.load %arg7[%c1_125, %c16_126, %c0_127] : memref<18x48x4xf32, #tpu.memory_space<vmem>>, vector<16x16x4xf32>
    %101 = vector.shape_cast %100 : vector<16x16x4xf32> to vector<256x4xf32>
    %c1_128 = arith.constant 1 : index
    %c1_129 = arith.constant 1 : index
    %c0_130 = arith.constant 0 : index
    %c0_131 = arith.constant 0 : index
    %102 = vector.load %arg4[%c1_128, %c1_129, %c0_130, %c0_131] : memref<3x3x4x4xf32, #tpu.memory_space<vmem>>, vector<1x1x4x4xf32>
    %103 = vector.shape_cast %102 : vector<1x1x4x4xf32> to vector<4x4xf32>
    %cst_132 = arith.constant dense<0.000000e+00> : vector<256x4xf32>
    %104 = tpu.matmul %101, %103, %cst_132 {dimension_numbers = #tpu.dot_dimension_numbers<[1], [0], [0], [1], [0, 0, 1, 1], [], []>} : vector<256x4xf32>, vector<4x4xf32>, vector<256x4xf32> -> vector<256x4xf32>
    %105 = arith.addf %99, %104 : vector<256x4xf32>
    %c1_133 = arith.constant 1 : index
    %c17_134 = arith.constant 17 : index
    %c0_135 = arith.constant 0 : index
    %106 = vector.load %arg7[%c1_133, %c17_134, %c0_135] : memref<18x48x4xf32, #tpu.memory_space<vmem>>, vector<16x16x4xf32>
    %107 = vector.shape_cast %106 : vector<16x16x4xf32> to vector<256x4xf32>
    %c1_136 = arith.constant 1 : index
    %c2_137 = arith.constant 2 : index
    %c0_138 = arith.constant 0 : index
    %c0_139 = arith.constant 0 : index
    %108 = vector.load %arg4[%c1_136, %c2_137, %c0_138, %c0_139] : memref<3x3x4x4xf32, #tpu.memory_space<vmem>>, vector<1x1x4x4xf32>
    %109 = vector.shape_cast %108 : vector<1x1x4x4xf32> to vector<4x4xf32>
    %cst_140 = arith.constant dense<0.000000e+00> : vector<256x4xf32>
    %110 = tpu.matmul %107, %109, %cst_140 {dimension_numbers = #tpu.dot_dimension_numbers<[1], [0], [0], [1], [0, 0, 1, 1], [], []>} : vector<256x4xf32>, vector<4x4xf32>, vector<256x4xf32> -> vector<256x4xf32>
    %111 = arith.addf %105, %110 : vector<256x4xf32>
    %c2_141 = arith.constant 2 : index
    %c15_142 = arith.constant 15 : index
    %c0_143 = arith.constant 0 : index
    %112 = vector.load %arg7[%c2_141, %c15_142, %c0_143] : memref<18x48x4xf32, #tpu.memory_space<vmem>>, vector<16x16x4xf32>
    %113 = vector.shape_cast %112 : vector<16x16x4xf32> to vector<256x4xf32>
    %c2_144 = arith.constant 2 : index
    %c0_145 = arith.constant 0 : index
    %c0_146 = arith.constant 0 : index
    %c0_147 = arith.constant 0 : index
    %114 = vector.load %arg4[%c2_144, %c0_145, %c0_146, %c0_147] : memref<3x3x4x4xf32, #tpu.memory_space<vmem>>, vector<1x1x4x4xf32>
    %115 = vector.shape_cast %114 : vector<1x1x4x4xf32> to vector<4x4xf32>
    %cst_148 = arith.constant dense<0.000000e+00> : vector<256x4xf32>
    %116 = tpu.matmul %113, %115, %cst_148 {dimension_numbers = #tpu.dot_dimension_numbers<[1], [0], [0], [1], [0, 0, 1, 1], [], []>} : vector<256x4xf32>, vector<4x4xf32>, vector<256x4xf32> -> vector<256x4xf32>
    %117 = arith.addf %111, %116 : vector<256x4xf32>
    %c2_149 = arith.constant 2 : index
    %c16_150 = arith.constant 16 : index
    %c0_151 = arith.constant 0 : index
    %118 = vector.load %arg7[%c2_149, %c16_150, %c0_151] : memref<18x48x4xf32, #tpu.memory_space<vmem>>, vector<16x16x4xf32>
    %119 = vector.shape_cast %118 : vector<16x16x4xf32> to vector<256x4xf32>
    %c2_152 = arith.constant 2 : index
    %c1_153 = arith.constant 1 : index
    %c0_154 = arith.constant 0 : index
    %c0_155 = arith.constant 0 : index
    %120 = vector.load %arg4[%c2_152, %c1_153, %c0_154, %c0_155] : memref<3x3x4x4xf32, #tpu.memory_space<vmem>>, vector<1x1x4x4xf32>
    %121 = vector.shape_cast %120 : vector<1x1x4x4xf32> to vector<4x4xf32>
    %cst_156 = arith.constant dense<0.000000e+00> : vector<256x4xf32>
    %122 = tpu.matmul %119, %121, %cst_156 {dimension_numbers = #tpu.dot_dimension_numbers<[1], [0], [0], [1], [0, 0, 1, 1], [], []>} : vector<256x4xf32>, vector<4x4xf32>, vector<256x4xf32> -> vector<256x4xf32>
    %123 = arith.addf %117, %122 : vector<256x4xf32>
    %c2_157 = arith.constant 2 : index
    %c17_158 = arith.constant 17 : index
    %c0_159 = arith.constant 0 : index
    %124 = vector.load %arg7[%c2_157, %c17_158, %c0_159] : memref<18x48x4xf32, #tpu.memory_space<vmem>>, vector<16x16x4xf32>
    %125 = vector.shape_cast %124 : vector<16x16x4xf32> to vector<256x4xf32>
    %c2_160 = arith.constant 2 : index
    %c2_161 = arith.constant 2 : index
    %c0_162 = arith.constant 0 : index
    %c0_163 = arith.constant 0 : index
    %126 = vector.load %arg4[%c2_160, %c2_161, %c0_162, %c0_163] : memref<3x3x4x4xf32, #tpu.memory_space<vmem>>, vector<1x1x4x4xf32>
    %127 = vector.shape_cast %126 : vector<1x1x4x4xf32> to vector<4x4xf32>
    %cst_164 = arith.constant dense<0.000000e+00> : vector<256x4xf32>
    %128 = tpu.matmul %125, %127, %cst_164 {dimension_numbers = #tpu.dot_dimension_numbers<[1], [0], [0], [1], [0, 0, 1, 1], [], []>} : vector<256x4xf32>, vector<4x4xf32>, vector<256x4xf32> -> vector<256x4xf32>
    %129 = arith.addf %123, %128 : vector<256x4xf32>
    %c0_165 = arith.constant 0 : index
    %c0_166 = arith.constant 0 : index
    %130 = vector.load %arg5[%c0_165, %c0_166] : memref<1x4xf32, #tpu.memory_space<vmem>>, vector<1x4xf32>
    %131 = vector.broadcast %130 : vector<1x4xf32> to vector<256x4xf32>
    %132 = arith.addf %129, %131 : vector<256x4xf32>
    %cst_167 = arith.constant 0.000000e+00 : f32
    %133 = vector.broadcast %cst_167 : f32 to vector<256x4xf32>
    %134 = arith.maximumf %132, %133 : vector<256x4xf32>
    %c0_168 = arith.constant 0 : index
    %c0_169 = arith.constant 0 : index
    %c0_170 = arith.constant 0 : index
    %c0_171 = arith.constant 0 : index
    %135 = vector.load %arg1[%c0_168, %c0_169, %c0_170, %c0_171] : memref<1x16x16x4xf32, #tpu.memory_space<vmem>>, vector<1x16x16x4xf32>
    %136 = vector.shape_cast %135 : vector<1x16x16x4xf32> to vector<16x16x4xf32>
    %137 = vector.shape_cast %136 : vector<16x16x4xf32> to vector<256x4xf32>
    %138 = arith.addf %137, %134 : vector<256x4xf32>
    %cst_172 = arith.constant 0.000000e+00 : f32
    %139 = vector.broadcast %cst_172 : f32 to vector<256x4xf32>
    %140 = arith.maximumf %138, %139 : vector<256x4xf32>
    %141 = vector.shape_cast %140 : vector<256x4xf32> to vector<16x16x4xf32>
    %c0_173 = arith.constant 0 : index
    %c0_174 = arith.constant 0 : index
    %c0_175 = arith.constant 0 : index
    %c0_176 = arith.constant 0 : index
    %142 = vector.load %arg6[%c0_173, %c0_174, %c0_175, %c0_176] : memref<1x16x16x4xf32, #tpu.memory_space<vmem>>, vector<1x16x16x4xf32>
    %143 = vector.shape_cast %142 : vector<1x16x16x4xf32> to vector<16x16x4xf32>
    %144 = vector.shape_cast %141 : vector<16x16x4xf32> to vector<1x16x16x4xf32>
    tpu.vector_store %arg6[%c0_173, %c0_174, %c0_175, %c0_176], %144 {strides = array<i32>} : memref<1x16x16x4xf32, #tpu.memory_space<vmem>>, vector<1x16x16x4xf32>,
    return
  }
  func.func @transform_0(%arg0: i32) -> (i32, i32, i32, i32) {
    %c0_i32 = arith.constant 0 : i32
    %c0_i32_0 = arith.constant 0 : i32
    %c0_i32_1 = arith.constant 0 : i32
    %c0_i32_2 = arith.constant 0 : i32
    return %arg0, %c0_i32, %c0_i32_0, %c0_i32_1 : i32, i32, i32, i32
  }
  func.func @transform_1(%arg0: i32) -> (i32, i32, i32, i32) {
    %c0_i32 = arith.constant 0 : i32
    %c0_i32_0 = arith.constant 0 : i32
    %c0_i32_1 = arith.constant 0 : i32
    %c0_i32_2 = arith.constant 0 : i32
    %c0_i32_3 = arith.constant 0 : i32
    return %c0_i32, %c0_i32_0, %c0_i32_1, %c0_i32_2 : i32, i32, i32, i32
  }
  func.func @transform_2(%arg0: i32) -> (i32, i32) {
    %c0_i32 = arith.constant 0 : i32
    %c0_i32_0 = arith.constant 0 : i32
    %c0_i32_1 = arith.constant 0 : i32
    return %c0_i32, %c0_i32_0 : i32, i32
  }
  func.func @transform_3(%arg0: i32) -> (i32, i32, i32, i32) {
    %c0_i32 = arith.constant 0 : i32
    %c0_i32_0 = arith.constant 0 : i32
    %c0_i32_1 = arith.constant 0 : i32
    %c0_i32_2 = arith.constant 0 : i32
    %c0_i32_3 = arith.constant 0 : i32
    return %c0_i32, %c0_i32_0, %c0_i32_1, %c0_i32_2 : i32, i32, i32, i32
  }
  func.func @transform_4(%arg0: i32) -> (i32, i32) {
    %c0_i32 = arith.constant 0 : i32
    %c0_i32_0 = arith.constant 0 : i32
    %c0_i32_1 = arith.constant 0 : i32
    return %c0_i32, %c0_i32_0 : i32, i32
  }
  func.func @transform_5(%arg0: i32) -> (i32, i32, i32, i32) {
    %c0_i32 = arith.constant 0 : i32
    %c0_i32_0 = arith.constant 0 : i32
    %c0_i32_1 = arith.constant 0 : i32
    %c0_i32_2 = arith.constant 0 : i32
    return %arg0, %c0_i32, %c0_i32_0, %c0_i32_1 : i32, i32, i32, i32
  }
}

</mosaic_0001>

<bundles_post_ra>
// kernel: res_block_pallas.1
= control target key start
LH: loop header
LB: loop body
LE: loop exit
PB: predicated region body
PF: predicated region fallthrough
CT: control target
= control target key end

     0   :  { %s10304_s18 = smov 0   ;;  %s12264_s0 = inlined_call_operand.vmem [shape: f32[2,16,16,4], index: 0, kind: input, shape index: {}]   ;;  %s12265_s1 = inlined_call_operand.vmem [shape: f32[3,3,4,4], index: 1, kind: input, shape index: {}]   ;;  %s12266_s2 = inlined_call_operand.vmem [shape: f32[1,4], index: 2, kind: input, shape index: {}]   ;;  %s12267_s3 = inlined_call_operand.vmem [shape: f32[3,3,4,4], index: 3, kind: input, shape index: {}]   ;;  %s12268_s4 = inlined_call_operand.vmem [shape: f32[1,4], index: 4, kind: input, shape index: {}]   ;;  %s12269_s5 = inlined_call_operand.vmem [shape: f32[2,16,16,4], index: 5, kind: output, shape index: {}]  }
   0x1 LB: > { %s7625_s19 = sadd.s32 4294967295, %s10271_s18   ;;  %p7629_p0 = scmp.ge.s32.totalorder %s10271_s18, 1  ;;  %s10271_s18 = sphi %s10304_s18, %s15_s18  }
   0x2   : > { %p187_p1 = scmp.lt.s32.totalorder %s10271_s18, 3 }
   0x4   : > { %p188_p2 = pnand %p7629_p0, %p187_p1 }
   0x6   : > { %191 = sbr.rel (%p188_p2) target bundleno = 1569 (0x621), region = 40 }
   0xd   : > { %v7634_v0 = vld [vmem:[%s12265_s1 + $0x4] sm:$0xf]  ;;  %vm539_vm0 = vcmask 1043456   ;;  %vm225_vm1 = vcmask 31744   ;;  %p10317_p3 = scmp.lt.s32.totalorder %s7625_s19, 1  ;;  %v10273_v1 = vmov 0.0  }
   0xe   : > { %8844 = vmatprep.subr.msk.mxu0 %vm539_vm0, %v7634_v0  ;;  %228 = vst.msk [vmem:[#allocation2 + $0x10] sm:$0xff] %vm225_vm1, %v10273_v1  ;;  %227 = vst.msk [vmem:[#allocation2 + $0x8] sm:$0xff] %vm225_vm1, %v10273_v1  ;;  %v408_v2 = vld [vmem:[%s12265_s1] sm:$0xf]  ;;  %v10397_v9 = vld [vmem:[%s12265_s1 + $0x8] sm:$0xf] }
   0xf   : > { %229 = vst.msk [vmem:[#allocation2 + $0x18] sm:$0xff] %vm225_vm1, %v10273_v1  ;;  %230 = vst.msk [vmem:[#allocation2 + $0x20] sm:$0xff] %vm225_vm1, %v10273_v1  ;;  %8845 = vmatpush3.msk.msra.mxu0 %vm539_vm0, %v7634_v0  ;;  %s12544_s19 = smov (!%p10317_p3, %s7625_s19), 1 }
  0x10   : > { %234 = vst.msk [vmem:[#allocation2 + $0x338] sm:$0xff] %vm225_vm1, %v10273_v1  ;;  %235 = vst.msk [vmem:[#allocation2 + $0x340] sm:$0xff] %vm225_vm1, %v10273_v1  ;;  %8894 = vmatprep.subr.msk.mxu0 %vm539_vm0, %v408_v2  ;;  %s8248_s25 = sshll.u32 %s12544_s19, 8 }
  0x11   : > { %236 = vst.msk [vmem:[#allocation2 + $0x348] sm:$0xff] %vm225_vm1, %v10273_v1  ;;  %237 = vst.msk [vmem:[#allocation2 + $0x350] sm:$0xff] %vm225_vm1, %v10273_v1  ;;  %s10383_s28 = scalar_lea.vmem %s12264_s0, %s8248_s25  ;;  %s12136_s23 = scalar_lea.vmem %s12269_s5, %s8248_s25 }
  0x12   : > { %242 = vst.msk [vmem:[#allocation2 + $0x38] sm:$0xff] %vm225_vm1, %v10273_v1  ;;  %244 = vst.msk [vmem:[#allocation2 + $0x68] sm:$0xff] %vm225_vm1, %v10273_v1  ;;  %v311_v3 = vld [vmem:[%s10383_s28] sm:$0xff]  ;;  %v312_v4 = vld [vmem:[%s10383_s28 + $0x8] sm:$0xff] }
  0x13   : > { %246 = vst.msk [vmem:[#allocation2 + $0x98] sm:$0xff] %vm225_vm1, %v10273_v1  ;;  %248 = vst.msk [vmem:[#allocation2 + $0xc8] sm:$0xff] %vm225_vm1, %v10273_v1  ;;  %v313_v5 = vld [vmem:[%s10383_s28 + $0x10] sm:$0xff]  ;;  %v314_v6 = vld [vmem:[%s10383_s28 + $0x18] sm:$0xff] }
  0x14   : > { %250 = vst.msk [vmem:[#allocation2 + $0xf8] sm:$0xff] %vm225_vm1, %v10273_v1  ;;  %252 = vst.msk [vmem:[#allocation2 + $0x128] sm:$0xff] %vm225_vm1, %v10273_v1  ;;  %v315_v7 = vld [vmem:[%s10383_s28 + $0x20] sm:$0xff]  ;;  %v316_v8 = vld [vmem:[%s10383_s28 + $0x28] sm:$0xff] }
  0x15   : > { %254 = vst.msk [vmem:[#allocation2 + $0x158] sm:$0xff] %vm225_vm1, %v10273_v1  ;;  %256 = vst.msk [vmem:[#allocation2 + $0x188] sm:$0xff] %vm225_vm1, %v10273_v1  ;;  %v409_v10 = vld [vmem:[#allocation2 + $0x10] sm:$0xff]  ;;  %v318_v13 = vld [vmem:[%s10383_s28 + $0x38] sm:$0xff] }
  0x16   : > { %258 = vst.msk [vmem:[#allocation2 + $0x1b8] sm:$0xff] %vm225_vm1, %v10273_v1  ;;  %260 = vst.msk [vmem:[#allocation2 + $0x1e8] sm:$0xff] %vm225_vm1, %v10273_v1  ;;  %v410_v11 = vld [vmem:[#allocation2 + $0x18] sm:$0xff]  ;;  %v317_v12 = vld [vmem:[%s10383_s28 + $0x30] sm:$0xff]  ;;  %8846 = vmatprep.mubr.msk.f32.mxu0 %vm225_vm1, %v409_v10 }
  0x17   : > { %262 = vst.msk [vmem:[#allocation2 + $0x218] sm:$0xff] %vm225_vm1, %v10273_v1  ;;  %264 = vst.msk [vmem:[#allocation2 + $0x248] sm:$0xff] %vm225_vm1, %v10273_v1  ;;  %v319_v14 = vld [vmem:[%s10383_s28 + $0x40] sm:$0xff]  ;;  %v320_v15 = vld [vmem:[%s10383_s28 + $0x48] sm:$0xff]  ;;  %8847 = vmatmul.mubr.msk.f32.vlgmr.msra.gmra.mrb[0].mxu0 %vm225_vm1, %v410_v11 }
  0x18   : > { %266 = vst.msk [vmem:[#allocation2 + $0x278] sm:$0xff] %vm225_vm1, %v10273_v1  ;;  %268 = vst.msk [vmem:[#allocation2 + $0x2a8] sm:$0xff] %vm225_vm1, %v10273_v1  ;;  %v321_v16 = vld [vmem:[%s10383_s28 + $0x50] sm:$0xff]  ;;  %v322_v17 = vld [vmem:[%s10383_s28 + $0x58] sm:$0xff]  ;;  %8895 = vmatpush3.msk.msra.mxu0 %vm539_vm0, %v408_v2 }
  0x19   : > { %270 = vst.msk [vmem:[#allocation2 + $0x2d8] sm:$0xff] %vm225_vm1, %v10273_v1  ;;  %272 = vst.msk [vmem:[#allocation2 + $0x308] sm:$0xff] %vm225_vm1, %v10273_v1  ;;  %v323_v18 = vld [vmem:[%s10383_s28 + $0x60] sm:$0xff]  ;;  %v324_v19 = vld [vmem:[%s10383_s28 + $0x68] sm:$0xff]  ;;  %8944 = vmatprep.subr.msk.mxu0 %vm539_vm0, %v10397_v9 }
  0x1a   : > { %277 = vst.msk [vmem:[#allocation2 + $0x50] sm:$0xff] %vm225_vm1, %v10273_v1  ;;  %279 = vst.msk [vmem:[#allocation2 + $0x80] sm:$0xff] %vm225_vm1, %v10273_v1  ;;  %v325_v20 = vld [vmem:[%s10383_s28 + $0x70] sm:$0xff]  ;;  %v326_v21 = vld [vmem:[%s10383_s28 + $0x78] sm:$0xff] }
  0x1b   : > { %281 = vst.msk [vmem:[#allocation2 + $0xb0] sm:$0xff] %vm225_vm1, %v10273_v1  ;;  %283 = vst.msk [vmem:[#allocation2 + $0xe0] sm:$0xff] %vm225_vm1, %v10273_v1  ;;  %v327_v22 = vld [vmem:[%s10383_s28 + $0x80] sm:$0xff]  ;;  %v328_v23 = vld [vmem:[%s10383_s28 + $0x88] sm:$0xff] }
  0x1c   : > { %285 = vst.msk [vmem:[#allocation2 + $0x110] sm:$0xff] %vm225_vm1, %v10273_v1  ;;  %287 = vst.msk [vmem:[#allocation2 + $0x140] sm:$0xff] %vm225_vm1, %v10273_v1  ;;  %v329_v24 = vld [vmem:[%s10383_s28 + $0x90] sm:$0xff]  ;;  %v330_v25 = vld [vmem:[%s10383_s28 + $0x98] sm:$0xff] }
  0x1d   : > { %289 = vst.msk [vmem:[#allocation2 + $0x170] sm:$0xff] %vm225_vm1, %v10273_v1  ;;  %291 = vst.msk [vmem:[#allocation2 + $0x1a0] sm:$0xff] %vm225_vm1, %v10273_v1  ;;  %v331_v26 = vld [vmem:[%s10383_s28 + $0xa0] sm:$0xff]  ;;  %v332_v27 = vld [vmem:[%s10383_s28 + $0xa8] sm:$0xff] }
  0x1e   : > { %293 = vst.msk [vmem:[#allocation2 + $0x1d0] sm:$0xff] %vm225_vm1, %v10273_v1  ;;  %295 = vst.msk [vmem:[#allocation2 + $0x200] sm:$0xff] %vm225_vm1, %v10273_v1  ;;  %v333_v31 = vld [vmem:[%s10383_s28 + $0xb0] sm:$0xff]  ;;  %v334_v32 = vld [vmem:[%s10383_s28 + $0xb8] sm:$0xff] }
  0x1f   : > { %297 = vst.msk [vmem:[#allocation2 + $0x230] sm:$0xff] %vm225_vm1, %v10273_v1  ;;  %299 = vst.msk [vmem:[#allocation2 + $0x260] sm:$0xff] %vm225_vm1, %v10273_v1  ;;  %v335_v37 = vld [vmem:[%s10383_s28 + $0xc0] sm:$0xff]  ;;  %v336_v38 = vld [vmem:[%s10383_s28 + $0xc8] sm:$0xff] }
  0x20   : > { %301 = vst.msk [vmem:[#allocation2 + $0x290] sm:$0xff] %vm225_vm1, %v10273_v1  ;;  %303 = vst.msk [vmem:[#allocation2 + $0x2c0] sm:$0xff] %vm225_vm1, %v10273_v1  ;;  %v337_v39 = vld [vmem:[%s10383_s28 + $0xd0] sm:$0xff]  ;;  %v338_v40 = vld [vmem:[%s10383_s28 + $0xd8] sm:$0xff] }
  0x21   : > { %305 = vst.msk [vmem:[#allocation2 + $0x2f0] sm:$0xff] %vm225_vm1, %v10273_v1  ;;  %307 = vst.msk [vmem:[#allocation2 + $0x320] sm:$0xff] %vm225_vm1, %v10273_v1  ;;  %v339_v41 = vld [vmem:[%s10383_s28 + $0xe0] sm:$0xff]  ;;  %v340_v42 = vld [vmem:[%s10383_s28 + $0xe8] sm:$0xff] }
  0x22   : > { %240 = vst.msk [vmem:[#allocation2 + $0x8] sm:$0xff] %vm225_vm1, %v10273_v1  ;;  %274 = vst.msk [vmem:[#allocation2 + $0x338] sm:$0xff] %vm225_vm1, %v10273_v1 }
  0x23   : > { %275 = vst.msk [vmem:[#allocation2 + $0x20] sm:$0xff] %vm225_vm1, %v10273_v1  ;;  %309 = vst.msk [vmem:[#allocation2 + $0x350] sm:$0xff] %vm225_vm1, %v10273_v1 }
  0x24   : > { %344 = vst.msk [vmem:[#allocation2 + $0x40] sm:$0xff] %vm225_vm1, %v311_v3  ;;  %345 = vst.msk [vmem:[#allocation2 + $0x48] sm:$0xff] %vm225_vm1, %v312_v4  ;;  %v377_v3 = vld [vmem:[#allocation2 + $0x17] sm:$0xff] }
  0x25   : > { %346 = vst.msk [vmem:[#allocation2 + $0x70] sm:$0xff] %vm225_vm1, %v313_v5  ;;  %347 = vst.msk [vmem:[#allocation2 + $0x78] sm:$0xff] %vm225_vm1, %v314_v6  ;;  %v10581_v5 = vld [vmem:[%s12265_s1 + $0xc] sm:$0xf] }
  0x26   : > { %348 = vst.msk [vmem:[#allocation2 + $0xa0] sm:$0xff] %vm225_vm1, %v315_v7  ;;  %349 = vst.msk [vmem:[#allocation2 + $0xa8] sm:$0xff] %vm225_vm1, %v316_v8 }
  0x27   : > { %350 = vst.msk [vmem:[#allocation2 + $0xd0] sm:$0xff] %vm225_vm1, %v317_v12  ;;  %351 = vst.msk [vmem:[#allocation2 + $0xd8] sm:$0xff] %vm225_vm1, %v318_v13 }
  0x28   : > { %352 = vst.msk [vmem:[#allocation2 + $0x100] sm:$0xff] %vm225_vm1, %v319_v14  ;;  %353 = vst.msk [vmem:[#allocation2 + $0x108] sm:$0xff] %vm225_vm1, %v320_v15 }
  0x29   : > { %354 = vst.msk [vmem:[#allocation2 + $0x130] sm:$0xff] %vm225_vm1, %v321_v16  ;;  %355 = vst.msk [vmem:[#allocation2 + $0x138] sm:$0xff] %vm225_vm1, %v322_v17  ;;  %v376_v2 = vld [vmem:[#allocation2 + $0xf] sm:$0xff] }
  0x2a   : > { %356 = vst.msk [vmem:[#allocation2 + $0x160] sm:$0xff] %vm225_vm1, %v323_v18  ;;  %357 = vst.msk [vmem:[#allocation2 + $0x168] sm:$0xff] %vm225_vm1, %v324_v19 }
  0x2b   : > { %358 = vst.msk [vmem:[#allocation2 + $0x190] sm:$0xff] %vm225_vm1, %v325_v20  ;;  %359 = vst.msk [vmem:[#allocation2 + $0x198] sm:$0xff] %vm225_vm1, %v326_v21  ;;  %v10436_v28 = vld [vmem:[#allocation2 + $0x40] sm:$0xff]  ;;  %v10438_v29 = vld [vmem:[#allocation2 + $0x48] sm:$0xff] }
  0x2c   : > { %360 = vst.msk [vmem:[#allocation2 + $0x1c0] sm:$0xff] %vm225_vm1, %v327_v22  ;;  %361 = vst.msk [vmem:[#allocation2 + $0x1c8] sm:$0xff] %vm225_vm1, %v328_v23  ;;  %v10440_v30 = vld [vmem:[#allocation2 + $0x70] sm:$0xff]  ;;  %8849 = vmatprep.mubr.msk.f32.mxu0 %vm225_vm1, %v10436_v28  ;;  %v10453_v33 = vld [vmem:[#allocation2 + $0x78] sm:$0xff] }
  0x2d   : > { %362 = vst.msk [vmem:[#allocation2 + $0x1f0] sm:$0xff] %vm225_vm1, %v329_v24  ;;  %363 = vst.msk [vmem:[#allocation2 + $0x1f8] sm:$0xff] %vm225_vm1, %v330_v25  ;;  %8850 = vmatmul.mubr.msk.f32.gmra.mrb[2].mxu0 %vm225_vm1, %v10438_v29  ;;  %v10457_v34 = vld [vmem:[#allocation2 + $0xa0] sm:$0xff]  ;;  %v10463_v35 = vld [vmem:[#allocation2 + $0xa8] sm:$0xff] }
  0x2e   : > { %364 = vst.msk [vmem:[#allocation2 + $0x220] sm:$0xff] %vm225_vm1, %v331_v26  ;;  %365 = vst.msk [vmem:[#allocation2 + $0x228] sm:$0xff] %vm225_vm1, %v332_v27  ;;  %8852 = vmatprep.mubr.msk.f32.mxu0 %vm225_vm1, %v10440_v30  ;;  %v10465_v36 = vld [vmem:[#allocation2 + $0xd0] sm:$0xff]  ;;  %v10483_v43 = vld [vmem:[#allocation2 + $0xd8] sm:$0xff] }
  0x2f   : > { %366 = vst.msk [vmem:[#allocation2 + $0x250] sm:$0xff] %vm225_vm1, %v333_v31  ;;  %367 = vst.msk [vmem:[#allocation2 + $0x258] sm:$0xff] %vm225_vm1, %v334_v32  ;;  %v10485_v44 = vld [vmem:[#allocation2 + $0x100] sm:$0xff]  ;;  %v10491_v45 = vld [vmem:[#allocation2 + $0x108] sm:$0xff] }
  0x30   : > { %368 = vst.msk [vmem:[#allocation2 + $0x280] sm:$0xff] %vm225_vm1, %v335_v37  ;;  %369 = vst.msk [vmem:[#allocation2 + $0x288] sm:$0xff] %vm225_vm1, %v336_v38  ;;  %v10493_v46 = vld [vmem:[#allocation2 + $0x130] sm:$0xff]  ;;  %v10499_v47 = vld [vmem:[#allocation2 + $0x138] sm:$0xff] }
  0x31   : > { %8853 = vmatmul.mubr.msk.f32.gmra.mrb[4].mxu0 %vm225_vm1, %v10453_v33  ;;  %370 = vst.msk [vmem:[#allocation2 + $0x2b0] sm:$0xff] %vm225_vm1, %v337_v39  ;;  %371 = vst.msk [vmem:[#allocation2 + $0x2b8] sm:$0xff] %vm225_vm1, %v338_v40  ;;  %v10501_v48 = vld [vmem:[#allocation2 + $0x160] sm:$0xff]  ;;  %v10507_v49 = vld [vmem:[#allocation2 + $0x168] sm:$0xff] }
  0x32   : > { %8855 = vmatprep.mubr.msk.f32.mxu0 %vm225_vm1, %v10457_v34  ;;  %372 = vst.msk [vmem:[#allocation2 + $0x2e0] sm:$0xff] %vm225_vm1, %v339_v41  ;;  %373 = vst.msk [vmem:[#allocation2 + $0x2e8] sm:$0xff] %vm225_vm1, %v340_v42  ;;  %v10509_v50 = vld [vmem:[#allocation2 + $0x190] sm:$0xff]  ;;  %v10515_v51 = vld [vmem:[#allocation2 + $0x198] sm:$0xff] }
  0x33   : > { %v10517_v52 = vld [vmem:[#allocation2 + $0x1c0] sm:$0xff]  ;;  %v10523_v53 = vld [vmem:[#allocation2 + $0x1c8] sm:$0xff]  ;;  %v10598_v8 = vld [vmem:[#allocation2 + $0x77] sm:$0xff] }
  0x34   : > { %v10525_v54 = vld [vmem:[#allocation2 + $0x1f0] sm:$0xff]  ;;  %v10531_v55 = vld [vmem:[#allocation2 + $0x1f8] sm:$0xff]  ;;  %v10588_v6 = vld [vmem:[#allocation2 + $0x47] sm:$0xff] }
  0x35   : > { %8856 = vmatmul.mubr.msk.f32.gmra.mrb[6].mxu0 %vm225_vm1, %v10463_v35  ;;  %v10533_v56 = vld [vmem:[#allocation2 + $0x220] sm:$0xff]  ;;  %v10539_v57 = vld [vmem:[#allocation2 + $0x228] sm:$0xff]  ;;  %v10614_v12 = vld [vmem:[#allocation2 + $0xd7] sm:$0xff] }
  0x36   : > { %8858 = vmatprep.mubr.msk.f32.mxu0 %vm225_vm1, %v10465_v36  ;;  %v10541_v58 = vld [vmem:[#allocation2 + $0x250] sm:$0xff]  ;;  %v10547_v59 = vld [vmem:[#allocation2 + $0x258] sm:$0xff]  ;;  %v10622_v14 = vld [vmem:[#allocation2 + $0x107] sm:$0xff] }
  0x37   : > { %v10549_v60 = vld [vmem:[#allocation2 + $0x280] sm:$0xff]  ;;  %v10555_v61 = vld [vmem:[#allocation2 + $0x288] sm:$0xff]  ;;  %v10630_v16 = vld [vmem:[#allocation2 + $0x137] sm:$0xff] }
  0x38   : > { %v10557_v62 = vld [vmem:[#allocation2 + $0x2b0] sm:$0xff]  ;;  %v10563_v63 = vld [vmem:[#allocation2 + $0x2b8] sm:$0xff]  ;;  %v10638_v18 = vld [vmem:[#allocation2 + $0x167] sm:$0xff] }
  0x39   : > { %8859 = vmatmul.mubr.msk.f32.gmra.mrb[8].mxu0 %vm225_vm1, %v10483_v43  ;;  %12384 = vst [vmem:[#allocation3_spill] sm:$0xff] %v10557_v62  ;;  %12385 = vst [vmem:[#allocation4_spill] sm:$0xff] %v10563_v63  ;;  %v10565_v0 = vld [vmem:[#allocation2 + $0x2e0] sm:$0xff]  ;;  %v10571_v1 = vld [vmem:[#allocation2 + $0x2e8] sm:$0xff] }
  0x3a   : > { %8861 = vmatprep.mubr.msk.f32.mxu0 %vm225_vm1, %v10485_v44  ;;  %12386 = vst [vmem:[#allocation5_spill] sm:$0xff] %v10565_v0  ;;  %12387 = vst [vmem:[#allocation6_spill] sm:$0xff] %v10571_v1  ;;  %v10576_v4 = vld [vmem:[#allocation2 + $0x3f] sm:$0xff]  ;;  %v10590_v7 = vld [vmem:[#allocation2 + $0x6f] sm:$0xff] }
  0x3b   : > { %v10600_v10 = vld [vmem:[#allocation2 + $0x9f] sm:$0xff]  ;;  %v10608_v11 = vld [vmem:[#allocation2 + $0xcf] sm:$0xff]  ;;  %v10646_v20 = vld [vmem:[#allocation2 + $0x197] sm:$0xff] }
  0x3c   : > { %v10616_v13 = vld [vmem:[#allocation2 + $0xff] sm:$0xff]  ;;  %v10624_v15 = vld [vmem:[#allocation2 + $0x12f] sm:$0xff]  ;;  %v10654_v22 = vld [vmem:[#allocation2 + $0x1c7] sm:$0xff] }
  0x3d   : > { %8862 = vmatmul.mubr.msk.f32.gmra.mrb[10].mxu0 %vm225_vm1, %v10491_v45  ;;  %v10632_v17 = vld [vmem:[#allocation2 + $0x15f] sm:$0xff]  ;;  %v10640_v19 = vld [vmem:[#allocation2 + $0x18f] sm:$0xff]  ;;  %v10662_v24 = vld [vmem:[#allocation2 + $0x1f7] sm:$0xff] }
  0x3e   : > { %8864 = vmatprep.mubr.msk.f32.mxu0 %vm225_vm1, %v10493_v46  ;;  %v10648_v21 = vld [vmem:[#allocation2 + $0x1bf] sm:$0xff]  ;;  %v10656_v23 = vld [vmem:[#allocation2 + $0x1ef] sm:$0xff]  ;;  %v10670_v26 = vld [vmem:[#allocation2 + $0x227] sm:$0xff] }
  0x3f   : > { %v10664_v25 = vld [vmem:[#allocation2 + $0x21f] sm:$0xff]  ;;  %v10672_v27 = vld [vmem:[#allocation2 + $0x24f] sm:$0xff]  ;;  %v10678_v31 = vld [vmem:[#allocation2 + $0x257] sm:$0xff] }
  0x40   : > { %v10680_v32 = vld [vmem:[#allocation2 + $0x27f] sm:$0xff]  ;;  %v10686_v37 = vld [vmem:[#allocation2 + $0x287] sm:$0xff]  ;;  %v10688_v38 = vld [vmem:[#allocation2 + $0x2af] sm:$0xff] }
  0x41   : > { %8865 = vmatmul.mubr.msk.f32.gmra.mrb[12].mxu0 %vm225_vm1, %v10499_v47  ;;  %v341_v39 = vld [vmem:[%s10383_s28 + $0xf0] sm:$0xff]  ;;  %v342_v40 = vld [vmem:[%s10383_s28 + $0xf8] sm:$0xff] }
  0x42   : > { %8867 = vmatprep.mubr.msk.f32.mxu0 %vm225_vm1, %v10501_v48  ;;  %374 = vst.msk [vmem:[#allocation2 + $0x310] sm:$0xff] %vm225_vm1, %v341_v39  ;;  %375 = vst.msk [vmem:[#allocation2 + $0x318] sm:$0xff] %vm225_vm1, %v342_v40  ;;  %v10698_v41 = vld [vmem:[#allocation2 + $0x2b7] sm:$0xff]  ;;  %v10700_v42 = vld [vmem:[#allocation2 + $0x2df] sm:$0xff] }
  0x43   : > { %v1093_v39 = vld [vmem:[#allocation2 + $0x19] sm:$0xff]  ;;  %v10711_v40 = vld [vmem:[#allocation2 + $0x41] sm:$0xff] }
  0x44   : > { %12388 = vst [vmem:[#allocation7_spill] sm:$0xff] %v10711_v40 }
  0x45   : > { %8868 = vmatmul.mubr.msk.f32.gmra.mrb[14].mxu0 %vm225_vm1, %v10507_v49 }
  0x46   : > { %8870 = vmatprep.mubr.msk.f32.mxu0 %vm225_vm1, %v10509_v50 }
  0x49   : > { %8871 = vmatmul.mubr.msk.f32.gmra.mrb[16].mxu0 %vm225_vm1, %v10515_v51 }
  0x4a   : > { %8873 = vmatprep.mubr.msk.f32.mxu0 %vm225_vm1, %v10517_v52 }
  0x4d   : > { %8874 = vmatmul.mubr.msk.f32.gmra.mrb[18].mxu0 %vm225_vm1, %v10523_v53 }
  0x4e   : > { %8876 = vmatprep.mubr.msk.f32.mxu0 %vm225_vm1, %v10525_v54 }
  0x51   : > { %8877 = vmatmul.mubr.msk.f32.gmra.mrb[20].mxu0 %vm225_vm1, %v10531_v55 }
  0x52   : > { %8879 = vmatprep.mubr.msk.f32.mxu0 %vm225_vm1, %v10533_v56 }
  0x55   : > { %8880 = vmatmul.mubr.msk.f32.gmra.mrb[22].mxu0 %vm225_vm1, %v10539_v57 }
  0x56   : > { %8882 = vmatprep.mubr.msk.f32.mxu0 %vm225_vm1, %v10541_v58 }
  0x59   : > { %8883 = vmatmul.mubr.msk.f32.gmra.mrb[24].mxu0 %vm225_vm1, %v10547_v59 }
  0x5a   : > { %8885 = vmatprep.mubr.msk.f32.mxu0 %vm225_vm1, %v10549_v60 }
  0x5d   : > { %8886 = vmatmul.mubr.msk.f32.gmra.mrb[26].mxu0 %vm225_vm1, %v10555_v61 }
  0x5e   : > { %8888 = vmatprep.mubr.msk.f32.mxu0 %vm225_vm1, %v10557_v62 }
  0x61   : > { %8889 = vmatmul.mubr.msk.f32.gmra.mrb[28].mxu0 %vm225_vm1, %v10563_v63  ;;  %v10725_v63 = vld [vmem:[#allocation2 + $0x71] sm:$0xff] }
  0x62   : > { %8891 = vmatprep.mubr.msk.f32.mxu0 %vm225_vm1, %v10565_v0  ;;  %v10723_v0 = vld [vmem:[#allocation2 + $0x49] sm:$0xff]  ;;  %12390 = vst [vmem:[#allocation9_spill] sm:$0xff] %v10725_v63 }
  0x63   : > { %12389 = vst [vmem:[#allocation8_spill] sm:$0xff] %v10723_v0 }
  0x65   : > { %8892 = vmatmul.mubr.msk.f32.gmra.mrb[30].mxu0 %vm225_vm1, %v10571_v1  ;;  %v10716_v1 = vld [vmem:[%s12265_s1 + $0x10] sm:$0xf] }
  0x66   : > { %8896 = vmatprep.mubr.msk.f32.mxu0 %vm225_vm1, %v376_v2  ;;  %v10706_v2 = vld [vmem:[#allocation2 + $0x2e7] sm:$0xff] }
  0x69   : > { %8897 = vmatmul.mubr.msk.f32.vlgmr.msra.gmra.mrb[0].mxu0 %vm225_vm1, %v377_v3  ;;  %v1092_v3 = vld [vmem:[#allocation2 + $0x11] sm:$0xff] }
  0x6a   : > { %8945 = vmatpush3.msk.msra.mxu0 %vm539_vm0, %v10397_v9  ;;  %8899 = vmatprep.mubr.msk.f32.mxu0 %vm225_vm1, %v10576_v4  ;;  %v10606_v9 = vld [vmem:[#allocation2 + $0xa7] sm:$0xff] }
  0x6b   : > { %8994 = vmatprep.subr.msk.mxu0 %vm539_vm0, %v10581_v5 }
  0x6d   : > { %8900 = vmatmul.mubr.msk.f32.gmra.mrb[2].mxu0 %vm225_vm1, %v10588_v6 }
  0x6e   : > { %8902 = vmatprep.mubr.msk.f32.mxu0 %vm225_vm1, %v10590_v7 }
  0x71   : > { %8903 = vmatmul.mubr.msk.f32.gmra.mrb[4].mxu0 %vm225_vm1, %v10598_v8 }
  0x72   : > { %8905 = vmatprep.mubr.msk.f32.mxu0 %vm225_vm1, %v10600_v10 }
  0x75   : > { %8906 = vmatmul.mubr.msk.f32.gmra.mrb[6].mxu0 %vm225_vm1, %v10606_v9 }
  0x76   : > { %8908 = vmatprep.mubr.msk.f32.mxu0 %vm225_vm1, %v10608_v11 }
  0x79   : > { %8909 = vmatmul.mubr.msk.f32.gmra.mrb[8].mxu0 %vm225_vm1, %v10614_v12 }
  0x7a   : > { %8911 = vmatprep.mubr.msk.f32.mxu0 %vm225_vm1, %v10616_v13 }
  0x7d   : > { %8912 = vmatmul.mubr.msk.f32.gmra.mrb[10].mxu0 %vm225_vm1, %v10622_v14 }
  0x7e   : > { %8914 = vmatprep.mubr.msk.f32.mxu0 %vm225_vm1, %v10624_v15 }
  0x81   : > { %8915 = vmatmul.mubr.msk.f32.gmra.mrb[12].mxu0 %vm225_vm1, %v10630_v16 }
  0x82   : > { %8917 = vmatprep.mubr.msk.f32.mxu0 %vm225_vm1, %v10632_v17 }
  0x85   : > { %8918 = vmatmul.mubr.msk.f32.gmra.mrb[14].mxu0 %vm225_vm1, %v10638_v18 }
  0x86   : > { %8920 = vmatprep.mubr.msk.f32.mxu0 %vm225_vm1, %v10640_v19 }
  0x89   : > { %8921 = vmatmul.mubr.msk.f32.gmra.mrb[16].mxu0 %vm225_vm1, %v10646_v20 }
  0x8a   : > { %8923 = vmatprep.mubr.msk.f32.mxu0 %vm225_vm1, %v10648_v21 }
  0x8d   : > { %8924 = vmatmul.mubr.msk.f32.gmra.mrb[18].mxu0 %vm225_vm1, %v10654_v22 }
  0x8e   : > { %8926 = vmatprep.mubr.msk.f32.mxu0 %vm225_vm1, %v10656_v23 }
  0x91   : > { %8927 = vmatmul.mubr.msk.f32.gmra.mrb[20].mxu0 %vm225_vm1, %v10662_v24 }
  0x92   : > { %8929 = vmatprep.mubr.msk.f32.mxu0 %vm225_vm1, %v10664_v25 }
  0x95   : > { %8930 = vmatmul.mubr.msk.f32.gmra.mrb[22].mxu0 %vm225_vm1, %v10670_v26 }
  0x96   : > { %8932 = vmatprep.mubr.msk.f32.mxu0 %vm225_vm1, %v10672_v27 }
  0x99   : > { %8933 = vmatmul.mubr.msk.f32.gmra.mrb[24].mxu0 %vm225_vm1, %v10678_v31 }
  0x9a   : > { %8935 = vmatprep.mubr.msk.f32.mxu0 %vm225_vm1, %v10680_v32 }
  0x9d   : > { %8936 = vmatmul.mubr.msk.f32.gmra.mrb[26].mxu0 %vm225_vm1, %v10686_v37 }
  0x9e   : > { %8938 = vmatprep.mubr.msk.f32.mxu0 %vm225_vm1, %v10688_v38 }
  0xa1   : > { %8939 = vmatmul.mubr.msk.f32.gmra.mrb[28].mxu0 %vm225_vm1, %v10698_v41 }
  0xa2   : > { %8941 = vmatprep.mubr.msk.f32.mxu0 %vm225_vm1, %v10700_v42 }
  0xa5   : > { %8942 = vmatmul.mubr.msk.f32.gmra.mrb[30].mxu0 %vm225_vm1, %v10706_v2 }
  0xa6   : > { %8946 = vmatprep.mubr.msk.f32.mxu0 %vm225_vm1, %v1092_v3  ;;  %v10733_v3 = vld [vmem:[#allocation2 + $0x79] sm:$0xff] }
  0xa7   : > { %12391 = vst [vmem:[#allocation10_spill] sm:$0xff] %v10733_v3 }
  0xa9   : > { %8947 = vmatmul.mubr.msk.f32.vlgmr.msra.gmra.mrb[0].mxu0 %vm225_vm1, %v1093_v39  ;;  %v10735_v39 = vld [vmem:[#allocation2 + $0xa1] sm:$0xff] }
  0xaa   : > { %8995 = vmatpush3.msk.msra.mxu0 %vm539_vm0, %v10581_v5  ;;  %8949 = vmatprep.mubr.msk.f32.mxu0 %vm225_vm1, %v10711_v40  ;;  %12392 = vst [vmem:[#allocation11_spill] sm:$0xff] %v10735_v39  ;;  %v10741_v5 = vld [vmem:[#allocation2 + $0xa9] sm:$0xff]  ;;  %v10743_v40 = vld [vmem:[#allocation2 + $0xd1] sm:$0xff] }
  0xab   : > { %9044 = vmatprep.subr.msk.mxu0 %vm539_vm0, %v10716_v1  ;;  %12393 = vst [vmem:[#allocation12_spill] sm:$0xff] %v10741_v5  ;;  %12394 = vst [vmem:[#allocation13_spill] sm:$0xff] %v10743_v40 }
  0xad   : > { %8950 = vmatmul.mubr.msk.f32.gmra.mrb[2].mxu0 %vm225_vm1, %v10723_v0  ;;  %v10751_v0 = vld [vmem:[#allocation2 + $0x101] sm:$0xff] }
  0xae   : > { %8952 = vmatprep.mubr.msk.f32.mxu0 %vm225_vm1, %v10725_v63  ;;  %v10749_v63 = vld [vmem:[#allocation2 + $0xd9] sm:$0xff]  ;;  %12396 = vst [vmem:[#allocation15_spill] sm:$0xff] %v10751_v0 }
  0xaf   : > { %12395 = vst [vmem:[#allocation14_spill] sm:$0xff] %v10749_v63 }
  0xb1   : > { %8953 = vmatmul.mubr.msk.f32.gmra.mrb[4].mxu0 %vm225_vm1, %v10733_v3  ;;  %v10759_v3 = vld [vmem:[#allocation2 + $0x131] sm:$0xff] }
  0xb2   : > { %8955 = vmatprep.mubr.msk.f32.mxu0 %vm225_vm1, %v10735_v39  ;;  %v10757_v39 = vld [vmem:[#allocation2 + $0x109] sm:$0xff]  ;;  %12398 = vst [vmem:[#allocation17_spill] sm:$0xff] %v10759_v3 }
  0xb3   : > { %12397 = vst [vmem:[#allocation16_spill] sm:$0xff] %v10757_v39 }
  0xb5   : > { %8956 = vmatmul.mubr.msk.f32.gmra.mrb[6].mxu0 %vm225_vm1, %v10741_v5  ;;  %v10767_v5 = vld [vmem:[#allocation2 + $0x161] sm:$0xff] }
  0xb6   : > { %8958 = vmatprep.mubr.msk.f32.mxu0 %vm225_vm1, %v10743_v40  ;;  %v10765_v40 = vld [vmem:[#allocation2 + $0x139] sm:$0xff]  ;;  %12400 = vst [vmem:[#allocation19_spill] sm:$0xff] %v10767_v5 }
  0xb7   : > { %12399 = vst [vmem:[#allocation18_spill] sm:$0xff] %v10765_v40 }
  0xb9   : > { %8959 = vmatmul.mubr.msk.f32.gmra.mrb[8].mxu0 %vm225_vm1, %v10749_v63  ;;  %v10775_v63 = vld [vmem:[#allocation2 + $0x191] sm:$0xff] }
  0xba   : > { %8961 = vmatprep.mubr.msk.f32.mxu0 %vm225_vm1, %v10751_v0  ;;  %v10773_v0 = vld [vmem:[#allocation2 + $0x169] sm:$0xff]  ;;  %12402 = vst [vmem:[#allocation21_spill] sm:$0xff] %v10775_v63 }
  0xbb   : > { %12401 = vst [vmem:[#allocation20_spill] sm:$0xff] %v10773_v0 }
  0xbd   : > { %8962 = vmatmul.mubr.msk.f32.gmra.mrb[10].mxu0 %vm225_vm1, %v10757_v39  ;;  %v10783_v39 = vld [vmem:[#allocation2 + $0x1c1] sm:$0xff] }
  0xbe   : > { %8964 = vmatprep.mubr.msk.f32.mxu0 %vm225_vm1, %v10759_v3  ;;  %v10781_v3 = vld [vmem:[#allocation2 + $0x199] sm:$0xff]  ;;  %12404 = vst [vmem:[#allocation23_spill] sm:$0xff] %v10783_v39 }
  0xbf   : > { %12403 = vst [vmem:[#allocation22_spill] sm:$0xff] %v10781_v3 }
  0xc1   : > { %8965 = vmatmul.mubr.msk.f32.gmra.mrb[12].mxu0 %vm225_vm1, %v10765_v40  ;;  %v10791_v40 = vld [vmem:[#allocation2 + $0x1f1] sm:$0xff] }
  0xc2   : > { %8967 = vmatprep.mubr.msk.f32.mxu0 %vm225_vm1, %v10767_v5  ;;  %v10789_v5 = vld [vmem:[#allocation2 + $0x1c9] sm:$0xff]  ;;  %12406 = vst [vmem:[#allocation25_spill] sm:$0xff] %v10791_v40 }
  0xc3   : > { %12405 = vst [vmem:[#allocation24_spill] sm:$0xff] %v10789_v5 }
  0xc5   : > { %8968 = vmatmul.mubr.msk.f32.gmra.mrb[14].mxu0 %vm225_vm1, %v10773_v0  ;;  %v10799_v0 = vld [vmem:[#allocation2 + $0x221] sm:$0xff] }
  0xc6   : > { %8970 = vmatprep.mubr.msk.f32.mxu0 %vm225_vm1, %v10775_v63  ;;  %v10797_v63 = vld [vmem:[#allocation2 + $0x1f9] sm:$0xff]  ;;  %12408 = vst [vmem:[#allocation27_spill] sm:$0xff] %v10799_v0 }
  0xc7   : > { %12407 = vst [vmem:[#allocation26_spill] sm:$0xff] %v10797_v63 }
  0xc9   : > { %8971 = vmatmul.mubr.msk.f32.gmra.mrb[16].mxu0 %vm225_vm1, %v10781_v3  ;;  %v10807_v3 = vld [vmem:[#allocation2 + $0x251] sm:$0xff] }
  0xca   : > { %8973 = vmatprep.mubr.msk.f32.mxu0 %vm225_vm1, %v10783_v39  ;;  %v10805_v39 = vld [vmem:[#allocation2 + $0x229] sm:$0xff]  ;;  %12410 = vst [vmem:[#allocation29_spill] sm:$0xff] %v10807_v3 }
  0xcb   : > { %12409 = vst [vmem:[#allocation28_spill] sm:$0xff] %v10805_v39 }
  0xcd   : > { %8974 = vmatmul.mubr.msk.f32.gmra.mrb[18].mxu0 %vm225_vm1, %v10789_v5  ;;  %v10815_v5 = vld [vmem:[#allocation2 + $0x281] sm:$0xff] }
  0xce   : > { %8976 = vmatprep.mubr.msk.f32.mxu0 %vm225_vm1, %v10791_v40  ;;  %v10813_v40 = vld [vmem:[#allocation2 + $0x259] sm:$0xff]  ;;  %12411 = vst [vmem:[#allocation30_spill] sm:$0xff] %v10815_v5 }
  0xd1   : > { %8977 = vmatmul.mubr.msk.f32.gmra.mrb[20].mxu0 %vm225_vm1, %v10797_v63  ;;  %v10823_v63 = vld [vmem:[#allocation2 + $0x2b1] sm:$0xff] }
  0xd2   : > { %8979 = vmatprep.mubr.msk.f32.mxu0 %vm225_vm1, %v10799_v0  ;;  %v10821_v0 = vld [vmem:[#allocation2 + $0x289] sm:$0xff]  ;;  %12412 = vst [vmem:[#allocation31_spill] sm:$0xff] %v10823_v63 }
  0xd5   : > { %8980 = vmatmul.mubr.msk.f32.gmra.mrb[22].mxu0 %vm225_vm1, %v10805_v39  ;;  %v10831_v39 = vld [vmem:[#allocation2 + $0x2e1] sm:$0xff] }
  0xd6   : > { %8982 = vmatprep.mubr.msk.f32.mxu0 %vm225_vm1, %v10807_v3  ;;  %v10829_v3 = vld [vmem:[#allocation2 + $0x2b9] sm:$0xff]  ;;  %12413 = vst [vmem:[#allocation32_spill] sm:$0xff] %v10831_v39 }
  0xd9   : > { %8983 = vmatmul.mubr.msk.f32.gmra.mrb[24].mxu0 %vm225_vm1, %v10813_v40 }
  0xda   : > { %8985 = vmatprep.mubr.msk.f32.mxu0 %vm225_vm1, %v10815_v5  ;;  %v10837_v5 = vld [vmem:[#allocation2 + $0x2e9] sm:$0xff] }
  0xdd   : > { %8986 = vmatmul.mubr.msk.f32.gmra.mrb[26].mxu0 %vm225_vm1, %v10821_v0 }
  0xde   : > { %8988 = vmatprep.mubr.msk.f32.mxu0 %vm225_vm1, %v10823_v63  ;;  %v7803_v63 = vld [vmem:[%s12265_s1 + $0x14] sm:$0xf] }
  0xe1   : > { %8989 = vmatmul.mubr.msk.f32.gmra.mrb[28].mxu0 %vm225_vm1, %v10829_v3 }
  0xe2   : > { %8991 = vmatprep.mubr.msk.f32.mxu0 %vm225_vm1, %v10831_v39 }
  0xe5   : > { %8992 = vmatmul.mubr.msk.f32.gmra.mrb[30].mxu0 %vm225_vm1, %v10837_v5 }
  0xe6   : > { %8996 = vmatprep.mubr.msk.f32.mxu0 %vm225_vm1, %v10576_v4  ;;  %v10911_v4 = vld [vmem:[#allocation2 + $0x317] sm:$0xff] }
  0xe9   : > { %8997 = vmatmul.mubr.msk.f32.vlgmr.msra.gmra.mrb[0].mxu0 %vm225_vm1, %v10588_v6  ;;  %v7837_v6 = vld [vmem:[%s12265_s1 + $0x18] sm:$0xf] }
  0xea   : > { %9045 = vmatpush3.msk.msra.mxu0 %vm539_vm0, %v10716_v1  ;;  %8999 = vmatprep.mubr.msk.f32.mxu0 %vm225_vm1, %v10590_v7  ;;  %v10905_v1 = vld [vmem:[#allocation2 + $0x30f] sm:$0xff] }
  0xeb   : > { %9094 = vmatprep.subr.msk.mxu0 %vm539_vm0, %v7803_v63 }
  0xed   : > { %9000 = vmatmul.mubr.msk.f32.gmra.mrb[2].mxu0 %vm225_vm1, %v10598_v8 }
  0xee   : > { %9002 = vmatprep.mubr.msk.f32.mxu0 %vm225_vm1, %v10600_v10 }
  0xf1   : > { %9003 = vmatmul.mubr.msk.f32.gmra.mrb[4].mxu0 %vm225_vm1, %v10606_v9 }
  0xf2   : > { %9005 = vmatprep.mubr.msk.f32.mxu0 %vm225_vm1, %v10608_v11 }
  0xf5   : > { %9006 = vmatmul.mubr.msk.f32.gmra.mrb[6].mxu0 %vm225_vm1, %v10614_v12 }
  0xf6   : > { %9008 = vmatprep.mubr.msk.f32.mxu0 %vm225_vm1, %v10616_v13 }
  0xf9   : > { %9009 = vmatmul.mubr.msk.f32.gmra.mrb[8].mxu0 %vm225_vm1, %v10622_v14 }
  0xfa   : > { %9011 = vmatprep.mubr.msk.f32.mxu0 %vm225_vm1, %v10624_v15 }
  0xfd   : > { %9012 = vmatmul.mubr.msk.f32.gmra.mrb[10].mxu0 %vm225_vm1, %v10630_v16 }
  0xfe   : > { %9014 = vmatprep.mubr.msk.f32.mxu0 %vm225_vm1, %v10632_v17 }
 0x101   : > { %9015 = vmatmul.mubr.msk.f32.gmra.mrb[12].mxu0 %vm225_vm1, %v10638_v18 }
 0x102   : > { %9017 = vmatprep.mubr.msk.f32.mxu0 %vm225_vm1, %v10640_v19 }
 0x105   : > { %9018 = vmatmul.mubr.msk.f32.gmra.mrb[14].mxu0 %vm225_vm1, %v10646_v20 }
 0x106   : > { %9020 = vmatprep.mubr.msk.f32.mxu0 %vm225_vm1, %v10648_v21 }
 0x109   : > { %9021 = vmatmul.mubr.msk.f32.gmra.mrb[16].mxu0 %vm225_vm1, %v10654_v22 }
 0x10a   : > { %9023 = vmatprep.mubr.msk.f32.mxu0 %vm225_vm1, %v10656_v23 }
 0x10d   : > { %9024 = vmatmul.mubr.msk.f32.gmra.mrb[18].mxu0 %vm225_vm1, %v10662_v24 }
 0x10e   : > { %9026 = vmatprep.mubr.msk.f32.mxu0 %vm225_vm1, %v10664_v25 }
 0x111   : > { %9027 = vmatmul.mubr.msk.f32.gmra.mrb[20].mxu0 %vm225_vm1, %v10670_v26 }
 0x112   : > { %9029 = vmatprep.mubr.msk.f32.mxu0 %vm225_vm1, %v10672_v27 }
 0x115   : > { %9030 = vmatmul.mubr.msk.f32.gmra.mrb[22].mxu0 %vm225_vm1, %v10678_v31 }
 0x116   : > { %9032 = vmatprep.mubr.msk.f32.mxu0 %vm225_vm1, %v10680_v32 }
 0x119   : > { %9033 = vmatmul.mubr.msk.f32.gmra.mrb[24].mxu0 %vm225_vm1, %v10686_v37 }
 0x11a   : > { %9035 = vmatprep.mubr.msk.f32.mxu0 %vm225_vm1, %v10688_v38 }
 0x11d   : > { %9036 = vmatmul.mubr.msk.f32.gmra.mrb[26].mxu0 %vm225_vm1, %v10698_v41 }
 0x11e   : > { %9038 = vmatprep.mubr.msk.f32.mxu0 %vm225_vm1, %v10700_v42 }
 0x121   : > { %9039 = vmatmul.mubr.msk.f32.gmra.mrb[28].mxu0 %vm225_vm1, %v10706_v2 }
 0x122   : > { %9041 = vmatprep.mubr.msk.f32.mxu0 %vm225_vm1, %v10905_v1 }
 0x125   : > { %9042 = vmatmul.mubr.msk.f32.gmra.mrb[30].mxu0 %vm225_vm1, %v10911_v4 }
 0x126   : > { %9046 = vmatprep.mubr.msk.f32.mxu0 %vm225_vm1, %v10436_v28  ;;  %v12414_v28 = vld [vmem:[#allocation4_spill] sm:$0xff] }
 0x129   : > { %9047 = vmatmul.mubr.msk.f32.vlgmr.msra.gmra.mrb[0].mxu0 %vm225_vm1, %v10438_v29  ;;  %v12415_v29 = vld [vmem:[#allocation5_spill] sm:$0xff] }
 0x12a   : > { %9095 = vmatpush3.msk.msra.mxu0 %vm539_vm0, %v7803_v63  ;;  %9049 = vmatprep.mubr.msk.f32.mxu0 %vm225_vm1, %v10440_v30  ;;  %v10978_v30 = vld [vmem:[#allocation2 + $0x310] sm:$0xff]  ;;  %v7871_v63 = vld [vmem:[%s12265_s1 + $0x1c] sm:$0xf] }
 0x12b   : > { %9144 = vmatprep.subr.msk.mxu0 %vm539_vm0, %v7837_v6  ;;  %12416 = vst [vmem:[#allocation33_spill] sm:$0xff] %v10978_v30 }
 0x12d   : > { %9050 = vmatmul.mubr.msk.f32.gmra.mrb[2].mxu0 %vm225_vm1, %v10453_v33  ;;  %v12417_v33 = vld [vmem:[#allocation6_spill] sm:$0xff] }
 0x12e   : > { %9052 = vmatprep.mubr.msk.f32.mxu0 %vm225_vm1, %v10457_v34  ;;  %v10984_v34 = vld [vmem:[#allocation2 + $0x318] sm:$0xff] }
 0x12f   : > { %12418 = vst [vmem:[#allocation34_spill] sm:$0xff] %v10984_v34 }
 0x131   : > { %9053 = vmatmul.mubr.msk.f32.gmra.mrb[4].mxu0 %vm225_vm1, %v10463_v35  ;;  %v12419_v35 = vld [vmem:[#allocation7_spill] sm:$0xff] }
 0x132   : > { %9055 = vmatprep.mubr.msk.f32.mxu0 %vm225_vm1, %v10465_v36 }
 0x135   : > { %9056 = vmatmul.mubr.msk.f32.gmra.mrb[6].mxu0 %vm225_vm1, %v10483_v43 }
 0x136   : > { %9058 = vmatprep.mubr.msk.f32.mxu0 %vm225_vm1, %v10485_v44 }
 0x139   : > { %9059 = vmatmul.mubr.msk.f32.gmra.mrb[8].mxu0 %vm225_vm1, %v10491_v45 }
 0x13a   : > { %9061 = vmatprep.mubr.msk.f32.mxu0 %vm225_vm1, %v10493_v46 }
 0x13d   : > { %9062 = vmatmul.mubr.msk.f32.gmra.mrb[10].mxu0 %vm225_vm1, %v10499_v47 }
 0x13e   : > { %9064 = vmatprep.mubr.msk.f32.mxu0 %vm225_vm1, %v10501_v48 }
 0x141   : > { %9065 = vmatmul.mubr.msk.f32.gmra.mrb[12].mxu0 %vm225_vm1, %v10507_v49 }
 0x142   : > { %9067 = vmatprep.mubr.msk.f32.mxu0 %vm225_vm1, %v10509_v50 }
 0x145   : > { %9068 = vmatmul.mubr.msk.f32.gmra.mrb[14].mxu0 %vm225_vm1, %v10515_v51 }
 0x146   : > { %9070 = vmatprep.mubr.msk.f32.mxu0 %vm225_vm1, %v10517_v52 }
 0x149   : > { %9071 = vmatmul.mubr.msk.f32.gmra.mrb[16].mxu0 %vm225_vm1, %v10523_v53 }
 0x14a   : > { %9073 = vmatprep.mubr.msk.f32.mxu0 %vm225_vm1, %v10525_v54 }
 0x14d   : > { %9074 = vmatmul.mubr.msk.f32.gmra.mrb[18].mxu0 %vm225_vm1, %v10531_v55 }
 0x14e   : > { %9076 = vmatprep.mubr.msk.f32.mxu0 %vm225_vm1, %v10533_v56 }
 0x151   : > { %9077 = vmatmul.mubr.msk.f32.gmra.mrb[20].mxu0 %vm225_vm1, %v10539_v57 }
 0x152   : > { %9079 = vmatprep.mubr.msk.f32.mxu0 %vm225_vm1, %v10541_v58 }
 0x155   : > { %9080 = vmatmul.mubr.msk.f32.gmra.mrb[22].mxu0 %vm225_vm1, %v10547_v59 }
 0x156   : > { %9082 = vmatprep.mubr.msk.f32.mxu0 %vm225_vm1, %v10549_v60 }
 0x159   : > { %9083 = vmatmul.mubr.msk.f32.gmra.mrb[24].mxu0 %vm225_vm1, %v10555_v61 }
 0x15a   : > { %9085 = vmatprep.mubr.msk.f32.mxu0 %vm225_vm1, %v10557_v62  ;;  %v12429_v62 = vld [vmem:[#allocation17_spill] sm:$0xff] }
 0x15d   : > { %9086 = vmatmul.mubr.msk.f32.gmra.mrb[26].mxu0 %vm225_vm1, %v12414_v28  ;;  %v12425_v28 = vld [vmem:[#allocation13_spill] sm:$0xff] }
 0x15e   : > { %9088 = vmatprep.mubr.msk.f32.mxu0 %vm225_vm1, %v12415_v29  ;;  %v12420_v29 = vld [vmem:[#allocation8_spill] sm:$0xff] }
 0x161   : > { %9089 = vmatmul.mubr.msk.f32.gmra.mrb[28].mxu0 %vm225_vm1, %v12417_v33  ;;  %v12421_v33 = vld [vmem:[#allocation9_spill] sm:$0xff] }
 0x162   : > { %9091 = vmatprep.mubr.msk.f32.mxu0 %vm225_vm1, %v10978_v30  ;;  %v12422_v30 = vld [vmem:[#allocation10_spill] sm:$0xff] }
 0x165   : > { %9092 = vmatmul.mubr.msk.f32.gmra.mrb[30].mxu0 %vm225_vm1, %v10984_v34  ;;  %v12423_v34 = vld [vmem:[#allocation11_spill] sm:$0xff] }
 0x166   : > { %9096 = vmatprep.mubr.msk.f32.mxu0 %vm225_vm1, %v12419_v35  ;;  %v12424_v35 = vld [vmem:[#allocation12_spill] sm:$0xff] }
 0x169   : > { %9097 = vmatmul.mubr.msk.f32.vlgmr.msra.gmra.mrb[0].mxu0 %vm225_vm1, %v12420_v29  ;;  %v12426_v29 = vld [vmem:[#allocation14_spill] sm:$0xff] }
 0x16a   : > { %9145 = vmatpush3.msk.msra.mxu0 %vm539_vm0, %v7837_v6  ;;  %9099 = vmatprep.mubr.msk.f32.mxu0 %vm225_vm1, %v12421_v33  ;;  %v12427_v6 = vld [vmem:[#allocation15_spill] sm:$0xff]  ;;  %v12428_v33 = vld [vmem:[#allocation16_spill] sm:$0xff] }
 0x16b   : > { %9194 = vmatprep.subr.msk.mxu0 %vm539_vm0, %v7871_v63 }
 0x16d   : > { %9100 = vmatmul.mubr.msk.f32.gmra.mrb[2].mxu0 %vm225_vm1, %v12422_v30  ;;  %v12430_v30 = vld [vmem:[#allocation18_spill] sm:$0xff] }
 0x16e   : > { %9102 = vmatprep.mubr.msk.f32.mxu0 %vm225_vm1, %v12423_v34  ;;  %v12431_v34 = vld [vmem:[#allocation19_spill] sm:$0xff] }
 0x171   : > { %9103 = vmatmul.mubr.msk.f32.gmra.mrb[4].mxu0 %vm225_vm1, %v12424_v35  ;;  %v12432_v35 = vld [vmem:[#allocation20_spill] sm:$0xff] }
 0x172   : > { %9105 = vmatprep.mubr.msk.f32.mxu0 %vm225_vm1, %v12425_v28  ;;  %v12433_v28 = vld [vmem:[#allocation21_spill] sm:$0xff] }
 0x175   : > { %9106 = vmatmul.mubr.msk.f32.gmra.mrb[6].mxu0 %vm225_vm1, %v12426_v29  ;;  %v12434_v29 = vld [vmem:[#allocation22_spill] sm:$0xff] }
 0x176   : > { %9108 = vmatprep.mubr.msk.f32.mxu0 %vm225_vm1, %v12427_v6  ;;  %v12435_v6 = vld [vmem:[#allocation23_spill] sm:$0xff] }
 0x179   : > { %9109 = vmatmul.mubr.msk.f32.gmra.mrb[8].mxu0 %vm225_vm1, %v12428_v33  ;;  %v12436_v33 = vld [vmem:[#allocation24_spill] sm:$0xff] }
 0x17a   : > { %9111 = vmatprep.mubr.msk.f32.mxu0 %vm225_vm1, %v12429_v62  ;;  %v12437_v62 = vld [vmem:[#allocation25_spill] sm:$0xff] }
 0x17d   : > { %9112 = vmatmul.mubr.msk.f32.gmra.mrb[10].mxu0 %vm225_vm1, %v12430_v30  ;;  %v12438_v30 = vld [vmem:[#allocation26_spill] sm:$0xff] }
 0x17e   : > { %9114 = vmatprep.mubr.msk.f32.mxu0 %vm225_vm1, %v12431_v34  ;;  %v12439_v34 = vld [vmem:[#allocation27_spill] sm:$0xff] }
 0x181   : > { %9115 = vmatmul.mubr.msk.f32.gmra.mrb[12].mxu0 %vm225_vm1, %v12432_v35  ;;  %v12440_v35 = vld [vmem:[#allocation28_spill] sm:$0xff] }
 0x182   : > { %9117 = vmatprep.mubr.msk.f32.mxu0 %vm225_vm1, %v12433_v28  ;;  %v12441_v28 = vld [vmem:[#allocation29_spill] sm:$0xff] }
 0x185   : > { %9118 = vmatmul.mubr.msk.f32.gmra.mrb[14].mxu0 %vm225_vm1, %v12434_v29 }
 0x186   : > { %9120 = vmatprep.mubr.msk.f32.mxu0 %vm225_vm1, %v12435_v6  ;;  %v12442_v6 = vld [vmem:[#allocation30_spill] sm:$0xff] }
 0x189   : > { %9121 = vmatmul.mubr.msk.f32.gmra.mrb[16].mxu0 %vm225_vm1, %v12436_v33 }
 0x18a   : > { %9123 = vmatprep.mubr.msk.f32.mxu0 %vm225_vm1, %v12437_v62  ;;  %v12443_v62 = vld [vmem:[#allocation31_spill] sm:$0xff] }
 0x18d   : > { %9124 = vmatmul.mubr.msk.f32.gmra.mrb[18].mxu0 %vm225_vm1, %v12438_v30 }
 0x18e   : > { %9126 = vmatprep.mubr.msk.f32.mxu0 %vm225_vm1, %v12439_v34 }
 0x191   : > { %9127 = vmatmul.mubr.msk.f32.gmra.mrb[20].mxu0 %vm225_vm1, %v12440_v35  ;;  %v11051_v35 = vld [vmem:[#allocation2 + $0x311] sm:$0xff] }
 0x192   : > { %9129 = vmatprep.mubr.msk.f32.mxu0 %vm225_vm1, %v12441_v28 }
 0x195   : > { %9130 = vmatmul.mubr.msk.f32.gmra.mrb[22].mxu0 %vm225_vm1, %v10813_v40 }
 0x196   : > { %9132 = vmatprep.mubr.msk.f32.mxu0 %vm225_vm1, %v12442_v6  ;;  %v11057_v6 = vld [vmem:[#allocation2 + $0x319] sm:$0xff] }
 0x199   : > { %9133 = vmatmul.mubr.msk.f32.gmra.mrb[24].mxu0 %vm225_vm1, %v10821_v0 }
 0x19a   : > { %9135 = vmatprep.mubr.msk.f32.mxu0 %vm225_vm1, %v12443_v62 }
 0x19d   : > { %9136 = vmatmul.mubr.msk.f32.gmra.mrb[26].mxu0 %vm225_vm1, %v10829_v3 }
 0x19e   : > { %9138 = vmatprep.mubr.msk.f32.mxu0 %vm225_vm1, %v10831_v39  ;;  %v7905_v39 = vld [vmem:[%s12265_s1 + $0x20] sm:$0xf] }
 0x1a1   : > { %9139 = vmatmul.mubr.msk.f32.gmra.mrb[28].mxu0 %vm225_vm1, %v10837_v5 }
 0x1a2   : > { %9141 = vmatprep.mubr.msk.f32.mxu0 %vm225_vm1, %v11051_v35 }
 0x1a5   : > { %9142 = vmatmul.mubr.msk.f32.gmra.mrb[30].mxu0 %vm225_vm1, %v11057_v6 }
 0x1a6   : > { %9146 = vmatprep.mubr.msk.f32.mxu0 %vm225_vm1, %v10590_v7  ;;  %v2683_v7 = vld [vmem:[#allocation2 + $0x33f] sm:$0xff] }
 0x1a9   : > { %9147 = vmatmul.mubr.msk.f32.vlgmr.msra.gmra.mrb[0].mxu0 %vm225_vm1, %v10598_v8  ;;  %v2684_v8 = vld [vmem:[#allocation2 + $0x347] sm:$0xff] }
 0x1aa   : > { %9195 = vmatpush3.msk.msra.mxu0 %vm539_vm0, %v7871_v63  ;;  %9149 = vmatprep.mubr.msk.f32.mxu0 %vm225_vm1, %v10600_v10  ;;  %v3043_v10 = vld [vmem:[#allocation2 + $0x70] sm:$0xff] }
 0x1ab   : > { %9244 = vmatprep.subr.msk.mxu0 %vm539_vm0, %v7905_v39 }
 0x1ad   : > { %9150 = vmatmul.mubr.msk.f32.gmra.mrb[2].mxu0 %vm225_vm1, %v10606_v9  ;;  %v3044_v9 = vld [vmem:[#allocation2 + $0x78] sm:$0xff] }
 0x1ae   : > { %9152 = vmatprep.mubr.msk.f32.mxu0 %vm225_vm1, %v10608_v11  ;;  %v3045_v11 = vld [vmem:[#allocation2 + $0xa0] sm:$0xff] }
 0x1b1   : > { %9153 = vmatmul.mubr.msk.f32.gmra.mrb[4].mxu0 %vm225_vm1, %v10614_v12  ;;  %v3046_v12 = vld [vmem:[#allocation2 + $0xa8] sm:$0xff] }
 0x1b2   : > { %9155 = vmatprep.mubr.msk.f32.mxu0 %vm225_vm1, %v10616_v13  ;;  %v12462_v13 = vld [vmem:[#allocation21_spill] sm:$0xff] }
 0x1b5   : > { %9156 = vmatmul.mubr.msk.f32.gmra.mrb[6].mxu0 %vm225_vm1, %v10622_v14  ;;  %v12463_v14 = vld [vmem:[#allocation23_spill] sm:$0xff] }
 0x1b6   : > { %9158 = vmatprep.mubr.msk.f32.mxu0 %vm225_vm1, %v10624_v15  ;;  %v12464_v15 = vld [vmem:[#allocation25_spill] sm:$0xff] }
 0x1b9   : > { %9159 = vmatmul.mubr.msk.f32.gmra.mrb[8].mxu0 %vm225_vm1, %v10630_v16  ;;  %v12465_v16 = vld [vmem:[#allocation28_spill] sm:$0xff] }
 0x1ba   : > { %9161 = vmatprep.mubr.msk.f32.mxu0 %vm225_vm1, %v10632_v17  ;;  %v12466_v17 = vld [vmem:[#allocation30_spill] sm:$0xff] }
 0x1bd   : > { %9162 = vmatmul.mubr.msk.f32.gmra.mrb[10].mxu0 %vm225_vm1, %v10638_v18  ;;  %v12467_v18 = vld [vmem:[#allocation32_spill] sm:$0xff] }
 0x1be   : > { %9164 = vmatprep.mubr.msk.f32.mxu0 %vm225_vm1, %v10640_v19  ;;  %v3463_v19 = vld [vmem:[#allocation2 + $0x341] sm:$0xff] }
 0x1c1   : > { %9165 = vmatmul.mubr.msk.f32.gmra.mrb[12].mxu0 %vm225_vm1, %v10646_v20  ;;  %v3959_v20 = vld [vmem:[#allocation2 + $0x10] sm:$0xff] }
 0x1c2   : > { %9167 = vmatprep.mubr.msk.f32.mxu0 %vm225_vm1, %v10648_v21  ;;  %9296 = vmatprep.mubr.msk.f32.mxu1 %vm225_vm1, %v3959_v20  ;;  %v3960_v21 = vld [vmem:[#allocation2 + $0x18] sm:$0xff] }
 0x1c5   : > { %9168 = vmatmul.mubr.msk.f32.gmra.mrb[14].mxu0 %vm225_vm1, %v10654_v22  ;;  %v3958_v22 = vld [vmem:[%s12267_s3] sm:$0xf] }
 0x1c6   : > { %9170 = vmatprep.mubr.msk.f32.mxu0 %vm225_vm1, %v10656_v23  ;;  %v11264_v23 = vld [vmem:[%s12267_s3 + $0x8] sm:$0xf] }
 0x1c9   : > { %9171 = vmatmul.mubr.msk.f32.gmra.mrb[16].mxu0 %vm225_vm1, %v10662_v24  ;;  %v11271_v24 = vld [vmem:[%s12266_s2] ss:$0 sm:$0xff] }
 0x1ca   : > { %9173 = vmatprep.mubr.msk.f32.mxu0 %vm225_vm1, %v10664_v25 }
 0x1cd   : > { %9174 = vmatmul.mubr.msk.f32.gmra.mrb[18].mxu0 %vm225_vm1, %v10670_v26 }
 0x1ce   : > { %9176 = vmatprep.mubr.msk.f32.mxu0 %vm225_vm1, %v10672_v27 }
 0x1d1   : > { %9177 = vmatmul.mubr.msk.f32.gmra.mrb[20].mxu0 %vm225_vm1, %v10678_v31 }
 0x1d2   : > { %9179 = vmatprep.mubr.msk.f32.mxu0 %vm225_vm1, %v10680_v32 }
 0x1d5   : > { %9180 = vmatmul.mubr.msk.f32.gmra.mrb[22].mxu0 %vm225_vm1, %v10686_v37 }
 0x1d6   : > { %9182 = vmatprep.mubr.msk.f32.mxu0 %vm225_vm1, %v10688_v38 }
 0x1d9   : > { %9183 = vmatmul.mubr.msk.f32.gmra.mrb[24].mxu0 %vm225_vm1, %v10698_v41 }
 0x1da   : > { %9185 = vmatprep.mubr.msk.f32.mxu0 %vm225_vm1, %v10700_v42 }
 0x1dd   : > { %9186 = vmatmul.mubr.msk.f32.gmra.mrb[26].mxu0 %vm225_vm1, %v10706_v2 }
 0x1de   : > { %9188 = vmatprep.mubr.msk.f32.mxu0 %vm225_vm1, %v10905_v1 }
 0x1e1   : > { %9189 = vmatmul.mubr.msk.f32.gmra.mrb[28].mxu0 %vm225_vm1, %v10911_v4 }
 0x1e2   : > { %9191 = vmatprep.mubr.msk.f32.mxu0 %vm225_vm1, %v2683_v7 }
 0x1e5   : > { %9192 = vmatmul.mubr.msk.f32.gmra.mrb[30].mxu0 %vm225_vm1, %v2684_v8 }
 0x1e6   : > { %9196 = vmatprep.mubr.msk.f32.mxu0 %vm225_vm1, %v3043_v10 }
 0x1e9   : > { %9197 = vmatmul.mubr.msk.f32.vlgmr.msra.gmra.mrb[0].mxu0 %vm225_vm1, %v3044_v9 }
 0x1ea   : > { %9245 = vmatpush3.msk.msra.mxu0 %vm539_vm0, %v7905_v39  ;;  %9199 = vmatprep.mubr.msk.f32.mxu0 %vm225_vm1, %v3045_v11 }
 0x1ed   : > { %9200 = vmatmul.mubr.msk.f32.gmra.mrb[2].mxu0 %vm225_vm1, %v3046_v12 }
 0x1ee   : > { %9202 = vmatprep.mubr.msk.f32.mxu0 %vm225_vm1, %v10465_v36  ;;  %v12444_v36 = vld [vmem:[#allocation3_spill] sm:$0xff] }
 0x1f1   : > { %9203 = vmatmul.mubr.msk.f32.gmra.mrb[4].mxu0 %vm225_vm1, %v10483_v43  ;;  %v12445_v43 = vld [vmem:[#allocation4_spill] sm:$0xff] }
 0x1f2   : > { %9205 = vmatprep.mubr.msk.f32.mxu0 %vm225_vm1, %v10485_v44  ;;  %v12446_v44 = vld [vmem:[#allocation5_spill] sm:$0xff] }
 0x1f5   : > { %9206 = vmatmul.mubr.msk.f32.gmra.mrb[6].mxu0 %vm225_vm1, %v10491_v45  ;;  %v12447_v45 = vld [vmem:[#allocation6_spill] sm:$0xff] }
 0x1f6   : > { %9208 = vmatprep.mubr.msk.f32.mxu0 %vm225_vm1, %v10493_v46  ;;  %v12448_v46 = vld [vmem:[#allocation33_spill] sm:$0xff] }
 0x1f9   : > { %9209 = vmatmul.mubr.msk.f32.gmra.mrb[8].mxu0 %vm225_vm1, %v10499_v47  ;;  %v3073_v47 = vld [vmem:[#allocation2 + $0x340] sm:$0xff] }
 0x1fa   : > { %9211 = vmatprep.mubr.msk.f32.mxu0 %vm225_vm1, %v10501_v48  ;;  %v12449_v48 = vld [vmem:[#allocation34_spill] sm:$0xff] }
 0x1fd   : > { %9212 = vmatmul.mubr.msk.f32.gmra.mrb[10].mxu0 %vm225_vm1, %v10507_v49  ;;  %v3074_v49 = vld [vmem:[#allocation2 + $0x348] sm:$0xff] }
 0x1fe   : > { %9214 = vmatprep.mubr.msk.f32.mxu0 %vm225_vm1, %v10509_v50  ;;  %v12450_v50 = vld [vmem:[#allocation9_spill] sm:$0xff] }
 0x201   : > { %9215 = vmatmul.mubr.msk.f32.gmra.mrb[12].mxu0 %vm225_vm1, %v10515_v51  ;;  %v12451_v51 = vld [vmem:[#allocation10_spill] sm:$0xff] }
 0x202   : > { %9217 = vmatprep.mubr.msk.f32.mxu0 %vm225_vm1, %v10517_v52  ;;  %v12452_v52 = vld [vmem:[#allocation11_spill] sm:$0xff] }
 0x205   : > { %9218 = vmatmul.mubr.msk.f32.gmra.mrb[14].mxu0 %vm225_vm1, %v10523_v53  ;;  %v12453_v53 = vld [vmem:[#allocation12_spill] sm:$0xff] }
 0x206   : > { %9220 = vmatprep.mubr.msk.f32.mxu0 %vm225_vm1, %v10525_v54  ;;  %v12454_v54 = vld [vmem:[#allocation13_spill] sm:$0xff] }
 0x209   : > { %9221 = vmatmul.mubr.msk.f32.gmra.mrb[16].mxu0 %vm225_vm1, %v10531_v55  ;;  %v12455_v55 = vld [vmem:[#allocation14_spill] sm:$0xff] }
 0x20a   : > { %9223 = vmatprep.mubr.msk.f32.mxu0 %vm225_vm1, %v10533_v56  ;;  %v12456_v56 = vld [vmem:[#allocation15_spill] sm:$0xff] }
 0x20d   : > { %9224 = vmatmul.mubr.msk.f32.gmra.mrb[18].mxu0 %vm225_vm1, %v10539_v57  ;;  %v12457_v57 = vld [vmem:[#allocation16_spill] sm:$0xff] }
 0x20e   : > { %9226 = vmatprep.mubr.msk.f32.mxu0 %vm225_vm1, %v10541_v58  ;;  %v12458_v58 = vld [vmem:[#allocation17_spill] sm:$0xff] }
 0x211   : > { %9227 = vmatmul.mubr.msk.f32.gmra.mrb[20].mxu0 %vm225_vm1, %v10547_v59  ;;  %v12459_v59 = vld [vmem:[#allocation18_spill] sm:$0xff] }
 0x212   : > { %9229 = vmatprep.mubr.msk.f32.mxu0 %vm225_vm1, %v10549_v60  ;;  %v12460_v60 = vld [vmem:[#allocation19_spill] sm:$0xff] }
 0x215   : > { %9230 = vmatmul.mubr.msk.f32.gmra.mrb[22].mxu0 %vm225_vm1, %v10555_v61  ;;  %v12461_v61 = vld [vmem:[#allocation20_spill] sm:$0xff] }
 0x216   : > { %9232 = vmatprep.mubr.msk.f32.mxu0 %vm225_vm1, %v12444_v36 }
 0x219   : > { %9233 = vmatmul.mubr.msk.f32.gmra.mrb[24].mxu0 %vm225_vm1, %v12445_v43 }
 0x21a   : > { %9235 = vmatprep.mubr.msk.f32.mxu0 %vm225_vm1, %v12446_v44 }
 0x21d   : > { %9236 = vmatmul.mubr.msk.f32.gmra.mrb[26].mxu0 %vm225_vm1, %v12447_v45 }
 0x21e   : > { %9238 = vmatprep.mubr.msk.f32.mxu0 %vm225_vm1, %v12448_v46 }
 0x221   : > { %9239 = vmatmul.mubr.msk.f32.gmra.mrb[28].mxu0 %vm225_vm1, %v12449_v48 }
 0x222   : > { %9241 = vmatprep.mubr.msk.f32.mxu0 %vm225_vm1, %v3073_v47 }
 0x225   : > { %9242 = vmatmul.mubr.msk.f32.gmra.mrb[30].mxu0 %vm225_vm1, %v3074_v49 }
 0x226   : > { %9246 = vmatprep.mubr.msk.f32.mxu0 %vm225_vm1, %v12450_v50 }
 0x229   : > { %9247 = vmatmul.mubr.msk.f32.vlgmr.msra.gmra.mrb[0].mxu0 %vm225_vm1, %v12451_v51 }
 0x22a   : > { %9249 = vmatprep.mubr.msk.f32.mxu0 %vm225_vm1, %v12452_v52 }
 0x22d   : > { %9250 = vmatmul.mubr.msk.f32.gmra.mrb[2].mxu0 %vm225_vm1, %v12453_v53 }
 0x22e   : > { %9252 = vmatprep.mubr.msk.f32.mxu0 %vm225_vm1, %v12454_v54 }
 0x231   : > { %9253 = vmatmul.mubr.msk.f32.gmra.mrb[4].mxu0 %vm225_vm1, %v12455_v55 }
 0x232   : > { %9255 = vmatprep.mubr.msk.f32.mxu0 %vm225_vm1, %v12456_v56 }
 0x235   : > { %9256 = vmatmul.mubr.msk.f32.gmra.mrb[6].mxu0 %vm225_vm1, %v12457_v57 }
 0x236   : > { %9258 = vmatprep.mubr.msk.f32.mxu0 %vm225_vm1, %v12458_v58 }
 0x239   : > { %9259 = vmatmul.mubr.msk.f32.gmra.mrb[8].mxu0 %vm225_vm1, %v12459_v59 }
 0x23a   : > { %9261 = vmatprep.mubr.msk.f32.mxu0 %vm225_vm1, %v12460_v60 }
 0x23d   : > { %9262 = vmatmul.mubr.msk.f32.gmra.mrb[10].mxu0 %vm225_vm1, %v12461_v61 }
 0x23e   : > { %9264 = vmatprep.mubr.msk.f32.mxu0 %vm225_vm1, %v12462_v13 }
 0x241   : > { %9265 = vmatmul.mubr.msk.f32.gmra.mrb[12].mxu0 %vm225_vm1, %v12434_v29 }
 0x242   : > { %9267 = vmatprep.mubr.msk.f32.mxu0 %vm225_vm1, %v12463_v14 }
 0x245   : > { %9268 = vmatmul.mubr.msk.f32.gmra.mrb[14].mxu0 %vm225_vm1, %v12436_v33 }
 0x246   : > { %9270 = vmatprep.mubr.msk.f32.mxu0 %vm225_vm1, %v12464_v15 }
 0x249   : > { %9271 = vmatmul.mubr.msk.f32.gmra.mrb[16].mxu0 %vm225_vm1, %v12438_v30 }
 0x24a   : > { %9273 = vmatprep.mubr.msk.f32.mxu0 %vm225_vm1, %v12439_v34 }
 0x24d   : > { %9274 = vmatmul.mubr.msk.f32.gmra.mrb[18].mxu0 %vm225_vm1, %v12465_v16 }
 0x24e   : > { %9276 = vmatprep.mubr.msk.f32.mxu0 %vm225_vm1, %v12441_v28 }
 0x251   : > { %9277 = vmatmul.mubr.msk.f32.gmra.mrb[20].mxu0 %vm225_vm1, %v10813_v40 }
 0x252   : > { %9279 = vmatprep.mubr.msk.f32.mxu0 %vm225_vm1, %v12466_v17 }
 0x255   : > { %9280 = vmatmul.mubr.msk.f32.gmra.mrb[22].mxu0 %vm225_vm1, %v10821_v0  ;;  %v3464_v0 = vld [vmem:[#allocation2 + $0x349] sm:$0xff] }
 0x256   : > { %9282 = vmatprep.mubr.msk.f32.mxu0 %vm225_vm1, %v12443_v62  ;;  %v7940_v62 = vld [vmem:[%s12267_s3 + $0x4] sm:$0xf] }
 0x257   : > { %9294 = vmatprep.subr.msk.mxu1 %vm539_vm0, %v7940_v62 }
 0x258   : > { %9295 = vmatpush3.msk.msra.mxu1 %vm539_vm0, %v7940_v62 }
 0x259   : > { %9283 = vmatmul.mubr.msk.f32.gmra.mrb[24].mxu0 %vm225_vm1, %v10829_v3  ;;  %9297 = vmatmul.mubr.msk.f32.vlgmr.msra.gmra.mrb[0].mxu1 %vm225_vm1, %v3960_v21 }
 0x25a   : > { %9285 = vmatprep.mubr.msk.f32.mxu0 %vm225_vm1, %v12467_v18  ;;  %9344 = vmatprep.subr.msk.mxu1 %vm539_vm0, %v3958_v22 }
 0x25b   : > { %9345 = vmatpush3.msk.msra.mxu1 %vm539_vm0, %v3958_v22 }
 0x25c   : > { %9394 = vmatprep.subr.msk.mxu1 %vm539_vm0, %v11264_v23 }
 0x25d   : > { %9286 = vmatmul.mubr.msk.f32.gmra.mrb[26].mxu0 %vm225_vm1, %v10837_v5 }
 0x25e   : > { %9288 = vmatprep.mubr.msk.f32.mxu0 %vm225_vm1, %v11051_v35 }
 0x261   : > { %9289 = vmatmul.mubr.msk.f32.gmra.mrb[28].mxu0 %vm225_vm1, %v11057_v6 }
 0x262   : > { %9291 = vmatprep.mubr.msk.f32.mxu0 %vm225_vm1, %v3463_v19 }
 0x265   : > { %9292 = vmatmul.mubr.msk.f32.gmra.mrb[30].mxu0 %vm225_vm1, %v3464_v0 }
 0x2fc   : > { %v9248_v25 = vpop.f32.mrb[0].mxu0 }
 0x2fd   : > { %v3831_v26 = vadd.f32 %v9248_v25, %v11271_v24  ;;  %v3632_v27 = vpop.f32.mrb[1].mxu0 }
 0x2fe   : > { %v3830_v31 = vadd.f32 %v11271_v24, %v3632_v27 }
 0x2ff   : > { %v3863_v32 = vmax.f32 %v3831_v26, 0.0 }
 0x300   : > { %v3862_v37 = vmax.f32 %v3830_v31, 0.0  ;;  %v9251_v38 = vpop.f32.mrb[2].mxu0 }
 0x301   : > { %3895 = vst.msk [vmem:[#allocation2 + $0x48] sm:$0xff] %vm225_vm1, %v3863_v32  ;;  %v3833_v41 = vadd.f32 %v9251_v38, %v11271_v24  ;;  %v3642_v42 = vpop.f32.mrb[3].mxu0 }
 0x302   : > { %3894 = vst.msk [vmem:[#allocation2 + $0x40] sm:$0xff] %vm225_vm1, %v3862_v37  ;;  %v3832_v2 = vadd.f32 %v11271_v24, %v3642_v42 }
 0x303   : > { %v3865_v40 = vmax.f32 %v3833_v41, 0.0 }
 0x304   : > { %v3864_v3 = vmax.f32 %v3832_v2, 0.0  ;;  %v9254_v39 = vpop.f32.mrb[4].mxu0 }
 0x305   : > { %3897 = vst.msk [vmem:[#allocation2 + $0x78] sm:$0xff] %vm225_vm1, %v3865_v40  ;;  %v3835_v5 = vadd.f32 %v9254_v39, %v11271_v24  ;;  %v3652_v1 = vpop.f32.mrb[5].mxu0 }
 0x306   : > { %3896 = vst.msk [vmem:[#allocation2 + $0x70] sm:$0xff] %vm225_vm1, %v3864_v3  ;;  %v3834_v4 = vadd.f32 %v11271_v24, %v3652_v1 }
 0x307   : > { %v3867_v28 = vmax.f32 %v3835_v5, 0.0 }
 0x308   : > { %v3866_v30 = vmax.f32 %v3834_v4, 0.0  ;;  %v9257_v33 = vpop.f32.mrb[6].mxu0  ;;  %v11291_v6 = vld [vmem:[#allocation2 + $0x48] sm:$0xff] }
 0x309   : > { %3899 = vst.msk [vmem:[#allocation2 + $0xa8] sm:$0xff] %vm225_vm1, %v3867_v28  ;;  %v3837_v34 = vadd.f32 %v9257_v33, %v11271_v24  ;;  %v3662_v63 = vpop.f32.mrb[7].mxu0  ;;  %v11285_v35 = vld [vmem:[#allocation2 + $0x40] sm:$0xff] }
 0x30a   : > { %3898 = vst.msk [vmem:[#allocation2 + $0xa0] sm:$0xff] %vm225_vm1, %v3866_v30  ;;  %v3836_v29 = vadd.f32 %v11271_v24, %v3662_v63  ;;  %9299 = vmatprep.mubr.msk.f32.mxu1 %vm225_vm1, %v11285_v35 }
 0x30b   : > { %v3869_v7 = vmax.f32 %v3837_v34, 0.0  ;;  %9300 = vmatmul.mubr.msk.f32.gmra.mrb[2].mxu1 %vm225_vm1, %v11291_v6 }
 0x30c   : > { %v3868_v8 = vmax.f32 %v3836_v29, 0.0  ;;  %v9260_v10 = vpop.f32.mrb[8].mxu0  ;;  %v11303_v43 = vld [vmem:[#allocation2 + $0x78] sm:$0xff] }
 0x30d   : > { %3901 = vst.msk [vmem:[#allocation2 + $0xd8] sm:$0xff] %vm225_vm1, %v3869_v7  ;;  %v3839_v9 = vadd.f32 %v9260_v10, %v11271_v24  ;;  %v3672_v11 = vpop.f32.mrb[9].mxu0  ;;  %v11297_v12 = vld [vmem:[#allocation2 + $0x70] sm:$0xff] }
 0x30e   : > { %3900 = vst.msk [vmem:[#allocation2 + $0xd0] sm:$0xff] %vm225_vm1, %v3868_v8  ;;  %v3838_v36 = vadd.f32 %v11271_v24, %v3672_v11  ;;  %9302 = vmatprep.mubr.msk.f32.mxu1 %vm225_vm1, %v11297_v12 }
 0x30f   : > { %v3871_v44 = vmax.f32 %v3839_v9, 0.0  ;;  %9303 = vmatmul.mubr.msk.f32.gmra.mrb[4].mxu1 %vm225_vm1, %v11303_v43 }
 0x310   : > { %v3870_v45 = vmax.f32 %v3838_v36, 0.0  ;;  %v9263_v46 = vpop.f32.mrb[10].mxu0  ;;  %v11315_v51 = vld [vmem:[#allocation2 + $0xa8] sm:$0xff] }
 0x311   : > { %3903 = vst.msk [vmem:[#allocation2 + $0x108] sm:$0xff] %vm225_vm1, %v3871_v44  ;;  %v3841_v47 = vadd.f32 %v9263_v46, %v11271_v24  ;;  %v3682_v48 = vpop.f32.mrb[11].mxu0  ;;  %v11309_v49 = vld [vmem:[#allocation2 + $0xa0] sm:$0xff] }
 0x312   : > { %3902 = vst.msk [vmem:[#allocation2 + $0x100] sm:$0xff] %vm225_vm1, %v3870_v45  ;;  %v3840_v50 = vadd.f32 %v11271_v24, %v3682_v48  ;;  %9305 = vmatprep.mubr.msk.f32.mxu1 %vm225_vm1, %v11309_v49 }
 0x313   : > { %v3873_v52 = vmax.f32 %v3841_v47, 0.0  ;;  %9306 = vmatmul.mubr.msk.f32.gmra.mrb[6].mxu1 %vm225_vm1, %v11315_v51 }
 0x314   : > { %v3872_v53 = vmax.f32 %v3840_v50, 0.0  ;;  %v9266_v54 = vpop.f32.mrb[12].mxu0  ;;  %v11327_v59 = vld [vmem:[#allocation2 + $0xd8] sm:$0xff] }
 0x315   : > { %3905 = vst.msk [vmem:[#allocation2 + $0x138] sm:$0xff] %vm225_vm1, %v3873_v52  ;;  %v3843_v55 = vadd.f32 %v9266_v54, %v11271_v24  ;;  %v3692_v56 = vpop.f32.mrb[13].mxu0  ;;  %v11321_v57 = vld [vmem:[#allocation2 + $0xd0] sm:$0xff] }
 0x316   : > { %3904 = vst.msk [vmem:[#allocation2 + $0x130] sm:$0xff] %vm225_vm1, %v3872_v53  ;;  %v3842_v58 = vadd.f32 %v11271_v24, %v3692_v56  ;;  %9308 = vmatprep.mubr.msk.f32.mxu1 %vm225_vm1, %v11321_v57 }
 0x317   : > { %v3875_v60 = vmax.f32 %v3843_v55, 0.0  ;;  %9309 = vmatmul.mubr.msk.f32.gmra.mrb[8].mxu1 %vm225_vm1, %v11327_v59 }
 0x318   : > { %v3874_v61 = vmax.f32 %v3842_v58, 0.0  ;;  %v9269_v13 = vpop.f32.mrb[14].mxu0  ;;  %v11339_v18 = vld [vmem:[#allocation2 + $0x108] sm:$0xff] }
 0x319   : > { %3907 = vst.msk [vmem:[#allocation2 + $0x168] sm:$0xff] %vm225_vm1, %v3875_v60  ;;  %v3845_v14 = vadd.f32 %v9269_v13, %v11271_v24  ;;  %v3702_v15 = vpop.f32.mrb[15].mxu0  ;;  %v11333_v16 = vld [vmem:[#allocation2 + $0x100] sm:$0xff] }
 0x31a   : > { %3906 = vst.msk [vmem:[#allocation2 + $0x160] sm:$0xff] %vm225_vm1, %v3874_v61  ;;  %v3844_v17 = vadd.f32 %v11271_v24, %v3702_v15  ;;  %9311 = vmatprep.mubr.msk.f32.mxu1 %vm225_vm1, %v11333_v16 }
 0x31b   : > { %v3877_v19 = vmax.f32 %v3845_v14, 0.0  ;;  %9312 = vmatmul.mubr.msk.f32.gmra.mrb[10].mxu1 %vm225_vm1, %v11339_v18 }
 0x31c   : > { %v3876_v0 = vmax.f32 %v3844_v17, 0.0  ;;  %v9272_v62 = vpop.f32.mrb[16].mxu0  ;;  %v11351_v26 = vld [vmem:[#allocation2 + $0x138] sm:$0xff] }
 0x31d   : > { %3909 = vst.msk [vmem:[#allocation2 + $0x198] sm:$0xff] %vm225_vm1, %v3877_v19  ;;  %v3847_v20 = vadd.f32 %v9272_v62, %v11271_v24  ;;  %v3712_v21 = vpop.f32.mrb[17].mxu0  ;;  %v11345_v22 = vld [vmem:[#allocation2 + $0x130] sm:$0xff] }
 0x31e   : > { %3908 = vst.msk [vmem:[#allocation2 + $0x190] sm:$0xff] %vm225_vm1, %v3876_v0  ;;  %v3846_v25 = vadd.f32 %v11271_v24, %v3712_v21  ;;  %9314 = vmatprep.mubr.msk.f32.mxu1 %vm225_vm1, %v11345_v22 }
 0x31f   : > { %v3879_v27 = vmax.f32 %v3847_v20, 0.0  ;;  %9315 = vmatmul.mubr.msk.f32.gmra.mrb[12].mxu1 %vm225_vm1, %v11351_v26 }
 0x320   : > { %v3878_v31 = vmax.f32 %v3846_v25, 0.0  ;;  %v9275_v32 = vpop.f32.mrb[18].mxu0  ;;  %v11363_v2 = vld [vmem:[#allocation2 + $0x168] sm:$0xff] }
 0x321   : > { %3911 = vst.msk [vmem:[#allocation2 + $0x1c8] sm:$0xff] %vm225_vm1, %v3879_v27  ;;  %v3849_v37 = vadd.f32 %v9275_v32, %v11271_v24  ;;  %v3722_v38 = vpop.f32.mrb[19].mxu0  ;;  %v11357_v41 = vld [vmem:[#allocation2 + $0x160] sm:$0xff] }
 0x322   : > { %3910 = vst.msk [vmem:[#allocation2 + $0x1c0] sm:$0xff] %vm225_vm1, %v3878_v31  ;;  %v3848_v42 = vadd.f32 %v11271_v24, %v3722_v38  ;;  %9317 = vmatprep.mubr.msk.f32.mxu1 %vm225_vm1, %v11357_v41 }
 0x323   : > { %v3881_v40 = vmax.f32 %v3849_v37, 0.0  ;;  %9318 = vmatmul.mubr.msk.f32.gmra.mrb[14].mxu1 %vm225_vm1, %v11363_v2 }
 0x324   : > { %v3880_v3 = vmax.f32 %v3848_v42, 0.0  ;;  %v9278_v39 = vpop.f32.mrb[20].mxu0  ;;  %v11375_v30 = vld [vmem:[#allocation2 + $0x198] sm:$0xff] }
 0x325   : > { %3913 = vst.msk [vmem:[#allocation2 + $0x1f8] sm:$0xff] %vm225_vm1, %v3881_v40  ;;  %v3851_v5 = vadd.f32 %v9278_v39, %v11271_v24  ;;  %v3732_v1 = vpop.f32.mrb[21].mxu0  ;;  %v11369_v4 = vld [vmem:[#allocation2 + $0x190] sm:$0xff] }
 0x326   : > { %3912 = vst.msk [vmem:[#allocation2 + $0x1f0] sm:$0xff] %vm225_vm1, %v3880_v3  ;;  %v3850_v28 = vadd.f32 %v11271_v24, %v3732_v1  ;;  %9320 = vmatprep.mubr.msk.f32.mxu1 %vm225_vm1, %v11369_v4  ;;  %v3926_v1 = vld [vmem:[#allocation2 + $0xf] sm:$0xff] }
 0x327   : > { %v3883_v33 = vmax.f32 %v3851_v5, 0.0  ;;  %9321 = vmatmul.mubr.msk.f32.gmra.mrb[16].mxu1 %vm225_vm1, %v11375_v30 }
 0x328   : > { %v3882_v34 = vmax.f32 %v3850_v28, 0.0  ;;  %v9281_v63 = vpop.f32.mrb[22].mxu0  ;;  %v11387_v9 = vld [vmem:[#allocation2 + $0x1c8] sm:$0xff] }
 0x329   : > { %3915 = vst.msk [vmem:[#allocation2 + $0x228] sm:$0xff] %vm225_vm1, %v3883_v33  ;;  %v3853_v29 = vadd.f32 %v9281_v63, %v11271_v24  ;;  %v3742_v7 = vpop.f32.mrb[23].mxu0  ;;  %v11381_v8 = vld [vmem:[#allocation2 + $0x1c0] sm:$0xff]  ;;  %v3927_v33 = vld [vmem:[#allocation2 + $0x17] sm:$0xff] }
 0x32a   : > { %3914 = vst.msk [vmem:[#allocation2 + $0x220] sm:$0xff] %vm225_vm1, %v3882_v34  ;;  %v3852_v10 = vadd.f32 %v11271_v24, %v3742_v7  ;;  %9323 = vmatprep.mubr.msk.f32.mxu1 %vm225_vm1, %v11381_v8  ;;  %v11461_v34 = vld [vmem:[%s12267_s3 + $0xc] sm:$0xf]  ;;  %v11464_v63 = vld [vmem:[#allocation2 + $0x3f] sm:$0xff] }
 0x32b   : > { %v3885_v11 = vmax.f32 %v3853_v29, 0.0  ;;  %9324 = vmatmul.mubr.msk.f32.gmra.mrb[18].mxu1 %vm225_vm1, %v11387_v9  ;;  %v11472_v29 = vld [vmem:[#allocation2 + $0x47] sm:$0xff]  ;;  %v11476_v7 = vld [vmem:[#allocation2 + $0x6f] sm:$0xff] }
 0x32c   : > { %v3884_v36 = vmax.f32 %v3852_v10, 0.0  ;;  %v9284_v44 = vpop.f32.mrb[24].mxu0  ;;  %v11399_v50 = vld [vmem:[#allocation2 + $0x1f8] sm:$0xff] }
 0x32d   : > { %3917 = vst.msk [vmem:[#allocation2 + $0x258] sm:$0xff] %vm225_vm1, %v3885_v11  ;;  %v3855_v45 = vadd.f32 %v9284_v44, %v11271_v24  ;;  %v3752_v46 = vpop.f32.mrb[25].mxu0  ;;  %v11393_v47 = vld [vmem:[#allocation2 + $0x1f0] sm:$0xff]  ;;  %v11488_v11 = vld [vmem:[#allocation2 + $0xa7] sm:$0xff] }
 0x32e   : > { %3916 = vst.msk [vmem:[#allocation2 + $0x250] sm:$0xff] %vm225_vm1, %v3884_v36  ;;  %v3854_v48 = vadd.f32 %v11271_v24, %v3752_v46  ;;  %9326 = vmatprep.mubr.msk.f32.mxu1 %vm225_vm1, %v11393_v47  ;;  %v11480_v10 = vld [vmem:[#allocation2 + $0x77] sm:$0xff]  ;;  %v11492_v36 = vld [vmem:[#allocation2 + $0xcf] sm:$0xff]  ;;  %v11504_v46 = vld [vmem:[#allocation2 + $0x107] sm:$0xff] }
 0x32f   : > { %v3887_v52 = vmax.f32 %v3855_v45, 0.0  ;;  %9327 = vmatmul.mubr.msk.f32.gmra.mrb[20].mxu1 %vm225_vm1, %v11399_v50  ;;  %v11496_v44 = vld [vmem:[#allocation2 + $0xd7] sm:$0xff]  ;;  %v11500_v45 = vld [vmem:[#allocation2 + $0xff] sm:$0xff] }
 0x330   : > { %v3886_v53 = vmax.f32 %v3854_v48, 0.0  ;;  %v9287_v54 = vpop.f32.mrb[26].mxu0  ;;  %v11411_v61 = vld [vmem:[#allocation2 + $0x228] sm:$0xff] }
 0x331   : > { %3919 = vst.msk [vmem:[#allocation2 + $0x288] sm:$0xff] %vm225_vm1, %v3887_v52  ;;  %v3857_v55 = vadd.f32 %v9287_v54, %v11271_v24  ;;  %v3762_v56 = vpop.f32.mrb[27].mxu0  ;;  %v11405_v58 = vld [vmem:[#allocation2 + $0x220] sm:$0xff]  ;;  %v11508_v48 = vld [vmem:[#allocation2 + $0x12f] sm:$0xff]  ;;  %v11512_v52 = vld [vmem:[#allocation2 + $0x137] sm:$0xff] }
 0x332   : > { %3918 = vst.msk [vmem:[#allocation2 + $0x280] sm:$0xff] %vm225_vm1, %v3886_v53  ;;  %v3856_v60 = vadd.f32 %v11271_v24, %v3762_v56  ;;  %9329 = vmatprep.mubr.msk.f32.mxu1 %vm225_vm1, %v11405_v58  ;;  %v11516_v53 = vld [vmem:[#allocation2 + $0x15f] sm:$0xff]  ;;  %v11520_v54 = vld [vmem:[#allocation2 + $0x167] sm:$0xff]  ;;  %v11528_v56 = vld [vmem:[#allocation2 + $0x197] sm:$0xff] }
 0x333   : > { %v3889_v13 = vmax.f32 %v3857_v55, 0.0  ;;  %9330 = vmatmul.mubr.msk.f32.gmra.mrb[22].mxu1 %vm225_vm1, %v11411_v61  ;;  %v11524_v55 = vld [vmem:[#allocation2 + $0x18f] sm:$0xff] }
 0x334   : > { %v3888_v14 = vmax.f32 %v3856_v60, 0.0  ;;  %v9290_v15 = vpop.f32.mrb[28].mxu0  ;;  %v11423_v20 = vld [vmem:[#allocation2 + $0x258] sm:$0xff] }
 0x335   : > { %3921 = vst.msk [vmem:[#allocation2 + $0x2b8] sm:$0xff] %vm225_vm1, %v3889_v13  ;;  %v3859_v17 = vadd.f32 %v9290_v15, %v11271_v24  ;;  %v3772_v19 = vpop.f32.mrb[29].mxu0  ;;  %v11417_v0 = vld [vmem:[#allocation2 + $0x250] sm:$0xff]  ;;  %v11532_v60 = vld [vmem:[#allocation2 + $0x1bf] sm:$0xff]  ;;  %v11536_v13 = vld [vmem:[#allocation2 + $0x1c7] sm:$0xff] }
 0x336   : > { %3920 = vst.msk [vmem:[#allocation2 + $0x2b0] sm:$0xff] %vm225_vm1, %v3888_v14  ;;  %v3858_v62 = vadd.f32 %v11271_v24, %v3772_v19  ;;  %9332 = vmatprep.mubr.msk.f32.mxu1 %vm225_vm1, %v11417_v0  ;;  %v11540_v14 = vld [vmem:[#allocation2 + $0x1ef] sm:$0xff]  ;;  %v11544_v15 = vld [vmem:[#allocation2 + $0x1f7] sm:$0xff]  ;;  %v11552_v19 = vld [vmem:[#allocation2 + $0x227] sm:$0xff] }
 0x337   : > { %v3891_v21 = vmax.f32 %v3859_v17, 0.0  ;;  %9333 = vmatmul.mubr.msk.f32.gmra.mrb[24].mxu1 %vm225_vm1, %v11423_v20  ;;  %v11548_v17 = vld [vmem:[#allocation2 + $0x21f] sm:$0xff] }
 0x338   : > { %v3890_v25 = vmax.f32 %v3858_v62, 0.0  ;;  %v9293_v27 = vpop.f32.mrb[30].mxu0  ;;  %v11435_v42 = vld [vmem:[#allocation2 + $0x288] sm:$0xff] }
 0x339   : > { %3923 = vst.msk [vmem:[#allocation2 + $0x2e8] sm:$0xff] %vm225_vm1, %v3891_v21  ;;  %v3861_v31 = vadd.f32 %v9293_v27, %v11271_v24  ;;  %v3782_v32 = vpop.f32.mrb[31].mxu0  ;;  %v11429_v37 = vld [vmem:[#allocation2 + $0x280] sm:$0xff]  ;;  %v11556_v62 = vld [vmem:[#allocation2 + $0x24f] sm:$0xff]  ;;  %v11560_v21 = vld [vmem:[#allocation2 + $0x257] sm:$0xff] }
 0x33a   : > { %3922 = vst.msk [vmem:[#allocation2 + $0x2e0] sm:$0xff] %vm225_vm1, %v3890_v25  ;;  %v3860_v38 = vadd.f32 %v11271_v24, %v3782_v32  ;;  %9335 = vmatprep.mubr.msk.f32.mxu1 %vm225_vm1, %v11429_v37  ;;  %v11564_v25 = vld [vmem:[#allocation2 + $0x27f] sm:$0xff]  ;;  %v11568_v27 = vld [vmem:[#allocation2 + $0x287] sm:$0xff] }
 0x33b   : > { %v3893_v40 = vmax.f32 %v3861_v31, 0.0  ;;  %9336 = vmatmul.mubr.msk.f32.gmra.mrb[26].mxu1 %vm225_vm1, %v11435_v42 }
 0x33c   : > { %v3892_v3 = vmax.f32 %v3860_v38, 0.0  ;;  %v11445_v24 = vld [vmem:[#allocation2 + $0x2b8] sm:$0xff] }
 0x33d   : > { %3925 = vst.msk [vmem:[#allocation2 + $0x318] sm:$0xff] %vm225_vm1, %v3893_v40  ;;  %v11440_v39 = vld [vmem:[#allocation2 + $0x2b0] sm:$0xff] }
 0x33e   : > { %3924 = vst.msk [vmem:[#allocation2 + $0x310] sm:$0xff] %vm225_vm1, %v3892_v3  ;;  %9338 = vmatprep.mubr.msk.f32.mxu1 %vm225_vm1, %v11440_v39  ;;  %v11572_v31 = vld [vmem:[#allocation2 + $0x2af] sm:$0xff]  ;;  %v11576_v32 = vld [vmem:[#allocation2 + $0x2b7] sm:$0xff] }
 0x33f   : > { %9339 = vmatmul.mubr.msk.f32.gmra.mrb[28].mxu1 %vm225_vm1, %v11445_v24  ;;  %v4641_v40 = vld [vmem:[#allocation2 + $0x11] sm:$0xff] }
 0x340   : > { %v11453_v28 = vld [vmem:[#allocation2 + $0x2e8] sm:$0xff] }
 0x341   : > { %v11449_v5 = vld [vmem:[#allocation2 + $0x2e0] sm:$0xff]  ;;  %12469 = vst [vmem:[#allocation8_spill] sm:$0xff] %v11453_v28 }
 0x342   : > { %12468 = vst [vmem:[#allocation7_spill] sm:$0xff] %v11449_v5  ;;  %9341 = vmatprep.mubr.msk.f32.mxu1 %vm225_vm1, %v11449_v5  ;;  %v11580_v38 = vld [vmem:[#allocation2 + $0x2df] sm:$0xff]  ;;  %v11584_v3 = vld [vmem:[#allocation2 + $0x2e7] sm:$0xff]  ;;  %v11607_v5 = vld [vmem:[#allocation2 + $0x71] sm:$0xff] }
 0x343   : > { %9342 = vmatmul.mubr.msk.f32.gmra.mrb[30].mxu1 %vm225_vm1, %v11453_v28  ;;  %v11595_v28 = vld [vmem:[#allocation2 + $0x41] sm:$0xff]  ;;  %12472 = vst [vmem:[#allocation26_spill] sm:$0xff] %v11607_v5 }
 0x344   : > { %9346 = vmatprep.mubr.msk.f32.mxu1 %vm225_vm1, %v3926_v1  ;;  %v4642_v1 = vld [vmem:[#allocation2 + $0x19] sm:$0xff]  ;;  %12470 = vst [vmem:[#allocation22_spill] sm:$0xff] %v11595_v28 }
 0x347   : > { %9347 = vmatmul.mubr.msk.f32.vlgmr.msra.gmra.mrb[0].mxu1 %vm225_vm1, %v3927_v33  ;;  %v11592_v33 = vld [vmem:[%s12267_s3 + $0x10] sm:$0xf] }
 0x348   : > { %9395 = vmatpush3.msk.msra.mxu1 %vm539_vm0, %v11264_v23  ;;  %9349 = vmatprep.mubr.msk.f32.mxu1 %vm225_vm1, %v11464_v63  ;;  %v11484_v23 = vld [vmem:[#allocation2 + $0x9f] sm:$0xff] }
 0x349   : > { %9444 = vmatprep.subr.msk.mxu1 %vm539_vm0, %v11461_v34 }
 0x34b   : > { %9350 = vmatmul.mubr.msk.f32.gmra.mrb[2].mxu1 %vm225_vm1, %v11472_v29 }
 0x34c   : > { %9352 = vmatprep.mubr.msk.f32.mxu1 %vm225_vm1, %v11476_v7 }
 0x34f   : > { %9353 = vmatmul.mubr.msk.f32.gmra.mrb[4].mxu1 %vm225_vm1, %v11480_v10 }
 0x350   : > { %9355 = vmatprep.mubr.msk.f32.mxu1 %vm225_vm1, %v11484_v23 }
 0x353   : > { %9356 = vmatmul.mubr.msk.f32.gmra.mrb[6].mxu1 %vm225_vm1, %v11488_v11 }
 0x354   : > { %9358 = vmatprep.mubr.msk.f32.mxu1 %vm225_vm1, %v11492_v36 }
 0x357   : > { %9359 = vmatmul.mubr.msk.f32.gmra.mrb[8].mxu1 %vm225_vm1, %v11496_v44 }
 0x358   : > { %9361 = vmatprep.mubr.msk.f32.mxu1 %vm225_vm1, %v11500_v45 }
 0x35b   : > { %9362 = vmatmul.mubr.msk.f32.gmra.mrb[10].mxu1 %vm225_vm1, %v11504_v46 }
 0x35c   : > { %9364 = vmatprep.mubr.msk.f32.mxu1 %vm225_vm1, %v11508_v48 }
 0x35f   : > { %9365 = vmatmul.mubr.msk.f32.gmra.mrb[12].mxu1 %vm225_vm1, %v11512_v52 }
 0x360   : > { %9367 = vmatprep.mubr.msk.f32.mxu1 %vm225_vm1, %v11516_v53 }
 0x363   : > { %9368 = vmatmul.mubr.msk.f32.gmra.mrb[14].mxu1 %vm225_vm1, %v11520_v54 }
 0x364   : > { %9370 = vmatprep.mubr.msk.f32.mxu1 %vm225_vm1, %v11524_v55 }
 0x367   : > { %9371 = vmatmul.mubr.msk.f32.gmra.mrb[16].mxu1 %vm225_vm1, %v11528_v56 }
 0x368   : > { %9373 = vmatprep.mubr.msk.f32.mxu1 %vm225_vm1, %v11532_v60 }
 0x36b   : > { %9374 = vmatmul.mubr.msk.f32.gmra.mrb[18].mxu1 %vm225_vm1, %v11536_v13 }
 0x36c   : > { %9376 = vmatprep.mubr.msk.f32.mxu1 %vm225_vm1, %v11540_v14 }
 0x36f   : > { %9377 = vmatmul.mubr.msk.f32.gmra.mrb[20].mxu1 %vm225_vm1, %v11544_v15 }
 0x370   : > { %9379 = vmatprep.mubr.msk.f32.mxu1 %vm225_vm1, %v11548_v17 }
 0x373   : > { %9380 = vmatmul.mubr.msk.f32.gmra.mrb[22].mxu1 %vm225_vm1, %v11552_v19 }
 0x374   : > { %9382 = vmatprep.mubr.msk.f32.mxu1 %vm225_vm1, %v11556_v62 }
 0x377   : > { %9383 = vmatmul.mubr.msk.f32.gmra.mrb[24].mxu1 %vm225_vm1, %v11560_v21 }
 0x378   : > { %9385 = vmatprep.mubr.msk.f32.mxu1 %vm225_vm1, %v11564_v25 }
 0x37b   : > { %9386 = vmatmul.mubr.msk.f32.gmra.mrb[26].mxu1 %vm225_vm1, %v11568_v27 }
 0x37c   : > { %9388 = vmatprep.mubr.msk.f32.mxu1 %vm225_vm1, %v11572_v31 }
 0x37f   : > { %9389 = vmatmul.mubr.msk.f32.gmra.mrb[28].mxu1 %vm225_vm1, %v11576_v32 }
 0x380   : > { %9391 = vmatprep.mubr.msk.f32.mxu1 %vm225_vm1, %v11580_v38 }
 0x383   : > { %9392 = vmatmul.mubr.msk.f32.gmra.mrb[30].mxu1 %vm225_vm1, %v11584_v3 }
 0x384   : > { %9396 = vmatprep.mubr.msk.f32.mxu1 %vm225_vm1, %v4641_v40  ;;  %v11603_v40 = vld [vmem:[#allocation2 + $0x49] sm:$0xff] }
 0x385   : > { %12471 = vst [vmem:[#allocation24_spill] sm:$0xff] %v11603_v40 }
 0x387   : > { %9397 = vmatmul.mubr.msk.f32.vlgmr.msra.gmra.mrb[0].mxu1 %vm225_vm1, %v4642_v1  ;;  %v11611_v1 = vld [vmem:[#allocation2 + $0x79] sm:$0xff] }
 0x388   : > { %9445 = vmatpush3.msk.msra.mxu1 %vm539_vm0, %v11461_v34  ;;  %9399 = vmatprep.mubr.msk.f32.mxu1 %vm225_vm1, %v11595_v28  ;;  %12473 = vst [vmem:[#allocation27_spill] sm:$0xff] %v11611_v1  ;;  %v11615_v34 = vld [vmem:[#allocation2 + $0xa1] sm:$0xff]  ;;  %v11619_v28 = vld [vmem:[#allocation2 + $0xa9] sm:$0xff] }
 0x389   : > { %9494 = vmatprep.subr.msk.mxu1 %vm539_vm0, %v11592_v33  ;;  %12474 = vst [vmem:[#allocation29_spill] sm:$0xff] %v11615_v34  ;;  %12475 = vst [vmem:[#allocation31_spill] sm:$0xff] %v11619_v28 }
 0x38b   : > { %9400 = vmatmul.mubr.msk.f32.gmra.mrb[2].mxu1 %vm225_vm1, %v11603_v40  ;;  %v11623_v40 = vld [vmem:[#allocation2 + $0xd1] sm:$0xff] }
 0x38c   : > { %9402 = vmatprep.mubr.msk.f32.mxu1 %vm225_vm1, %v11607_v5  ;;  %12476 = vst [vmem:[#allocation3_spill] sm:$0xff] %v11623_v40  ;;  %v11627_v5 = vld [vmem:[#allocation2 + $0xd9] sm:$0xff] }
 0x38d   : > { %12477 = vst [vmem:[#allocation4_spill] sm:$0xff] %v11627_v5 }
 0x38f   : > { %9403 = vmatmul.mubr.msk.f32.gmra.mrb[4].mxu1 %vm225_vm1, %v11611_v1  ;;  %v11631_v1 = vld [vmem:[#allocation2 + $0x101] sm:$0xff] }
 0x390   : > { %9405 = vmatprep.mubr.msk.f32.mxu1 %vm225_vm1, %v11615_v34  ;;  %12478 = vst [vmem:[#allocation5_spill] sm:$0xff] %v11631_v1  ;;  %v11635_v34 = vld [vmem:[#allocation2 + $0x109] sm:$0xff] }
 0x391   : > { %12479 = vst [vmem:[#allocation6_spill] sm:$0xff] %v11635_v34 }
 0x393   : > { %9406 = vmatmul.mubr.msk.f32.gmra.mrb[6].mxu1 %vm225_vm1, %v11619_v28  ;;  %v11639_v28 = vld [vmem:[#allocation2 + $0x131] sm:$0xff] }
 0x394   : > { %9408 = vmatprep.mubr.msk.f32.mxu1 %vm225_vm1, %v11623_v40  ;;  %12480 = vst [vmem:[#allocation33_spill] sm:$0xff] %v11639_v28  ;;  %v11643_v40 = vld [vmem:[#allocation2 + $0x139] sm:$0xff] }
 0x395   : > { %12481 = vst [vmem:[#allocation34_spill] sm:$0xff] %v11643_v40 }
 0x397   : > { %9409 = vmatmul.mubr.msk.f32.gmra.mrb[8].mxu1 %vm225_vm1, %v11627_v5  ;;  %v11647_v5 = vld [vmem:[#allocation2 + $0x161] sm:$0xff] }
 0x398   : > { %9411 = vmatprep.mubr.msk.f32.mxu1 %vm225_vm1, %v11631_v1  ;;  %12482 = vst [vmem:[#allocation9_spill] sm:$0xff] %v11647_v5  ;;  %v11651_v1 = vld [vmem:[#allocation2 + $0x169] sm:$0xff] }
 0x399   : > { %12483 = vst [vmem:[#allocation10_spill] sm:$0xff] %v11651_v1 }
 0x39b   : > { %9412 = vmatmul.mubr.msk.f32.gmra.mrb[10].mxu1 %vm225_vm1, %v11635_v34  ;;  %v11655_v34 = vld [vmem:[#allocation2 + $0x191] sm:$0xff] }
 0x39c   : > { %9414 = vmatprep.mubr.msk.f32.mxu1 %vm225_vm1, %v11639_v28  ;;  %12484 = vst [vmem:[#allocation11_spill] sm:$0xff] %v11655_v34  ;;  %v11659_v28 = vld [vmem:[#allocation2 + $0x199] sm:$0xff] }
 0x39d   : > { %12485 = vst [vmem:[#allocation12_spill] sm:$0xff] %v11659_v28 }
 0x39f   : > { %9415 = vmatmul.mubr.msk.f32.gmra.mrb[12].mxu1 %vm225_vm1, %v11643_v40  ;;  %v11663_v40 = vld [vmem:[#allocation2 + $0x1c1] sm:$0xff] }
 0x3a0   : > { %9417 = vmatprep.mubr.msk.f32.mxu1 %vm225_vm1, %v11647_v5  ;;  %12486 = vst [vmem:[#allocation13_spill] sm:$0xff] %v11663_v40  ;;  %v11667_v5 = vld [vmem:[#allocation2 + $0x1c9] sm:$0xff] }
 0x3a1   : > { %12487 = vst [vmem:[#allocation14_spill] sm:$0xff] %v11667_v5 }
 0x3a3   : > { %9418 = vmatmul.mubr.msk.f32.gmra.mrb[14].mxu1 %vm225_vm1, %v11651_v1  ;;  %v11671_v1 = vld [vmem:[#allocation2 + $0x1f1] sm:$0xff] }
 0x3a4   : > { %9420 = vmatprep.mubr.msk.f32.mxu1 %vm225_vm1, %v11655_v34  ;;  %12488 = vst [vmem:[#allocation15_spill] sm:$0xff] %v11671_v1  ;;  %v11675_v34 = vld [vmem:[#allocation2 + $0x1f9] sm:$0xff] }
 0x3a5   : > { %12489 = vst [vmem:[#allocation16_spill] sm:$0xff] %v11675_v34 }
 0x3a7   : > { %9421 = vmatmul.mubr.msk.f32.gmra.mrb[16].mxu1 %vm225_vm1, %v11659_v28  ;;  %v11679_v28 = vld [vmem:[#allocation2 + $0x221] sm:$0xff] }
 0x3a8   : > { %9423 = vmatprep.mubr.msk.f32.mxu1 %vm225_vm1, %v11663_v40  ;;  %12490 = vst [vmem:[#allocation17_spill] sm:$0xff] %v11679_v28  ;;  %v11683_v40 = vld [vmem:[#allocation2 + $0x229] sm:$0xff] }
 0x3a9   : > { %12491 = vst [vmem:[#allocation18_spill] sm:$0xff] %v11683_v40 }
 0x3ab   : > { %9424 = vmatmul.mubr.msk.f32.gmra.mrb[18].mxu1 %vm225_vm1, %v11667_v5  ;;  %v11687_v5 = vld [vmem:[#allocation2 + $0x251] sm:$0xff] }
 0x3ac   : > { %9426 = vmatprep.mubr.msk.f32.mxu1 %vm225_vm1, %v11671_v1  ;;  %12492 = vst [vmem:[#allocation19_spill] sm:$0xff] %v11687_v5  ;;  %v11691_v1 = vld [vmem:[#allocation2 + $0x259] sm:$0xff] }
 0x3ad   : > { %12493 = vst [vmem:[#allocation20_spill] sm:$0xff] %v11691_v1 }
 0x3af   : > { %9427 = vmatmul.mubr.msk.f32.gmra.mrb[20].mxu1 %vm225_vm1, %v11675_v34  ;;  %v11695_v34 = vld [vmem:[#allocation2 + $0x281] sm:$0xff] }
 0x3b0   : > { %9429 = vmatprep.mubr.msk.f32.mxu1 %vm225_vm1, %v11679_v28  ;;  %12494 = vst [vmem:[#allocation21_spill] sm:$0xff] %v11695_v34  ;;  %v11699_v28 = vld [vmem:[#allocation2 + $0x289] sm:$0xff] }
 0x3b3   : > { %9430 = vmatmul.mubr.msk.f32.gmra.mrb[22].mxu1 %vm225_vm1, %v11683_v40  ;;  %v11703_v40 = vld [vmem:[#allocation2 + $0x2b1] sm:$0xff] }
 0x3b4   : > { %9432 = vmatprep.mubr.msk.f32.mxu1 %vm225_vm1, %v11687_v5  ;;  %12495 = vst [vmem:[#allocation23_spill] sm:$0xff] %v11703_v40  ;;  %v11707_v5 = vld [vmem:[#allocation2 + $0x2b9] sm:$0xff] }
 0x3b7   : > { %9433 = vmatmul.mubr.msk.f32.gmra.mrb[24].mxu1 %vm225_vm1, %v11691_v1  ;;  %v11711_v1 = vld [vmem:[#allocation2 + $0x2e1] sm:$0xff] }
 0x3b8   : > { %9435 = vmatprep.mubr.msk.f32.mxu1 %vm225_vm1, %v11695_v34  ;;  %12496 = vst [vmem:[#allocation25_spill] sm:$0xff] %v11711_v1  ;;  %v11715_v34 = vld [vmem:[#allocation2 + $0x2e9] sm:$0xff] }
 0x3bb   : > { %9436 = vmatmul.mubr.msk.f32.gmra.mrb[26].mxu1 %vm225_vm1, %v11699_v28 }
 0x3bc   : > { %9438 = vmatprep.mubr.msk.f32.mxu1 %vm225_vm1, %v11703_v40  ;;  %v8109_v40 = vld [vmem:[%s12267_s3 + $0x14] sm:$0xf] }
 0x3bf   : > { %9439 = vmatmul.mubr.msk.f32.gmra.mrb[28].mxu1 %vm225_vm1, %v11707_v5 }
 0x3c0   : > { %9441 = vmatprep.mubr.msk.f32.mxu1 %vm225_vm1, %v11711_v1 }
 0x3c3   : > { %9442 = vmatmul.mubr.msk.f32.gmra.mrb[30].mxu1 %vm225_vm1, %v11715_v34 }
 0x3c4   : > { %9446 = vmatprep.mubr.msk.f32.mxu1 %vm225_vm1, %v11464_v63  ;;  %v11785_v63 = vld [vmem:[#allocation2 + $0x30f] sm:$0xff] }
 0x3c7   : > { %9447 = vmatmul.mubr.msk.f32.vlgmr.msra.gmra.mrb[0].mxu1 %vm225_vm1, %v11472_v29  ;;  %v11789_v29 = vld [vmem:[#allocation2 + $0x317] sm:$0xff] }
 0x3c8   : > { %9495 = vmatpush3.msk.msra.mxu1 %vm539_vm0, %v11592_v33  ;;  %9449 = vmatprep.mubr.msk.f32.mxu1 %vm225_vm1, %v11476_v7  ;;  %v8143_v33 = vld [vmem:[%s12267_s3 + $0x18] sm:$0xf] }
 0x3c9   : > { %9544 = vmatprep.subr.msk.mxu1 %vm539_vm0, %v8109_v40 }
 0x3cb   : > { %9450 = vmatmul.mubr.msk.f32.gmra.mrb[2].mxu1 %vm225_vm1, %v11480_v10 }
 0x3cc   : > { %9452 = vmatprep.mubr.msk.f32.mxu1 %vm225_vm1, %v11484_v23 }
 0x3cf   : > { %9453 = vmatmul.mubr.msk.f32.gmra.mrb[4].mxu1 %vm225_vm1, %v11488_v11 }
 0x3d0   : > { %9455 = vmatprep.mubr.msk.f32.mxu1 %vm225_vm1, %v11492_v36 }
 0x3d3   : > { %9456 = vmatmul.mubr.msk.f32.gmra.mrb[6].mxu1 %vm225_vm1, %v11496_v44 }
 0x3d4   : > { %9458 = vmatprep.mubr.msk.f32.mxu1 %vm225_vm1, %v11500_v45 }
 0x3d7   : > { %9459 = vmatmul.mubr.msk.f32.gmra.mrb[8].mxu1 %vm225_vm1, %v11504_v46 }
 0x3d8   : > { %9461 = vmatprep.mubr.msk.f32.mxu1 %vm225_vm1, %v11508_v48 }
 0x3db   : > { %9462 = vmatmul.mubr.msk.f32.gmra.mrb[10].mxu1 %vm225_vm1, %v11512_v52 }
 0x3dc   : > { %9464 = vmatprep.mubr.msk.f32.mxu1 %vm225_vm1, %v11516_v53 }
 0x3df   : > { %9465 = vmatmul.mubr.msk.f32.gmra.mrb[12].mxu1 %vm225_vm1, %v11520_v54 }
 0x3e0   : > { %9467 = vmatprep.mubr.msk.f32.mxu1 %vm225_vm1, %v11524_v55 }
 0x3e3   : > { %9468 = vmatmul.mubr.msk.f32.gmra.mrb[14].mxu1 %vm225_vm1, %v11528_v56 }
 0x3e4   : > { %9470 = vmatprep.mubr.msk.f32.mxu1 %vm225_vm1, %v11532_v60 }
 0x3e7   : > { %9471 = vmatmul.mubr.msk.f32.gmra.mrb[16].mxu1 %vm225_vm1, %v11536_v13 }
 0x3e8   : > { %9473 = vmatprep.mubr.msk.f32.mxu1 %vm225_vm1, %v11540_v14 }
 0x3eb   : > { %9474 = vmatmul.mubr.msk.f32.gmra.mrb[18].mxu1 %vm225_vm1, %v11544_v15 }
 0x3ec   : > { %9476 = vmatprep.mubr.msk.f32.mxu1 %vm225_vm1, %v11548_v17 }
 0x3ef   : > { %9477 = vmatmul.mubr.msk.f32.gmra.mrb[20].mxu1 %vm225_vm1, %v11552_v19 }
 0x3f0   : > { %9479 = vmatprep.mubr.msk.f32.mxu1 %vm225_vm1, %v11556_v62 }
 0x3f3   : > { %9480 = vmatmul.mubr.msk.f32.gmra.mrb[22].mxu1 %vm225_vm1, %v11560_v21 }
 0x3f4   : > { %9482 = vmatprep.mubr.msk.f32.mxu1 %vm225_vm1, %v11564_v25 }
 0x3f7   : > { %9483 = vmatmul.mubr.msk.f32.gmra.mrb[24].mxu1 %vm225_vm1, %v11568_v27 }
 0x3f8   : > { %9485 = vmatprep.mubr.msk.f32.mxu1 %vm225_vm1, %v11572_v31 }
 0x3fb   : > { %9486 = vmatmul.mubr.msk.f32.gmra.mrb[26].mxu1 %vm225_vm1, %v11576_v32 }
 0x3fc   : > { %9488 = vmatprep.mubr.msk.f32.mxu1 %vm225_vm1, %v11580_v38 }
 0x3ff   : > { %9489 = vmatmul.mubr.msk.f32.gmra.mrb[28].mxu1 %vm225_vm1, %v11584_v3 }
 0x400   : > { %9491 = vmatprep.mubr.msk.f32.mxu1 %vm225_vm1, %v11785_v63 }
 0x403   : > { %9492 = vmatmul.mubr.msk.f32.gmra.mrb[30].mxu1 %vm225_vm1, %v11789_v29 }
 0x404   : > { %9496 = vmatprep.mubr.msk.f32.mxu1 %vm225_vm1, %v11285_v35  ;;  %v12497_v35 = vld [vmem:[#allocation7_spill] sm:$0xff] }
 0x407   : > { %9497 = vmatmul.mubr.msk.f32.vlgmr.msra.gmra.mrb[0].mxu1 %vm225_vm1, %v11291_v6  ;;  %v12498_v6 = vld [vmem:[#allocation8_spill] sm:$0xff] }
 0x408   : > { %9545 = vmatpush3.msk.msra.mxu1 %vm539_vm0, %v8109_v40  ;;  %9499 = vmatprep.mubr.msk.f32.mxu1 %vm225_vm1, %v11297_v12  ;;  %v11858_v12 = vld [vmem:[#allocation2 + $0x310] sm:$0xff]  ;;  %v12506_v40 = vld [vmem:[#allocation4_spill] sm:$0xff] }
 0x409   : > { %9594 = vmatprep.subr.msk.mxu1 %vm539_vm0, %v8143_v33 }
 0x40b   : > { %9500 = vmatmul.mubr.msk.f32.gmra.mrb[2].mxu1 %vm225_vm1, %v11303_v43  ;;  %v11862_v43 = vld [vmem:[#allocation2 + $0x318] sm:$0xff] }
 0x40c   : > { %9502 = vmatprep.mubr.msk.f32.mxu1 %vm225_vm1, %v11309_v49  ;;  %v12499_v49 = vld [vmem:[#allocation22_spill] sm:$0xff] }
 0x40f   : > { %9503 = vmatmul.mubr.msk.f32.gmra.mrb[4].mxu1 %vm225_vm1, %v11315_v51  ;;  %v8177_v51 = vld [vmem:[%s12267_s3 + $0x1c] sm:$0xf] }
 0x410   : > { %9505 = vmatprep.mubr.msk.f32.mxu1 %vm225_vm1, %v11321_v57  ;;  %v12500_v57 = vld [vmem:[#allocation24_spill] sm:$0xff] }
 0x413   : > { %9506 = vmatmul.mubr.msk.f32.gmra.mrb[6].mxu1 %vm225_vm1, %v11327_v59  ;;  %v12501_v59 = vld [vmem:[#allocation26_spill] sm:$0xff] }
 0x414   : > { %9508 = vmatprep.mubr.msk.f32.mxu1 %vm225_vm1, %v11333_v16  ;;  %v12502_v16 = vld [vmem:[#allocation27_spill] sm:$0xff] }
 0x417   : > { %9509 = vmatmul.mubr.msk.f32.gmra.mrb[8].mxu1 %vm225_vm1, %v11339_v18  ;;  %v12503_v18 = vld [vmem:[#allocation29_spill] sm:$0xff] }
 0x418   : > { %9511 = vmatprep.mubr.msk.f32.mxu1 %vm225_vm1, %v11345_v22  ;;  %v12504_v22 = vld [vmem:[#allocation31_spill] sm:$0xff] }
 0x41b   : > { %9512 = vmatmul.mubr.msk.f32.gmra.mrb[10].mxu1 %vm225_vm1, %v11351_v26  ;;  %v12505_v26 = vld [vmem:[#allocation3_spill] sm:$0xff] }
 0x41c   : > { %9514 = vmatprep.mubr.msk.f32.mxu1 %vm225_vm1, %v11357_v41 }
 0x41f   : > { %9515 = vmatmul.mubr.msk.f32.gmra.mrb[12].mxu1 %vm225_vm1, %v11363_v2 }
 0x420   : > { %9517 = vmatprep.mubr.msk.f32.mxu1 %vm225_vm1, %v11369_v4 }
 0x423   : > { %9518 = vmatmul.mubr.msk.f32.gmra.mrb[14].mxu1 %vm225_vm1, %v11375_v30 }
 0x424   : > { %9520 = vmatprep.mubr.msk.f32.mxu1 %vm225_vm1, %v11381_v8 }
 0x427   : > { %9521 = vmatmul.mubr.msk.f32.gmra.mrb[16].mxu1 %vm225_vm1, %v11387_v9 }
 0x428   : > { %9523 = vmatprep.mubr.msk.f32.mxu1 %vm225_vm1, %v11393_v47 }
 0x42b   : > { %9524 = vmatmul.mubr.msk.f32.gmra.mrb[18].mxu1 %vm225_vm1, %v11399_v50 }
 0x42c   : > { %9526 = vmatprep.mubr.msk.f32.mxu1 %vm225_vm1, %v11405_v58 }
 0x42f   : > { %9527 = vmatmul.mubr.msk.f32.gmra.mrb[20].mxu1 %vm225_vm1, %v11411_v61 }
 0x430   : > { %9529 = vmatprep.mubr.msk.f32.mxu1 %vm225_vm1, %v11417_v0 }
 0x433   : > { %9530 = vmatmul.mubr.msk.f32.gmra.mrb[22].mxu1 %vm225_vm1, %v11423_v20 }
 0x434   : > { %9532 = vmatprep.mubr.msk.f32.mxu1 %vm225_vm1, %v11429_v37 }
 0x437   : > { %9533 = vmatmul.mubr.msk.f32.gmra.mrb[24].mxu1 %vm225_vm1, %v11435_v42 }
 0x438   : > { %9535 = vmatprep.mubr.msk.f32.mxu1 %vm225_vm1, %v11440_v39 }
 0x43b   : > { %9536 = vmatmul.mubr.msk.f32.gmra.mrb[26].mxu1 %vm225_vm1, %v11445_v24 }
 0x43c   : > { %9538 = vmatprep.mubr.msk.f32.mxu1 %vm225_vm1, %v12497_v35 }
 0x43f   : > { %9539 = vmatmul.mubr.msk.f32.gmra.mrb[28].mxu1 %vm225_vm1, %v12498_v6 }
 0x440   : > { %9541 = vmatprep.mubr.msk.f32.mxu1 %vm225_vm1, %v11858_v12 }
 0x443   : > { %9542 = vmatmul.mubr.msk.f32.gmra.mrb[30].mxu1 %vm225_vm1, %v11862_v43 }
 0x444   : > { %9546 = vmatprep.mubr.msk.f32.mxu1 %vm225_vm1, %v12499_v49  ;;  %v12508_v49 = vld [vmem:[#allocation6_spill] sm:$0xff] }
 0x447   : > { %9547 = vmatmul.mubr.msk.f32.vlgmr.msra.gmra.mrb[0].mxu1 %vm225_vm1, %v12500_v57  ;;  %v12509_v57 = vld [vmem:[#allocation33_spill] sm:$0xff] }
 0x448   : > { %9595 = vmatpush3.msk.msra.mxu1 %vm539_vm0, %v8143_v33  ;;  %9549 = vmatprep.mubr.msk.f32.mxu1 %vm225_vm1, %v12501_v59  ;;  %v12507_v33 = vld [vmem:[#allocation5_spill] sm:$0xff] }
 0x449   : > { %9644 = vmatprep.subr.msk.mxu1 %vm539_vm0, %v8177_v51 }
 0x44b   : > { %9550 = vmatmul.mubr.msk.f32.gmra.mrb[2].mxu1 %vm225_vm1, %v12502_v16  ;;  %v12510_v16 = vld [vmem:[#allocation34_spill] sm:$0xff] }
 0x44c   : > { %9552 = vmatprep.mubr.msk.f32.mxu1 %vm225_vm1, %v12503_v18  ;;  %v12511_v18 = vld [vmem:[#allocation9_spill] sm:$0xff] }
 0x44f   : > { %9553 = vmatmul.mubr.msk.f32.gmra.mrb[4].mxu1 %vm225_vm1, %v12504_v22  ;;  %v12512_v22 = vld [vmem:[#allocation10_spill] sm:$0xff] }
 0x450   : > { %9555 = vmatprep.mubr.msk.f32.mxu1 %vm225_vm1, %v12505_v26  ;;  %v12513_v26 = vld [vmem:[#allocation11_spill] sm:$0xff] }
 0x453   : > { %9556 = vmatmul.mubr.msk.f32.gmra.mrb[6].mxu1 %vm225_vm1, %v12506_v40  ;;  %v12514_v40 = vld [vmem:[#allocation12_spill] sm:$0xff] }
 0x454   : > { %9558 = vmatprep.mubr.msk.f32.mxu1 %vm225_vm1, %v12507_v33  ;;  %v12515_v33 = vld [vmem:[#allocation13_spill] sm:$0xff] }
 0x457   : > { %9559 = vmatmul.mubr.msk.f32.gmra.mrb[8].mxu1 %vm225_vm1, %v12508_v49  ;;  %v12516_v49 = vld [vmem:[#allocation14_spill] sm:$0xff] }
 0x458   : > { %9561 = vmatprep.mubr.msk.f32.mxu1 %vm225_vm1, %v12509_v57  ;;  %v12517_v57 = vld [vmem:[#allocation15_spill] sm:$0xff] }
 0x45b   : > { %9562 = vmatmul.mubr.msk.f32.gmra.mrb[10].mxu1 %vm225_vm1, %v12510_v16  ;;  %v12518_v16 = vld [vmem:[#allocation16_spill] sm:$0xff] }
 0x45c   : > { %9564 = vmatprep.mubr.msk.f32.mxu1 %vm225_vm1, %v12511_v18  ;;  %v12519_v18 = vld [vmem:[#allocation17_spill] sm:$0xff] }
 0x45f   : > { %9565 = vmatmul.mubr.msk.f32.gmra.mrb[12].mxu1 %vm225_vm1, %v12512_v22  ;;  %v12520_v22 = vld [vmem:[#allocation18_spill] sm:$0xff] }
 0x460   : > { %9567 = vmatprep.mubr.msk.f32.mxu1 %vm225_vm1, %v12513_v26  ;;  %v12521_v26 = vld [vmem:[#allocation19_spill] sm:$0xff] }
 0x463   : > { %9568 = vmatmul.mubr.msk.f32.gmra.mrb[14].mxu1 %vm225_vm1, %v12514_v40  ;;  %v12522_v40 = vld [vmem:[#allocation20_spill] sm:$0xff] }
 0x464   : > { %9570 = vmatprep.mubr.msk.f32.mxu1 %vm225_vm1, %v12515_v33  ;;  %v12523_v33 = vld [vmem:[#allocation21_spill] sm:$0xff] }
 0x467   : > { %9571 = vmatmul.mubr.msk.f32.gmra.mrb[16].mxu1 %vm225_vm1, %v12516_v49 }
 0x468   : > { %9573 = vmatprep.mubr.msk.f32.mxu1 %vm225_vm1, %v12517_v57  ;;  %v12524_v57 = vld [vmem:[#allocation23_spill] sm:$0xff] }
 0x46b   : > { %9574 = vmatmul.mubr.msk.f32.gmra.mrb[18].mxu1 %vm225_vm1, %v12518_v16 }
 0x46c   : > { %9576 = vmatprep.mubr.msk.f32.mxu1 %vm225_vm1, %v12519_v18 }
 0x46f   : > { %9577 = vmatmul.mubr.msk.f32.gmra.mrb[20].mxu1 %vm225_vm1, %v12520_v22 }
 0x470   : > { %9579 = vmatprep.mubr.msk.f32.mxu1 %vm225_vm1, %v12521_v26  ;;  %v11931_v26 = vld [vmem:[#allocation2 + $0x311] sm:$0xff] }
 0x473   : > { %9580 = vmatmul.mubr.msk.f32.gmra.mrb[22].mxu1 %vm225_vm1, %v12522_v40 }
 0x474   : > { %9582 = vmatprep.mubr.msk.f32.mxu1 %vm225_vm1, %v12523_v33  ;;  %v11935_v33 = vld [vmem:[#allocation2 + $0x319] sm:$0xff] }
 0x477   : > { %9583 = vmatmul.mubr.msk.f32.gmra.mrb[24].mxu1 %vm225_vm1, %v11699_v28 }
 0x478   : > { %9585 = vmatprep.mubr.msk.f32.mxu1 %vm225_vm1, %v12524_v57 }
 0x47b   : > { %9586 = vmatmul.mubr.msk.f32.gmra.mrb[26].mxu1 %vm225_vm1, %v11707_v5 }
 0x47c   : > { %9588 = vmatprep.mubr.msk.f32.mxu1 %vm225_vm1, %v11711_v1  ;;  %v8211_v1 = vld [vmem:[%s12267_s3 + $0x20] sm:$0xf] }
 0x47f   : > { %9589 = vmatmul.mubr.msk.f32.gmra.mrb[28].mxu1 %vm225_vm1, %v11715_v34 }
 0x480   : > { %9591 = vmatprep.mubr.msk.f32.mxu1 %vm225_vm1, %v11931_v26 }
 0x483   : > { %9592 = vmatmul.mubr.msk.f32.gmra.mrb[30].mxu1 %vm225_vm1, %v11935_v33 }
 0x484   : > { %9596 = vmatprep.mubr.msk.f32.mxu1 %vm225_vm1, %v11476_v7  ;;  %v6231_v7 = vld [vmem:[#allocation2 + $0x33f] sm:$0xff] }
 0x487   : > { %9597 = vmatmul.mubr.msk.f32.vlgmr.msra.gmra.mrb[0].mxu1 %vm225_vm1, %v11480_v10  ;;  %v6232_v10 = vld [vmem:[#allocation2 + $0x347] sm:$0xff] }
 0x488   : > { %9645 = vmatpush3.msk.msra.mxu1 %vm539_vm0, %v8177_v51  ;;  %9599 = vmatprep.mubr.msk.f32.mxu1 %vm225_vm1, %v11484_v23  ;;  %v6591_v23 = vld [vmem:[#allocation2 + $0x70] sm:$0xff] }
 0x489   : > { %9694 = vmatprep.subr.msk.mxu1 %vm539_vm0, %v8211_v1 }
 0x48b   : > { %9600 = vmatmul.mubr.msk.f32.gmra.mrb[2].mxu1 %vm225_vm1, %v11488_v11  ;;  %v6592_v11 = vld [vmem:[#allocation2 + $0x78] sm:$0xff] }
 0x48c   : > { %9602 = vmatprep.mubr.msk.f32.mxu1 %vm225_vm1, %v11492_v36  ;;  %v6593_v36 = vld [vmem:[#allocation2 + $0xa0] sm:$0xff] }
 0x48f   : > { %9603 = vmatmul.mubr.msk.f32.gmra.mrb[4].mxu1 %vm225_vm1, %v11496_v44  ;;  %v6594_v44 = vld [vmem:[#allocation2 + $0xa8] sm:$0xff] }
 0x490   : > { %9605 = vmatprep.mubr.msk.f32.mxu1 %vm225_vm1, %v11500_v45  ;;  %v6595_v45 = vld [vmem:[#allocation2 + $0xd0] sm:$0xff] }
 0x493   : > { %9606 = vmatmul.mubr.msk.f32.gmra.mrb[6].mxu1 %vm225_vm1, %v11504_v46  ;;  %v6596_v46 = vld [vmem:[#allocation2 + $0xd8] sm:$0xff] }
 0x494   : > { %9608 = vmatprep.mubr.msk.f32.mxu1 %vm225_vm1, %v11508_v48  ;;  %v6597_v48 = vld [vmem:[#allocation2 + $0x100] sm:$0xff] }
 0x497   : > { %9609 = vmatmul.mubr.msk.f32.gmra.mrb[8].mxu1 %vm225_vm1, %v11512_v52  ;;  %v6598_v52 = vld [vmem:[#allocation2 + $0x108] sm:$0xff] }
 0x498   : > { %9611 = vmatprep.mubr.msk.f32.mxu1 %vm225_vm1, %v11516_v53  ;;  %v6599_v53 = vld [vmem:[#allocation2 + $0x130] sm:$0xff] }
 0x49b   : > { %9612 = vmatmul.mubr.msk.f32.gmra.mrb[10].mxu1 %vm225_vm1, %v11520_v54  ;;  %v6600_v54 = vld [vmem:[#allocation2 + $0x138] sm:$0xff] }
 0x49c   : > { %9614 = vmatprep.mubr.msk.f32.mxu1 %vm225_vm1, %v11524_v55  ;;  %v12539_v55 = vld [vmem:[#allocation15_spill] sm:$0xff] }
 0x49f   : > { %9615 = vmatmul.mubr.msk.f32.gmra.mrb[12].mxu1 %vm225_vm1, %v11528_v56  ;;  %v12540_v56 = vld [vmem:[#allocation19_spill] sm:$0xff] }
 0x4a0   : > { %9617 = vmatprep.mubr.msk.f32.mxu1 %vm225_vm1, %v11532_v60  ;;  %v12541_v60 = vld [vmem:[#allocation21_spill] sm:$0xff] }
 0x4a3   : > { %9618 = vmatmul.mubr.msk.f32.gmra.mrb[14].mxu1 %vm225_vm1, %v11536_v13  ;;  %v12542_v13 = vld [vmem:[#allocation25_spill] sm:$0xff] }
 0x4a4   : > { %9620 = vmatprep.mubr.msk.f32.mxu1 %vm225_vm1, %v11540_v14  ;;  %v7011_v14 = vld [vmem:[#allocation2 + $0x341] sm:$0xff] }
 0x4a7   : > { %9621 = vmatmul.mubr.msk.f32.gmra.mrb[16].mxu1 %vm225_vm1, %v11544_v15 }
 0x4a8   : > { %9623 = vmatprep.mubr.msk.f32.mxu1 %vm225_vm1, %v11548_v17 }
 0x4ab   : > { %9624 = vmatmul.mubr.msk.f32.gmra.mrb[18].mxu1 %vm225_vm1, %v11552_v19 }
 0x4ac   : > { %9626 = vmatprep.mubr.msk.f32.mxu1 %vm225_vm1, %v11556_v62  ;;  %v7443_v62 = vld [vmem:[%s10383_s28 + $0x8] sm:$0xff] }
 0x4af   : > { %9627 = vmatmul.mubr.msk.f32.gmra.mrb[20].mxu1 %vm225_vm1, %v11560_v21 }
 0x4b0   : > { %9629 = vmatprep.mubr.msk.f32.mxu1 %vm225_vm1, %v11564_v25 }
 0x4b3   : > { %9630 = vmatmul.mubr.msk.f32.gmra.mrb[22].mxu1 %vm225_vm1, %v11568_v27  ;;  %v7442_v27 = vld [vmem:[%s10383_s28] sm:$0xff] }
 0x4b4   : > { %9632 = vmatprep.mubr.msk.f32.mxu1 %vm225_vm1, %v11572_v31 }
 0x4b7   : > { %9633 = vmatmul.mubr.msk.f32.gmra.mrb[24].mxu1 %vm225_vm1, %v11576_v32 }
 0x4b8   : > { %9635 = vmatprep.mubr.msk.f32.mxu1 %vm225_vm1, %v11580_v38 }
 0x4bb   : > { %9636 = vmatmul.mubr.msk.f32.gmra.mrb[26].mxu1 %vm225_vm1, %v11584_v3 }
 0x4bc   : > { %9638 = vmatprep.mubr.msk.f32.mxu1 %vm225_vm1, %v11785_v63  ;;  %v7445_v63 = vld [vmem:[%s10383_s28 + $0x18] sm:$0xff] }
 0x4bf   : > { %9639 = vmatmul.mubr.msk.f32.gmra.mrb[28].mxu1 %vm225_vm1, %v11789_v29 }
 0x4c0   : > { %9641 = vmatprep.mubr.msk.f32.mxu1 %vm225_vm1, %v6231_v7  ;;  %v7446_v7 = vld [vmem:[%s10383_s28 + $0x20] sm:$0xff] }
 0x4c3   : > { %9642 = vmatmul.mubr.msk.f32.gmra.mrb[30].mxu1 %vm225_vm1, %v6232_v10 }
 0x4c4   : > { %9646 = vmatprep.mubr.msk.f32.mxu1 %vm225_vm1, %v6591_v23 }
 0x4c7   : > { %9647 = vmatmul.mubr.msk.f32.vlgmr.msra.gmra.mrb[0].mxu1 %vm225_vm1, %v6592_v11 }
 0x4c8   : > { %9695 = vmatpush3.msk.msra.mxu1 %vm539_vm0, %v8211_v1  ;;  %9649 = vmatprep.mubr.msk.f32.mxu1 %vm225_vm1, %v6593_v36 }
 0x4cb   : > { %9650 = vmatmul.mubr.msk.f32.gmra.mrb[2].mxu1 %vm225_vm1, %v6594_v44 }
 0x4cc   : > { %9652 = vmatprep.mubr.msk.f32.mxu1 %vm225_vm1, %v6595_v45 }
 0x4cf   : > { %9653 = vmatmul.mubr.msk.f32.gmra.mrb[4].mxu1 %vm225_vm1, %v6596_v46 }
 0x4d0   : > { %9655 = vmatprep.mubr.msk.f32.mxu1 %vm225_vm1, %v6597_v48  ;;  %v7449_v48 = vld [vmem:[%s10383_s28 + $0x38] sm:$0xff] }
 0x4d3   : > { %9656 = vmatmul.mubr.msk.f32.gmra.mrb[6].mxu1 %vm225_vm1, %v6598_v52 }
 0x4d4   : > { %9658 = vmatprep.mubr.msk.f32.mxu1 %vm225_vm1, %v6599_v53 }
 0x4d7   : > { %9659 = vmatmul.mubr.msk.f32.gmra.mrb[8].mxu1 %vm225_vm1, %v6600_v54 }
 0x4d8   : > { %9661 = vmatprep.mubr.msk.f32.mxu1 %vm225_vm1, %v11357_v41  ;;  %v6621_v41 = vld [vmem:[#allocation2 + $0x340] sm:$0xff] }
 0x4db   : > { %9662 = vmatmul.mubr.msk.f32.gmra.mrb[10].mxu1 %vm225_vm1, %v11363_v2  ;;  %v6622_v2 = vld [vmem:[#allocation2 + $0x348] sm:$0xff] }
 0x4dc   : > { %9664 = vmatprep.mubr.msk.f32.mxu1 %vm225_vm1, %v11369_v4  ;;  %v12525_v4 = vld [vmem:[#allocation27_spill] sm:$0xff] }
 0x4df   : > { %9665 = vmatmul.mubr.msk.f32.gmra.mrb[12].mxu1 %vm225_vm1, %v11375_v30  ;;  %v12526_v30 = vld [vmem:[#allocation29_spill] sm:$0xff] }
 0x4e0   : > { %9667 = vmatprep.mubr.msk.f32.mxu1 %vm225_vm1, %v11381_v8  ;;  %v12527_v8 = vld [vmem:[#allocation31_spill] sm:$0xff] }
 0x4e3   : > { %9668 = vmatmul.mubr.msk.f32.gmra.mrb[14].mxu1 %vm225_vm1, %v11387_v9  ;;  %v12528_v9 = vld [vmem:[#allocation3_spill] sm:$0xff] }
 0x4e4   : > { %9670 = vmatprep.mubr.msk.f32.mxu1 %vm225_vm1, %v11393_v47  ;;  %v12529_v47 = vld [vmem:[#allocation4_spill] sm:$0xff] }
 0x4e7   : > { %9671 = vmatmul.mubr.msk.f32.gmra.mrb[16].mxu1 %vm225_vm1, %v11399_v50  ;;  %v12530_v50 = vld [vmem:[#allocation5_spill] sm:$0xff] }
 0x4e8   : > { %9673 = vmatprep.mubr.msk.f32.mxu1 %vm225_vm1, %v11405_v58  ;;  %v12531_v58 = vld [vmem:[#allocation6_spill] sm:$0xff] }
 0x4eb   : > { %9674 = vmatmul.mubr.msk.f32.gmra.mrb[18].mxu1 %vm225_vm1, %v11411_v61  ;;  %v12532_v61 = vld [vmem:[#allocation33_spill] sm:$0xff] }
 0x4ec   : > { %9676 = vmatprep.mubr.msk.f32.mxu1 %vm225_vm1, %v11417_v0  ;;  %v12533_v0 = vld [vmem:[#allocation34_spill] sm:$0xff] }
 0x4ef   : > { %9677 = vmatmul.mubr.msk.f32.gmra.mrb[20].mxu1 %vm225_vm1, %v11423_v20  ;;  %v12534_v20 = vld [vmem:[#allocation9_spill] sm:$0xff] }
 0x4f0   : > { %9679 = vmatprep.mubr.msk.f32.mxu1 %vm225_vm1, %v11429_v37  ;;  %v12535_v37 = vld [vmem:[#allocation10_spill] sm:$0xff] }
 0x4f3   : > { %9680 = vmatmul.mubr.msk.f32.gmra.mrb[22].mxu1 %vm225_vm1, %v11435_v42  ;;  %v12536_v42 = vld [vmem:[#allocation11_spill] sm:$0xff] }
 0x4f4   : > { %9682 = vmatprep.mubr.msk.f32.mxu1 %vm225_vm1, %v11440_v39  ;;  %v12537_v39 = vld [vmem:[#allocation12_spill] sm:$0xff] }
 0x4f7   : > { %9683 = vmatmul.mubr.msk.f32.gmra.mrb[24].mxu1 %vm225_vm1, %v11445_v24  ;;  %v12538_v24 = vld [vmem:[#allocation13_spill] sm:$0xff] }
 0x4f8   : > { %9685 = vmatprep.mubr.msk.f32.mxu1 %vm225_vm1, %v12497_v35 }
 0x4fb   : > { %9686 = vmatmul.mubr.msk.f32.gmra.mrb[26].mxu1 %vm225_vm1, %v12498_v6 }
 0x4fc   : > { %9688 = vmatprep.mubr.msk.f32.mxu1 %vm225_vm1, %v11858_v12  ;;  %v7444_v12 = vld [vmem:[%s10383_s28 + $0x10] sm:$0xff] }
 0x4ff   : > { %9689 = vmatmul.mubr.msk.f32.gmra.mrb[28].mxu1 %vm225_vm1, %v11862_v43 }
 0x500   : > { %9691 = vmatprep.mubr.msk.f32.mxu1 %vm225_vm1, %v6621_v41  ;;  %v7448_v41 = vld [vmem:[%s10383_s28 + $0x30] sm:$0xff] }
 0x503   : > { %9692 = vmatmul.mubr.msk.f32.gmra.mrb[30].mxu1 %vm225_vm1, %v6622_v2 }
 0x504   : > { %9696 = vmatprep.mubr.msk.f32.mxu1 %vm225_vm1, %v12501_v59 }
 0x507   : > { %9697 = vmatmul.mubr.msk.f32.vlgmr.msra.gmra.mrb[0].mxu1 %vm225_vm1, %v12525_v4 }
 0x508   : > { %9699 = vmatprep.mubr.msk.f32.mxu1 %vm225_vm1, %v12526_v30 }
 0x50b   : > { %9700 = vmatmul.mubr.msk.f32.gmra.mrb[2].mxu1 %vm225_vm1, %v12527_v8 }
 0x50c   : > { %9702 = vmatprep.mubr.msk.f32.mxu1 %vm225_vm1, %v12528_v9 }
 0x50f   : > { %9703 = vmatmul.mubr.msk.f32.gmra.mrb[4].mxu1 %vm225_vm1, %v12529_v47 }
 0x510   : > { %9705 = vmatprep.mubr.msk.f32.mxu1 %vm225_vm1, %v12530_v50 }
 0x513   : > { %9706 = vmatmul.mubr.msk.f32.gmra.mrb[6].mxu1 %vm225_vm1, %v12531_v58  ;;  %v7451_v58 = vld [vmem:[%s10383_s28 + $0x48] sm:$0xff] }
 0x514   : > { %9708 = vmatprep.mubr.msk.f32.mxu1 %vm225_vm1, %v12532_v61 }
 0x517   : > { %9709 = vmatmul.mubr.msk.f32.gmra.mrb[8].mxu1 %vm225_vm1, %v12533_v0 }
 0x518   : > { %9711 = vmatprep.mubr.msk.f32.mxu1 %vm225_vm1, %v12534_v20 }
 0x51b   : > { %9712 = vmatmul.mubr.msk.f32.gmra.mrb[10].mxu1 %vm225_vm1, %v12535_v37  ;;  %v7450_v37 = vld [vmem:[%s10383_s28 + $0x40] sm:$0xff] }
 0x51c   : > { %9714 = vmatprep.mubr.msk.f32.mxu1 %vm225_vm1, %v12536_v42 }
 0x51f   : > { %9715 = vmatmul.mubr.msk.f32.gmra.mrb[12].mxu1 %vm225_vm1, %v12537_v39 }
 0x520   : > { %9717 = vmatprep.mubr.msk.f32.mxu1 %vm225_vm1, %v12538_v24 }
 0x523   : > { %9718 = vmatmul.mubr.msk.f32.gmra.mrb[14].mxu1 %vm225_vm1, %v12516_v49 }
 0x524   : > { %9720 = vmatprep.mubr.msk.f32.mxu1 %vm225_vm1, %v12539_v55 }
 0x527   : > { %9721 = vmatmul.mubr.msk.f32.gmra.mrb[16].mxu1 %vm225_vm1, %v12518_v16 }
 0x528   : > { %9723 = vmatprep.mubr.msk.f32.mxu1 %vm225_vm1, %v12519_v18 }
 0x52b   : > { %9724 = vmatmul.mubr.msk.f32.gmra.mrb[18].mxu1 %vm225_vm1, %v12520_v22 }
 0x52c   : > { %9726 = vmatprep.mubr.msk.f32.mxu1 %vm225_vm1, %v12540_v56 }
 0x52f   : > { %9727 = vmatmul.mubr.msk.f32.gmra.mrb[20].mxu1 %vm225_vm1, %v12522_v40  ;;  %v7447_v40 = vld [vmem:[%s10383_s28 + $0x28] sm:$0xff] }
 0x530   : > { %9729 = vmatprep.mubr.msk.f32.mxu1 %vm225_vm1, %v12541_v60 }
 0x533   : > { %9730 = vmatmul.mubr.msk.f32.gmra.mrb[22].mxu1 %vm225_vm1, %v11699_v28  ;;  %v7012_v28 = vld [vmem:[#allocation2 + $0x349] sm:$0xff] }
 0x534   : > { %9732 = vmatprep.mubr.msk.f32.mxu1 %vm225_vm1, %v12524_v57 }
 0x537   : > { %9733 = vmatmul.mubr.msk.f32.gmra.mrb[24].mxu1 %vm225_vm1, %v11707_v5  ;;  %v12124_v5 = vld [vmem:[%s12268_s4] ss:$0 sm:$0xff] }
 0x538   : > { %9735 = vmatprep.mubr.msk.f32.mxu1 %vm225_vm1, %v12542_v13 }
 0x53b   : > { %9736 = vmatmul.mubr.msk.f32.gmra.mrb[26].mxu1 %vm225_vm1, %v11715_v34 }
 0x53c   : > { %9738 = vmatprep.mubr.msk.f32.mxu1 %vm225_vm1, %v11931_v26 }
 0x53f   : > { %9739 = vmatmul.mubr.msk.f32.gmra.mrb[28].mxu1 %vm225_vm1, %v11935_v33 }
 0x540   : > { %9741 = vmatprep.mubr.msk.f32.mxu1 %vm225_vm1, %v7011_v14  ;;  %v7453_v14 = vld [vmem:[%s10383_s28 + $0x58] sm:$0xff] }
 0x543   : > { %9742 = vmatmul.mubr.msk.f32.gmra.mrb[30].mxu1 %vm225_vm1, %v7012_v28 }
 0x5da   : > { %v9698_v15 = vpop.f32.mrb[0].mxu1 }
 0x5db   : > { %v7379_v17 = vadd.f32 %v9698_v15, %v12124_v5  ;;  %v7180_v19 = vpop.f32.mrb[1].mxu1 }
 0x5dc   : > { %v7378_v21 = vadd.f32 %v12124_v5, %v7180_v19  ;;  %v7452_v19 = vld [vmem:[%s10383_s28 + $0x50] sm:$0xff] }
 0x5dd   : > { %v7411_v25 = vmax.f32 %v7379_v17, 0.0 }
 0x5de   : > { %v7410_v31 = vmax.f32 %v7378_v21, 0.0  ;;  %v9701_v32 = vpop.f32.mrb[2].mxu1 }
 0x5df   : > { %v7475_v38 = vadd.f32 %v7443_v62, %v7411_v25  ;;  %v7381_v3 = vadd.f32 %v9701_v32, %v12124_v5  ;;  %v7190_v1 = vpop.f32.mrb[3].mxu1 }
 0x5e0   : > { %v7474_v34 = vadd.f32 %v7442_v27, %v7410_v31  ;;  %v7380_v29 = vadd.f32 %v12124_v5, %v7190_v1 }
 0x5e1   : > { %v7507_v35 = vmax.f32 %v7475_v38, 0.0  ;;  %v7413_v6 = vmax.f32 %v7381_v3, 0.0  ;;  %v7455_v3 = vld [vmem:[%s10383_s28 + $0x68] sm:$0xff] }
 0x5e2   : > { %v7506_v43 = vmax.f32 %v7474_v34, 0.0  ;;  %v7412_v51 = vmax.f32 %v7380_v29, 0.0  ;;  %v9704_v59 = vpop.f32.mrb[4].mxu1  ;;  %v7454_v29 = vld [vmem:[%s10383_s28 + $0x60] sm:$0xff] }
 0x5e3   : > { %7539 = vst.msk [vmem:[%s12136_s23 + $0x8] sm:$0xff] %vm225_vm1, %v7507_v35  ;;  %v7477_v16 = vadd.f32 %v7445_v63, %v7413_v6  ;;  %v7383_v18 = vadd.f32 %v9704_v59, %v12124_v5  ;;  %v7200_v22 = vpop.f32.mrb[5].mxu1 }
 0x5e4   : > { %7538 = vst.msk [vmem:[%s12136_s23] sm:$0xff] %vm225_vm1, %v7506_v43  ;;  %v7476_v26 = vadd.f32 %v7444_v12, %v7412_v51  ;;  %v7382_v33 = vadd.f32 %v12124_v5, %v7200_v22 }
 0x5e5   : > { %v7509_v49 = vmax.f32 %v7477_v16, 0.0  ;;  %v7415_v57 = vmax.f32 %v7383_v18, 0.0  ;;  %v7457_v18 = vld [vmem:[%s10383_s28 + $0x78] sm:$0xff] }
 0x5e6   : > { %v7508_v10 = vmax.f32 %v7476_v26, 0.0  ;;  %v7414_v23 = vmax.f32 %v7382_v33, 0.0  ;;  %v9707_v11 = vpop.f32.mrb[6].mxu1  ;;  %v7456_v33 = vld [vmem:[%s10383_s28 + $0x70] sm:$0xff] }
 0x5e7   : > { %7541 = vst.msk [vmem:[%s12136_s23 + $0x18] sm:$0xff] %vm225_vm1, %v7509_v49  ;;  %v7479_v36 = vadd.f32 %v7447_v40, %v7415_v57  ;;  %v7385_v44 = vadd.f32 %v9707_v11, %v12124_v5  ;;  %v7210_v45 = vpop.f32.mrb[7].mxu1 }
 0x5e8   : > { %7540 = vst.msk [vmem:[%s12136_s23 + $0x10] sm:$0xff] %vm225_vm1, %v7508_v10  ;;  %v7478_v46 = vadd.f32 %v7446_v7, %v7414_v23  ;;  %v7384_v52 = vadd.f32 %v12124_v5, %v7210_v45 }
 0x5e9   : > { %v7511_v53 = vmax.f32 %v7479_v36, 0.0  ;;  %v7417_v54 = vmax.f32 %v7385_v44, 0.0  ;;  %v7459_v44 = vld [vmem:[%s10383_s28 + $0x88] sm:$0xff] }
 0x5ea   : > { %v7510_v2 = vmax.f32 %v7478_v46, 0.0  ;;  %v7416_v4 = vmax.f32 %v7384_v52, 0.0  ;;  %v9710_v30 = vpop.f32.mrb[8].mxu1  ;;  %v7458_v52 = vld [vmem:[%s10383_s28 + $0x80] sm:$0xff] }
 0x5eb   : > { %7543 = vst.msk [vmem:[%s12136_s23 + $0x28] sm:$0xff] %vm225_vm1, %v7511_v53  ;;  %v7481_v8 = vadd.f32 %v7449_v48, %v7417_v54  ;;  %v7387_v9 = vadd.f32 %v9710_v30, %v12124_v5  ;;  %v7220_v47 = vpop.f32.mrb[9].mxu1 }
 0x5ec   : > { %7542 = vst.msk [vmem:[%s12136_s23 + $0x20] sm:$0xff] %vm225_vm1, %v7510_v2  ;;  %v7480_v50 = vadd.f32 %v7448_v41, %v7416_v4  ;;  %v7386_v61 = vadd.f32 %v12124_v5, %v7220_v47 }
 0x5ed   : > { %v7513_v0 = vmax.f32 %v7481_v8, 0.0  ;;  %v7419_v20 = vmax.f32 %v7387_v9, 0.0  ;;  %v7461_v9 = vld [vmem:[%s10383_s28 + $0x98] sm:$0xff] }
 0x5ee   : > { %v7512_v42 = vmax.f32 %v7480_v50, 0.0  ;;  %v7418_v39 = vmax.f32 %v7386_v61, 0.0  ;;  %v9713_v24 = vpop.f32.mrb[10].mxu1  ;;  %v7460_v61 = vld [vmem:[%s10383_s28 + $0x90] sm:$0xff] }
 0x5ef   : > { %7545 = vst.msk [vmem:[%s12136_s23 + $0x38] sm:$0xff] %vm225_vm1, %v7513_v0  ;;  %v7483_v55 = vadd.f32 %v7451_v58, %v7419_v20  ;;  %v7389_v56 = vadd.f32 %v9713_v24, %v12124_v5  ;;  %v7230_v60 = vpop.f32.mrb[11].mxu1 }
 0x5f0   : > { %7544 = vst.msk [vmem:[%s12136_s23 + $0x30] sm:$0xff] %vm225_vm1, %v7512_v42  ;;  %v7482_v13 = vadd.f32 %v7450_v37, %v7418_v39  ;;  %v7388_v28 = vadd.f32 %v12124_v5, %v7230_v60 }
 0x5f1   : > { %v7515_v15 = vmax.f32 %v7483_v55, 0.0  ;;  %v7421_v17 = vmax.f32 %v7389_v56, 0.0  ;;  %v7463_v56 = vld [vmem:[%s10383_s28 + $0xa8] sm:$0xff] }
 0x5f2   : > { %v7514_v62 = vmax.f32 %v7482_v13, 0.0  ;;  %v7420_v21 = vmax.f32 %v7388_v28, 0.0  ;;  %v9716_v25 = vpop.f32.mrb[12].mxu1  ;;  %v7462_v28 = vld [vmem:[%s10383_s28 + $0xa0] sm:$0xff] }
 0x5f3   : > { %7547 = vst.msk [vmem:[%s12136_s23 + $0x48] sm:$0xff] %vm225_vm1, %v7515_v15  ;;  %v7485_v27 = vadd.f32 %v7453_v14, %v7421_v17  ;;  %v7391_v31 = vadd.f32 %v9716_v25, %v12124_v5  ;;  %v7240_v32 = vpop.f32.mrb[13].mxu1 }
 0x5f4   : > { %7546 = vst.msk [vmem:[%s12136_s23 + $0x40] sm:$0xff] %vm225_vm1, %v7514_v62  ;;  %v7484_v38 = vadd.f32 %v7452_v19, %v7420_v21  ;;  %v7390_v1 = vadd.f32 %v12124_v5, %v7240_v32 }
 0x5f5   : > { %v7517_v34 = vmax.f32 %v7485_v27, 0.0  ;;  %v7423_v63 = vmax.f32 %v7391_v31, 0.0  ;;  %v7465_v31 = vld [vmem:[%s10383_s28 + $0xb8] sm:$0xff] }
 0x5f6   : > { %v7516_v35 = vmax.f32 %v7484_v38, 0.0  ;;  %v7422_v6 = vmax.f32 %v7390_v1, 0.0  ;;  %v9719_v12 = vpop.f32.mrb[14].mxu1  ;;  %v7464_v1 = vld [vmem:[%s10383_s28 + $0xb0] sm:$0xff] }
 0x5f7   : > { %7549 = vst.msk [vmem:[%s12136_s23 + $0x58] sm:$0xff] %vm225_vm1, %v7517_v34  ;;  %v7487_v43 = vadd.f32 %v7455_v3, %v7423_v63  ;;  %v7393_v51 = vadd.f32 %v9719_v12, %v12124_v5  ;;  %v7250_v59 = vpop.f32.mrb[15].mxu1 }
 0x5f8   : > { %7548 = vst.msk [vmem:[%s12136_s23 + $0x50] sm:$0xff] %vm225_vm1, %v7516_v35  ;;  %v7486_v16 = vadd.f32 %v7454_v29, %v7422_v6  ;;  %v7392_v22 = vadd.f32 %v12124_v5, %v7250_v59 }
 0x5f9   : > { %v7519_v26 = vmax.f32 %v7487_v43, 0.0  ;;  %v7425_v40 = vmax.f32 %v7393_v51, 0.0  ;;  %v7467_v51 = vld [vmem:[%s10383_s28 + $0xc8] sm:$0xff] }
 0x5fa   : > { %v7518_v49 = vmax.f32 %v7486_v16, 0.0  ;;  %v7424_v57 = vmax.f32 %v7392_v22, 0.0  ;;  %v9722_v7 = vpop.f32.mrb[16].mxu1  ;;  %v7466_v22 = vld [vmem:[%s10383_s28 + $0xc0] sm:$0xff] }
 0x5fb   : > { %7551 = vst.msk [vmem:[%s12136_s23 + $0x68] sm:$0xff] %vm225_vm1, %v7519_v26  ;;  %v7489_v10 = vadd.f32 %v7457_v18, %v7425_v40  ;;  %v7395_v23 = vadd.f32 %v9722_v7, %v12124_v5  ;;  %v7260_v11 = vpop.f32.mrb[17].mxu1 }
 0x5fc   : > { %7550 = vst.msk [vmem:[%s12136_s23 + $0x60] sm:$0xff] %vm225_vm1, %v7518_v49  ;;  %v7488_v36 = vadd.f32 %v7456_v33, %v7424_v57  ;;  %v7394_v45 = vadd.f32 %v12124_v5, %v7260_v11 }
 0x5fd   : > { %v7521_v46 = vmax.f32 %v7489_v10, 0.0  ;;  %v7427_v48 = vmax.f32 %v7395_v23, 0.0  ;;  %v7469_v23 = vld [vmem:[%s10383_s28 + $0xd8] sm:$0xff] }
 0x5fe   : > { %v7520_v53 = vmax.f32 %v7488_v36, 0.0  ;;  %v7426_v54 = vmax.f32 %v7394_v45, 0.0  ;;  %v9725_v41 = vpop.f32.mrb[18].mxu1  ;;  %v7468_v45 = vld [vmem:[%s10383_s28 + $0xd0] sm:$0xff] }
 0x5ff   : > { %7553 = vst.msk [vmem:[%s12136_s23 + $0x78] sm:$0xff] %vm225_vm1, %v7521_v46  ;;  %v7491_v2 = vadd.f32 %v7459_v44, %v7427_v48  ;;  %v7397_v4 = vadd.f32 %v9725_v41, %v12124_v5  ;;  %v7270_v30 = vpop.f32.mrb[19].mxu1 }
 0x600   : > { %7552 = vst.msk [vmem:[%s12136_s23 + $0x70] sm:$0xff] %vm225_vm1, %v7520_v53  ;;  %v7490_v8 = vadd.f32 %v7458_v52, %v7426_v54  ;;  %v7396_v47 = vadd.f32 %v12124_v5, %v7270_v30 }
 0x601   : > { %v7523_v50 = vmax.f32 %v7491_v2, 0.0  ;;  %v7429_v58 = vmax.f32 %v7397_v4, 0.0  ;;  %v7471_v4 = vld [vmem:[%s10383_s28 + $0xe8] sm:$0xff] }
 0x602   : > { %v7522_v0 = vmax.f32 %v7490_v8, 0.0  ;;  %v7428_v20 = vmax.f32 %v7396_v47, 0.0  ;;  %v9728_v37 = vpop.f32.mrb[20].mxu1  ;;  %v7470_v47 = vld [vmem:[%s10383_s28 + $0xe0] sm:$0xff] }
 0x603   : > { %7555 = vst.msk [vmem:[%s12136_s23 + $0x88] sm:$0xff] %vm225_vm1, %v7523_v50  ;;  %v7493_v42 = vadd.f32 %v7461_v9, %v7429_v58  ;;  %v7399_v39 = vadd.f32 %v9728_v37, %v12124_v5  ;;  %v7280_v24 = vpop.f32.mrb[21].mxu1 }
 0x604   : > { %7554 = vst.msk [vmem:[%s12136_s23 + $0x80] sm:$0xff] %vm225_vm1, %v7522_v0  ;;  %v7492_v55 = vadd.f32 %v7460_v61, %v7428_v20  ;;  %v7398_v60 = vadd.f32 %v12124_v5, %v7280_v24 }
 0x605   : > { %v7525_v13 = vmax.f32 %v7493_v42, 0.0  ;;  %v7431_v14 = vmax.f32 %v7399_v39, 0.0  ;;  %v7473_v39 = vld [vmem:[%s10383_s28 + $0xf8] sm:$0xff] }
 0x606   : > { %v7524_v15 = vmax.f32 %v7492_v55, 0.0  ;;  %v7430_v17 = vmax.f32 %v7398_v60, 0.0  ;;  %v9731_v19 = vpop.f32.mrb[22].mxu1  ;;  %v7472_v60 = vld [vmem:[%s10383_s28 + $0xf0] sm:$0xff] }
 0x607   : > { %7557 = vst.msk [vmem:[%s12136_s23 + $0x98] sm:$0xff] %vm225_vm1, %v7525_v13  ;;  %v7495_v62 = vadd.f32 %v7463_v56, %v7431_v14  ;;  %v7401_v21 = vadd.f32 %v9731_v19, %v12124_v5  ;;  %v7290_v25 = vpop.f32.mrb[23].mxu1 }
 0x608   : > { %7556 = vst.msk [vmem:[%s12136_s23 + $0x90] sm:$0xff] %vm225_vm1, %v7524_v15  ;;  %v7494_v27 = vadd.f32 %v7462_v28, %v7430_v17  ;;  %v7400_v32 = vadd.f32 %v12124_v5, %v7290_v25 }
 0x609   : > { %v7527_v38 = vmax.f32 %v7495_v62, 0.0  ;;  %v7433_v3 = vmax.f32 %v7401_v21, 0.0 }
 0x60a   : > { %v7526_v34 = vmax.f32 %v7494_v27, 0.0  ;;  %v7432_v63 = vmax.f32 %v7400_v32, 0.0  ;;  %v9734_v29 = vpop.f32.mrb[24].mxu1 }
 0x60b   : > { %7559 = vst.msk [vmem:[%s12136_s23 + $0xa8] sm:$0xff] %vm225_vm1, %v7527_v38  ;;  %v7497_v35 = vadd.f32 %v7465_v31, %v7433_v3  ;;  %v7403_v6 = vadd.f32 %v9734_v29, %v12124_v5  ;;  %v7300_v12 = vpop.f32.mrb[25].mxu1 }
 0x60c   : > { %7558 = vst.msk [vmem:[%s12136_s23 + $0xa0] sm:$0xff] %vm225_vm1, %v7526_v34  ;;  %v7496_v43 = vadd.f32 %v7464_v1, %v7432_v63  ;;  %v7402_v59 = vadd.f32 %v12124_v5, %v7300_v12 }
 0x60d   : > { %v7529_v16 = vmax.f32 %v7497_v35, 0.0  ;;  %v7435_v18 = vmax.f32 %v7403_v6, 0.0 }
 0x60e   : > { %v7528_v26 = vmax.f32 %v7496_v43, 0.0  ;;  %v7434_v40 = vmax.f32 %v7402_v59, 0.0  ;;  %v9737_v33 = vpop.f32.mrb[26].mxu1 }
 0x60f   : > { %7561 = vst.msk [vmem:[%s12136_s23 + $0xb8] sm:$0xff] %vm225_vm1, %v7529_v16  ;;  %v7499_v49 = vadd.f32 %v7467_v51, %v7435_v18  ;;  %v7405_v57 = vadd.f32 %v9737_v33, %v12124_v5  ;;  %v7310_v7 = vpop.f32.mrb[27].mxu1 }
 0x610   : > { %7560 = vst.msk [vmem:[%s12136_s23 + $0xb0] sm:$0xff] %vm225_vm1, %v7528_v26  ;;  %v7498_v10 = vadd.f32 %v7466_v22, %v7434_v40  ;;  %v7404_v11 = vadd.f32 %v12124_v5, %v7310_v7 }
 0x611   : > { %v7531_v36 = vmax.f32 %v7499_v49, 0.0  ;;  %v7437_v44 = vmax.f32 %v7405_v57, 0.0 }
 0x612   : > { %v7530_v46 = vmax.f32 %v7498_v10, 0.0  ;;  %v7436_v48 = vmax.f32 %v7404_v11, 0.0  ;;  %v9740_v52 = vpop.f32.mrb[28].mxu1 }
 0x613   : > { %7563 = vst.msk [vmem:[%s12136_s23 + $0xc8] sm:$0xff] %vm225_vm1, %v7531_v36  ;;  %v7501_v53 = vadd.f32 %v7469_v23, %v7437_v44  ;;  %v7407_v54 = vadd.f32 %v9740_v52, %v12124_v5  ;;  %v7320_v41 = vpop.f32.mrb[29].mxu1 }
 0x614   : > { %7562 = vst.msk [vmem:[%s12136_s23 + $0xc0] sm:$0xff] %vm225_vm1, %v7530_v46  ;;  %v7500_v2 = vadd.f32 %v7468_v45, %v7436_v48  ;;  %v7406_v30 = vadd.f32 %v12124_v5, %v7320_v41 }
 0x615   : > { %v7533_v8 = vmax.f32 %v7501_v53, 0.0  ;;  %v7439_v9 = vmax.f32 %v7407_v54, 0.0 }
 0x616   : > { %v7532_v50 = vmax.f32 %v7500_v2, 0.0  ;;  %v7438_v58 = vmax.f32 %v7406_v30, 0.0  ;;  %v9743_v61 = vpop.f32.mrb[30].mxu1 }
 0x617   : > { %7565 = vst.msk [vmem:[%s12136_s23 + $0xd8] sm:$0xff] %vm225_vm1, %v7533_v8  ;;  %v7503_v0 = vadd.f32 %v7471_v4, %v7439_v9  ;;  %v7409_v20 = vadd.f32 %v9743_v61, %v12124_v5  ;;  %v7330_v37 = vpop.f32.mrb[31].mxu1 }
 0x618   : > { %7564 = vst.msk [vmem:[%s12136_s23 + $0xd0] sm:$0xff] %vm225_vm1, %v7532_v50  ;;  %v7502_v42 = vadd.f32 %v7470_v47, %v7438_v58  ;;  %v7408_v24 = vadd.f32 %v12124_v5, %v7330_v37 }
 0x619   : > { %v7535_v55 = vmax.f32 %v7503_v0, 0.0  ;;  %v7441_v56 = vmax.f32 %v7409_v20, 0.0 }
 0x61a   : > { %v7534_v13 = vmax.f32 %v7502_v42, 0.0  ;;  %v7440_v14 = vmax.f32 %v7408_v24, 0.0 }
 0x61b   : > { %7567 = vst.msk [vmem:[%s12136_s23 + $0xe8] sm:$0xff] %vm225_vm1, %v7535_v55  ;;  %v7505_v28 = vadd.f32 %v7473_v39, %v7441_v56 }
 0x61c   : > { %7566 = vst.msk [vmem:[%s12136_s23 + $0xe0] sm:$0xff] %vm225_vm1, %v7534_v13  ;;  %v7504_v15 = vadd.f32 %v7472_v60, %v7440_v14 }
 0x61d   : > { %v7537_v17 = vmax.f32 %v7505_v28, 0.0 }
 0x61e   : > { %v7536_v19 = vmax.f32 %v7504_v15, 0.0 }
 0x61f   : > { %7569 = vst.msk [vmem:[%s12136_s23 + $0xf8] sm:$0xff] %vm225_vm1, %v7537_v17 }
 0x620   : > { %7568 = vst.msk [vmem:[%s12136_s23 + $0xf0] sm:$0xff] %vm225_vm1, %v7536_v19 }
 0x621 PF: > { %s15_s18 = sadd.s32 1, %s10271_s18  }
 0x622   : > { %p12_p4 = scmp.ge.s32.totalorder %s15_s18, 4  }
 0x624   :  { %14 = sbr.rel (!%p12_p4) target bundleno = 1 (0x1), region = 89 }

</bundles_post_ra>
